<compile_context>
chip_gen: v7x
topology: tpu7x:2x2x1
jax: 0.10.0
libtpu: 0.0.40
codegen_flags: <defaults>
</compile_context>

<pallas_src>
import jax
import jax.numpy as jnp
from jax import lax
from jax.experimental import pallas as pl
from jax.experimental.pallas import tpu as pltpu


# ----------------------------------------------------------------------------
# Tiled matmul with fused bias / prologue / epilogue activation
# ----------------------------------------------------------------------------

def _choose_tile(dim, candidates):
    for c in candidates:
        if dim % c == 0:
            return c
    return dim  # full-extent block (allowed regardless of (8,128) divisibility)


def _make_matmul_kernel(prologue, epilogue):
    def kernel(a_ref, b_ref, bias_ref, o_ref, acc_ref):
        k = pl.program_id(2)

        @pl.when(k == 0)
        def _():
            acc_ref[...] = jnp.zeros_like(acc_ref)

        a = a_ref[...]
        if prologue == "leaky_relu":
            a = jnp.where(a >= 0, a, 0.2 * a).astype(a_ref.dtype)
        elif prologue == "relu":
            a = jnp.maximum(a, jnp.zeros_like(a))

        acc_ref[...] += jnp.dot(a, b_ref[...], preferred_element_type=jnp.float32)

        @pl.when(k == pl.num_programs(2) - 1)
        def _():
            y = acc_ref[...] + bias_ref[...]
            if epilogue == "relu":
                y = jnp.maximum(y, 0.0)
            elif epilogue == "tanh":
                y = jnp.tanh(y)
            o_ref[...] = y.astype(o_ref.dtype)

    return kernel


def matmul_fused(a, b, bias, *, prologue=None, epilogue=None):
    """(M, K) @ (K, N) + bias(N,), bf16 MXU inputs, f32 accumulate.

    prologue ('leaky_relu'|'relu'|None) acts on the A tile (the im2col'd
    activation), epilogue ('relu'|'tanh'|None) acts on the f32 accumulator
    after the bias add."""
    M, K = a.shape
    _, N = b.shape
    a = a.astype(jnp.bfloat16)
    b = b.astype(jnp.bfloat16)
    bias = bias.astype(jnp.float32).reshape(1, N)

    # Lane-dense output: pad Cout up to a multiple of 128, slice afterwards.
    Np = -(-N // 128) * 128
    if Np != N:
        b = jnp.pad(b, ((0, 0), (0, Np - N)))
        bias = jnp.pad(bias, ((0, 0), (0, Np - N)))

    tm = _choose_tile(M, (512, 256, 128, 64, 32, 16, 8))
    tn = _choose_tile(Np, (256, 128))
    tk = _choose_tile(K, (512, 256, 128))

    out = pl.pallas_call(
        _make_matmul_kernel(prologue, epilogue),
        out_shape=jax.ShapeDtypeStruct((M, Np), jnp.float32),
        grid=(M // tm, Np // tn, K // tk),
        in_specs=[
            pl.BlockSpec((tm, tk), lambda i, j, k: (i, k)),
            pl.BlockSpec((tk, tn), lambda i, j, k: (k, j)),
            pl.BlockSpec((1, tn), lambda i, j, k: (0, j)),
        ],
        out_specs=pl.BlockSpec((tm, tn), lambda i, j, k: (i, j)),
        scratch_shapes=[pltpu.VMEM((tm, tn), jnp.float32)],
        compiler_params=pltpu.CompilerParams(
            dimension_semantics=("parallel", "parallel", "arbitrary")),
    )(a, b, bias)

    if Np != N:
        out = out[:, :N]
    return out


# ----------------------------------------------------------------------------
# Tiled two-pass BatchNorm2d (training-mode batch statistics)
# ----------------------------------------------------------------------------

def _bn_stats_kernel(x_ref, sum_ref, sq_ref):
    @pl.when(pl.program_id(0) == 0)
    def _():
        sum_ref[...] = jnp.zeros_like(sum_ref)
        sq_ref[...] = jnp.zeros_like(sq_ref)

    x = x_ref[...]
    sum_ref[...] += jnp.sum(x, axis=0, keepdims=True)
    sq_ref[...] += jnp.sum(x * x, axis=0, keepdims=True)


def _bn_apply_kernel(x_ref, scale_ref, shift_ref, o_ref):
    o_ref[...] = x_ref[...] * scale_ref[...] + shift_ref[...]


def batchnorm2d(x_nhwc, gamma, beta, eps=1e-5):
    N, H, W, C = x_nhwc.shape
    M = N * H * W
    x2 = x_nhwc.reshape(M, C).astype(jnp.float32)
    tm = _choose_tile(M, (1024, 512, 256, 128, 64, 32, 16, 8))

    sums, sqs = pl.pallas_call(
        _bn_stats_kernel,
        out_shape=(jax.ShapeDtypeStruct((1, C), jnp.float32),
                   jax.ShapeDtypeStruct((1, C), jnp.float32)),
        grid=(M // tm,),
        in_specs=[pl.BlockSpec((tm, C), lambda i: (i, 0))],
        out_specs=(pl.BlockSpec((1, C), lambda i: (0, 0)),
                   pl.BlockSpec((1, C), lambda i: (0, 0))),
        compiler_params=pltpu.CompilerParams(dimension_semantics=("arbitrary",)),
    )(x2)

    mean = sums / M
    var = jnp.maximum(sqs / M - mean * mean, 0.0)      # biased variance
    scale = gamma.reshape(1, C) * lax.rsqrt(var + eps)
    shift = beta.reshape(1, C) - mean * scale

    y = pl.pallas_call(
        _bn_apply_kernel,
        out_shape=jax.ShapeDtypeStruct((M, C), jnp.float32),
        grid=(M // tm,),
        in_specs=[pl.BlockSpec((tm, C), lambda i: (i, 0)),
                  pl.BlockSpec((1, C), lambda i: (0, 0)),
                  pl.BlockSpec((1, C), lambda i: (0, 0))],
        out_specs=pl.BlockSpec((tm, C), lambda i: (i, 0)),
        compiler_params=pltpu.CompilerParams(dimension_semantics=("parallel",)),
    )(x2, scale, shift)
    return y.reshape(N, H, W, C)


# ----------------------------------------------------------------------------
# Conv2d / ConvTranspose2d (k=4, s=2, p=1) -> Pallas matmul
# ----------------------------------------------------------------------------

def conv2d_k4s2p1(x, wmat, bias, *, prologue=None, epilogue=None):
    """x: (N,H,W,Cin); wmat: precomputed (16*Cin, Cout); stride 2, padding 1."""
    N, H, W, Cin = x.shape
    Ho, Wo = H // 2, W // 2
    xp = jnp.pad(x, ((0, 0), (1, 1), (1, 1), (0, 0)))
    # TODO(synk): fold the 16 taps into the matmul K grid axis with direct
    # strided DMA of the padded input instead of materializing the im2col slab.
    cols = [xp[:, kh:kh + 2 * Ho:2, kw:kw + 2 * Wo:2, :]
            for kh in range(4) for kw in range(4)]
    patches = jnp.concatenate(cols, axis=-1).reshape(N * Ho * Wo, 16 * Cin)
    patches = patches.astype(jnp.bfloat16)
    y = matmul_fused(patches, wmat, bias, prologue=prologue, epilogue=epilogue)
    return y.reshape(N, Ho, Wo, -1)


def build_phase_wmats(w_iohw):
    """4-phase decomposition of a ConvTranspose2d(4,2,1) weight (Cin,Cout,4,4).

    Phase (ph, pw) computes output pixels (2a+ph, 2b+pw) as a 2x2 conv with
    K = 4*Cin.  Returns 4 matrices (4*Cin, Cout), tap-major / cin-minor rows,
    in the same tap order used to build the phase patch matrices."""
    Cin, Cout = w_iohw.shape[0], w_iohw.shape[1]
    mats = []
    for ph in (0, 1):
        khs = (3, 1) if ph == 0 else (2, 0)
        for pw in (0, 1):
            kws = (3, 1) if pw == 0 else (2, 0)
            taps = [w_iohw[:, :, kh, kw] for kh in khs for kw in kws]  # (Cin,Cout)
            mats.append(jnp.stack(taps, axis=0).reshape(4 * Cin, Cout))
    return mats


def conv_transpose2d_k4s2p1(x, phase_wmats, bias, *, prologue=None, epilogue=None):
    """x: (N,H,W,Cin); phase_wmats: 4 x (4*Cin, Cout); output (N,2H,2W,Cout)."""
    N, H, W, Cin = x.shape
    Cout = bias.shape[0]
    xp = jnp.pad(x, ((0, 0), (1, 1), (1, 1), (0, 0)))
    phase_rows = []
    for ph in (0, 1):
        ros = (0, 1) if ph == 0 else (1, 2)
        row = []
        for pw in (0, 1):
            cos = (0, 1) if pw == 0 else (1, 2)
            cols = [xp[:, ro:ro + H, co:co + W, :] for ro in ros for co in cos]
            patches = jnp.concatenate(cols, axis=-1).reshape(N * H * W, 4 * Cin)
            patches = patches.astype(jnp.bfloat16)
            y = matmul_fused(patches, phase_wmats[2 * ph + pw], bias,
                             prologue=prologue, epilogue=epilogue)
            row.append(y.reshape(N, H, W, Cout))
        phase_rows.append(jnp.stack(row, axis=3))          # (N, H, W, 2, Cout)
    z = jnp.stack(phase_rows, axis=2)                      # (N, H, 2, W, 2, Cout)
    return z.reshape(N, 2 * H, 2 * W, Cout)


# ----------------------------------------------------------------------------
# UnetGenerator parameters (deterministic) and forward pass
# ----------------------------------------------------------------------------

def _normal(key, shape, std=0.02):
    return std * jax.random.normal(key, shape, dtype=jnp.float32)


def init_unet_generator(key, input_nc, output_nc, num_downs, ngf=64):
    """Mirrors UnetGenerator.__init__ with norm_layer=nn.BatchNorm2d (use_bias=False).
    Weight matrices are precomputed into matmul-ready bf16 layouts."""

    def make_block(k, outer_nc, inner_nc, in_nc, outermost, innermost, submodule):
        if in_nc is None:
            in_nc = outer_nc
        kd, ku = jax.random.split(k)
        up_in = inner_nc if innermost else inner_nc * 2
        down_w = _normal(kd, (inner_nc, in_nc, 4, 4))     # Conv2d  (Cout,Cin,4,4)
        up_w = _normal(ku, (up_in, outer_nc, 4, 4))       # ConvT2d (Cin,Cout,4,4)
        p = {
            "outermost": outermost,
            "innermost": innermost,
            "down_wmat": jnp.transpose(down_w, (2, 3, 1, 0))
                            .reshape(16 * in_nc, inner_nc).astype(jnp.bfloat16),
            "down_b": jnp.zeros((inner_nc,), jnp.float32),   # Conv2d bias=False
            "up_wmats": [m.astype(jnp.bfloat16) for m in build_phase_wmats(up_w)],
            "up_b": jnp.zeros((outer_nc,), jnp.float32),
            "submodule": submodule,
        }
        if not outermost:                                    # upnorm = BatchNorm2d(outer_nc)
            p["up_gamma"] = jnp.ones((outer_nc,), jnp.float32)
            p["up_beta"] = jnp.zeros((outer_nc,), jnp.float32)
        if (not outermost) and (not innermost):              # downnorm = BatchNorm2d(inner_nc)
            p["down_gamma"] = jnp.ones((inner_nc,), jnp.float32)
            p["down_beta"] = jnp.zeros((inner_nc,), jnp.float32)
        return p

    keys = jax.random.split(key, num_downs + 1)
    ki = iter(keys)
    block = make_block(next(ki), ngf * 8, ngf * 8, None, False, True, None)
    for _ in range(num_downs - 5):
        block = make_block(next(ki), ngf * 8, ngf * 8, None, False, False, block)
    block = make_block(next(ki), ngf * 4, ngf * 8, None, False, False, block)
    block = make_block(next(ki), ngf * 2, ngf * 4, None, False, False, block)
    block = make_block(next(ki), ngf, ngf * 2, None, False, False, block)
    block = make_block(next(ki), output_nc, ngf, input_nc, True, False, block)
    return block


def block_forward(p, x):
    """x is NHWC; torch.cat([x, model(x)], dim=1) becomes channel-last concat.
    Activations are fused into the conv matmuls:
      downrelu (LeakyReLU 0.2) -> prologue of the down conv
      uprelu (ReLU)            -> prologue of the up conv-transpose
      Tanh (outermost)         -> epilogue of the up conv-transpose."""
    if p["outermost"]:
        h = conv2d_k4s2p1(x, p["down_wmat"], p["down_b"])
        h = block_forward(p["submodule"], h)
        h = conv_transpose2d_k4s2p1(h, p["up_wmats"], p["up_b"],
                                    prologue="relu", epilogue="tanh")
        return h
    elif p["innermost"]:
        h = conv2d_k4s2p1(x, p["down_wmat"], p["down_b"], prologue="leaky_relu")
        h = conv_transpose2d_k4s2p1(h, p["up_wmats"], p["up_b"], prologue="relu")
        h = batchnorm2d(h, p["up_gamma"], p["up_beta"])
        return jnp.concatenate([x, h], axis=-1)
    else:
        h = conv2d_k4s2p1(x, p["down_wmat"], p["down_b"], prologue="leaky_relu")
        h = batchnorm2d(h, p["down_gamma"], p["down_beta"])
        h = block_forward(p["submodule"], h)
        h = conv_transpose2d_k4s2p1(h, p["up_wmats"], p["up_b"], prologue="relu")
        h = batchnorm2d(h, p["up_gamma"], p["up_beta"])
        return jnp.concatenate([x, h], axis=-1)
        # TODO(synk): use_dropout branch (nn.Dropout(0.5)) not exercised (default False)


def unet_generator_forward(params, x_nchw):
    x = jnp.transpose(x_nchw, (0, 2, 3, 1))   # NCHW -> NHWC
    y = block_forward(params, x)
    return jnp.transpose(y, (0, 3, 1, 2))     # NHWC -> NCHW


# ----------------------------------------------------------------------------
# Demo
# ----------------------------------------------------------------------------

if __name__ == "__main__":
    key = jax.random.PRNGKey(0)
    kx, kp = jax.random.split(key)

    # num_downs=5 is the minimal U-Net depth; spatial must be divisible by 2**num_downs
    N, input_nc, output_nc, ngf, num_downs = 2, 3, 3, 8, 5
    H = W = 32

    x = jax.random.normal(kx, (N, input_nc, H, W), dtype=jnp.float32)
    params = init_unet_generator(kp, input_nc, output_nc, num_downs, ngf)

    fwd = jax.jit(lambda a: unet_generator_forward(params, a))
    y = jax.block_until_ready(fwd(x))

    assert y.shape == (N, output_nc, H, W), y.shape
    assert bool(jnp.all(jnp.isfinite(y)))
    assert bool(jnp.all(jnp.abs(y) <= 1.0 + 1e-6))  # final Tanh
    print("KERNEL_OK")
</pallas_src>

<mosaic_0001>
module attributes {stable_mosaic.version = 11 : i64} {
  func.func @kernel(%arg0: i32, %arg1: i32, %arg2: i32, %arg3: memref<512x48xbf16, #tpu.memory_space<vmem>>, %arg4: memref<48x128xbf16, #tpu.memory_space<vmem>>, %arg5: memref<1x128xf32, #tpu.memory_space<vmem>>, %arg6: memref<512x128xf32, #tpu.memory_space<vmem>>, %arg7: memref<512x128xf32, #tpu.memory_space<vmem>>) attributes {dimension_semantics = [#tpu.dimension_semantics<parallel>, #tpu.dimension_semantics<parallel>, #tpu.dimension_semantics<arbitrary>], iteration_bounds = array<i64: 1, 1, 1>, scalar_prefetch = 0 : i64, scratch_operands = 1 : i64, tpu.core_type = #tpu.core_type<tc>, window_params = [{transform_indices = @transform_0, window_bounds = array<i64: 512, 48>}, {transform_indices = @transform_1, window_bounds = array<i64: 48, 128>}, {transform_indices = @transform_2, window_bounds = array<i64: 1, 128>}, {transform_indices = @transform_3, window_bounds = array<i64: 512, 128>}]} {
    %c0_i32 = arith.constant 0 : i32
    %0 = arith.cmpi eq, %arg2, %c0_i32 : i32
    %1 = arith.extui %0 : i1 to i32
    %c0_i32_0 = arith.constant 0 : i32
    %2 = arith.cmpi ne, %1, %c0_i32_0 : i32
    scf.if %2 {
      %cst_10 = arith.constant 0.000000e+00 : f32
      %12 = vector.broadcast %cst_10 : f32 to vector<512x128xf32>
      %c0_11 = arith.constant 0 : index
      %c0_12 = arith.constant 0 : index
      %13 = vector.load %arg7[%c0_11, %c0_12] : memref<512x128xf32, #tpu.memory_space<vmem>>, vector<512x128xf32>
      tpu.vector_store %arg7[%c0_11, %c0_12], %12 {strides = array<i32>} : memref<512x128xf32, #tpu.memory_space<vmem>>, vector<512x128xf32>,
    } else {
    }
    %c0 = arith.constant 0 : index
    %c0_1 = arith.constant 0 : index
    %3 = vector.load %arg3[%c0, %c0_1] : memref<512x48xbf16, #tpu.memory_space<vmem>>, vector<512x48xbf16>
    %c0_2 = arith.constant 0 : index
    %c0_3 = arith.constant 0 : index
    %4 = vector.load %arg7[%c0_2, %c0_3] : memref<512x128xf32, #tpu.memory_space<vmem>>, vector<512x128xf32>
    %c0_4 = arith.constant 0 : index
    %c0_5 = arith.constant 0 : index
    %5 = vector.load %arg4[%c0_4, %c0_5] : memref<48x128xbf16, #tpu.memory_space<vmem>>, vector<48x128xbf16>
    %cst = arith.constant dense<0.000000e+00> : vector<512x128xf32>
    %6 = tpu.matmul %3, %5, %cst {dimension_numbers = #tpu.dot_dimension_numbers<[1], [0], [0], [1], [0, 0, 1, 1], [], []>} : vector<512x48xbf16>, vector<48x128xbf16>, vector<512x128xf32> -> vector<512x128xf32>
    %7 = arith.addf %4, %6 : vector<512x128xf32>
    %c0_6 = arith.constant 0 : index
    %c0_7 = arith.constant 0 : index
    %8 = vector.load %arg7[%c0_6, %c0_7] : memref<512x128xf32, #tpu.memory_space<vmem>>, vector<512x128xf32>
    tpu.vector_store %arg7[%c0_6, %c0_7], %7 {strides = array<i32>} : memref<512x128xf32, #tpu.memory_space<vmem>>, vector<512x128xf32>,
    %c0_i32_8 = arith.constant 0 : i32
    %9 = arith.cmpi eq, %arg2, %c0_i32_8 : i32
    %10 = arith.extui %9 : i1 to i32
    %c0_i32_9 = arith.constant 0 : i32
    %11 = arith.cmpi ne, %10, %c0_i32_9 : i32
    scf.if %11 {
      %c0_10 = arith.constant 0 : index
      %c0_11 = arith.constant 0 : index
      %12 = vector.load %arg7[%c0_10, %c0_11] : memref<512x128xf32, #tpu.memory_space<vmem>>, vector<512x128xf32>
      %c0_12 = arith.constant 0 : index
      %c0_13 = arith.constant 0 : index
      %13 = vector.load %arg5[%c0_12, %c0_13] : memref<1x128xf32, #tpu.memory_space<vmem>>, vector<1x128xf32>
      %14 = vector.broadcast %13 : vector<1x128xf32> to vector<512x128xf32>
      %15 = arith.addf %12, %14 : vector<512x128xf32>
      %c0_14 = arith.constant 0 : index
      %c0_15 = arith.constant 0 : index
      %16 = vector.load %arg6[%c0_14, %c0_15] : memref<512x128xf32, #tpu.memory_space<vmem>>, vector<512x128xf32>
      tpu.vector_store %arg6[%c0_14, %c0_15], %15 {strides = array<i32>} : memref<512x128xf32, #tpu.memory_space<vmem>>, vector<512x128xf32>,
    } else {
    }
    return
  }
  func.func @transform_0(%arg0: i32, %arg1: i32, %arg2: i32) -> (i32, i32) {
    %c0_i32 = arith.constant 0 : i32
    return %arg0, %arg2 : i32, i32
  }
  func.func @transform_1(%arg0: i32, %arg1: i32, %arg2: i32) -> (i32, i32) {
    %c0_i32 = arith.constant 0 : i32
    return %arg2, %arg1 : i32, i32
  }
  func.func @transform_2(%arg0: i32, %arg1: i32, %arg2: i32) -> (i32, i32) {
    %c0_i32 = arith.constant 0 : i32
    %c0_i32_0 = arith.constant 0 : i32
    return %c0_i32, %arg1 : i32, i32
  }
  func.func @transform_3(%arg0: i32, %arg1: i32, %arg2: i32) -> (i32, i32) {
    %c0_i32 = arith.constant 0 : i32
    return %arg0, %arg1 : i32, i32
  }
}

module attributes {stable_mosaic.version = 11 : i64} {
  func.func @kernel(%arg0: i32, %arg1: i32, %arg2: i32, %arg3: memref<128x128xbf16, #tpu.memory_space<vmem>>, %arg4: memref<128x128xbf16, #tpu.memory_space<vmem>>, %arg5: memref<1x128xf32, #tpu.memory_space<vmem>>, %arg6: memref<128x128xf32, #tpu.memory_space<vmem>>, %arg7: memref<128x128xf32, #tpu.memory_space<vmem>>) attributes {dimension_semantics = [#tpu.dimension_semantics<parallel>, #tpu.dimension_semantics<parallel>, #tpu.dimension_semantics<arbitrary>], iteration_bounds = array<i64: 1, 1, 1>, scalar_prefetch = 0 : i64, scratch_operands = 1 : i64, tpu.core_type = #tpu.core_type<tc>, window_params = [{transform_indices = @transform_0, window_bounds = array<i64: 128, 128>}, {transform_indices = @transform_1, window_bounds = array<i64: 128, 128>}, {transform_indices = @transform_2, window_bounds = array<i64: 1, 128>}, {transform_indices = @transform_3, window_bounds = array<i64: 128, 128>}]} {
    %c0_i32 = arith.constant 0 : i32
    %0 = arith.cmpi eq, %arg2, %c0_i32 : i32
    %1 = arith.extui %0 : i1 to i32
    %c0_i32_0 = arith.constant 0 : i32
    %2 = arith.cmpi ne, %1, %c0_i32_0 : i32
    scf.if %2 {
      %cst_12 = arith.constant 0.000000e+00 : f32
      %17 = vector.broadcast %cst_12 : f32 to vector<128x128xf32>
      %c0_13 = arith.constant 0 : index
      %c0_14 = arith.constant 0 : index
      %18 = vector.load %arg7[%c0_13, %c0_14] : memref<128x128xf32, #tpu.memory_space<vmem>>, vector<128x128xf32>
      tpu.vector_store %arg7[%c0_13, %c0_14], %17 {strides = array<i32>} : memref<128x128xf32, #tpu.memory_space<vmem>>, vector<128x128xf32>,
    } else {
    }
    %c0 = arith.constant 0 : index
    %c0_1 = arith.constant 0 : index
    %3 = vector.load %arg3[%c0, %c0_1] : memref<128x128xbf16, #tpu.memory_space<vmem>>, vector<128x128xbf16>
    %cst = arith.constant 0.000000e+00 : bf16
    %4 = vector.broadcast %cst : bf16 to vector<128x128xbf16>
    %5 = arith.cmpf oge, %3, %4 : vector<128x128xbf16>
    %cst_2 = arith.constant 2.001950e-01 : bf16
    %6 = vector.broadcast %cst_2 : bf16 to vector<128x128xbf16>
    %7 = arith.mulf %6, %3 : vector<128x128xbf16>
    %8 = arith.select %5, %3, %7 : vector<128x128xi1>, vector<128x128xbf16>
    %c0_3 = arith.constant 0 : index
    %c0_4 = arith.constant 0 : index
    %9 = vector.load %arg7[%c0_3, %c0_4] : memref<128x128xf32, #tpu.memory_space<vmem>>, vector<128x128xf32>
    %c0_5 = arith.constant 0 : index
    %c0_6 = arith.constant 0 : index
    %10 = vector.load %arg4[%c0_5, %c0_6] : memref<128x128xbf16, #tpu.memory_space<vmem>>, vector<128x128xbf16>
    %cst_7 = arith.constant dense<0.000000e+00> : vector<128x128xf32>
    %11 = tpu.matmul %8, %10, %cst_7 {dimension_numbers = #tpu.dot_dimension_numbers<[1], [0], [0], [1], [0, 0, 1, 1], [], []>} : vector<128x128xbf16>, vector<128x128xbf16>, vector<128x128xf32> -> vector<128x128xf32>
    %12 = arith.addf %9, %11 : vector<128x128xf32>
    %c0_8 = arith.constant 0 : index
    %c0_9 = arith.constant 0 : index
    %13 = vector.load %arg7[%c0_8, %c0_9] : memref<128x128xf32, #tpu.memory_space<vmem>>, vector<128x128xf32>
    tpu.vector_store %arg7[%c0_8, %c0_9], %12 {strides = array<i32>} : memref<128x128xf32, #tpu.memory_space<vmem>>, vector<128x128xf32>,
    %c0_i32_10 = arith.constant 0 : i32
    %14 = arith.cmpi eq, %arg2, %c0_i32_10 : i32
    %15 = arith.extui %14 : i1 to i32
    %c0_i32_11 = arith.constant 0 : i32
    %16 = arith.cmpi ne, %15, %c0_i32_11 : i32
    scf.if %16 {
      %c0_12 = arith.constant 0 : index
      %c0_13 = arith.constant 0 : index
      %17 = vector.load %arg7[%c0_12, %c0_13] : memref<128x128xf32, #tpu.memory_space<vmem>>, vector<128x128xf32>
      %c0_14 = arith.constant 0 : index
      %c0_15 = arith.constant 0 : index
      %18 = vector.load %arg5[%c0_14, %c0_15] : memref<1x128xf32, #tpu.memory_space<vmem>>, vector<1x128xf32>
      %19 = vector.broadcast %18 : vector<1x128xf32> to vector<128x128xf32>
      %20 = arith.addf %17, %19 : vector<128x128xf32>
      %c0_16 = arith.constant 0 : index
      %c0_17 = arith.constant 0 : index
      %21 = vector.load %arg6[%c0_16, %c0_17] : memref<128x128xf32, #tpu.memory_space<vmem>>, vector<128x128xf32>
      tpu.vector_store %arg6[%c0_16, %c0_17], %20 {strides = array<i32>} : memref<128x128xf32, #tpu.memory_space<vmem>>, vector<128x128xf32>,
    } else {
    }
    return
  }
  func.func @transform_0(%arg0: i32, %arg1: i32, %arg2: i32) -> (i32, i32) {
    %c0_i32 = arith.constant 0 : i32
    return %arg0, %arg2 : i32, i32
  }
  func.func @transform_1(%arg0: i32, %arg1: i32, %arg2: i32) -> (i32, i32) {
    %c0_i32 = arith.constant 0 : i32
    return %arg2, %arg1 : i32, i32
  }
  func.func @transform_2(%arg0: i32, %arg1: i32, %arg2: i32) -> (i32, i32) {
    %c0_i32 = arith.constant 0 : i32
    %c0_i32_0 = arith.constant 0 : i32
    return %c0_i32, %arg1 : i32, i32
  }
  func.func @transform_3(%arg0: i32, %arg1: i32, %arg2: i32) -> (i32, i32) {
    %c0_i32 = arith.constant 0 : i32
    return %arg0, %arg1 : i32, i32
  }
}

module attributes {stable_mosaic.version = 11 : i64} {
  func.func @_bn_stats_kernel(%arg0: i32, %arg1: memref<128x16xf32, #tpu.memory_space<vmem>>, %arg2: memref<1x16xf32, #tpu.memory_space<vmem>>, %arg3: memref<1x16xf32, #tpu.memory_space<vmem>>) attributes {dimension_semantics = [#tpu.dimension_semantics<arbitrary>], iteration_bounds = array<i64: 1>, scalar_prefetch = 0 : i64, scratch_operands = 0 : i64, tpu.core_type = #tpu.core_type<tc>, window_params = [{transform_indices = @transform_0, window_bounds = array<i64: 128, 16>}, {pipeline_mode = #tpu.pipeline_mode<synchronous>, transform_indices = @transform_1, window_bounds = array<i64: 1, 16>}, {pipeline_mode = #tpu.pipeline_mode<synchronous>, transform_indices = @transform_2, window_bounds = array<i64: 1, 16>}]} {
    %c0_i32 = arith.constant 0 : i32
    %0 = arith.cmpi eq, %arg0, %c0_i32 : i32
    %1 = arith.extui %0 : i1 to i32
    %c0_i32_0 = arith.constant 0 : i32
    %2 = arith.cmpi ne, %1, %c0_i32_0 : i32
    scf.if %2 {
      %cst_11 = arith.constant 0.000000e+00 : f32
      %15 = vector.broadcast %cst_11 : f32 to vector<1x16xf32>
      %c0_12 = arith.constant 0 : index
      %c0_13 = arith.constant 0 : index
      %16 = vector.load %arg2[%c0_12, %c0_13] : memref<1x16xf32, #tpu.memory_space<vmem>>, vector<1x16xf32>
      tpu.vector_store %arg2[%c0_12, %c0_13], %15 {strides = array<i32>} : memref<1x16xf32, #tpu.memory_space<vmem>>, vector<1x16xf32>,
      %cst_14 = arith.constant 0.000000e+00 : f32
      %17 = vector.broadcast %cst_14 : f32 to vector<1x16xf32>
      %c0_15 = arith.constant 0 : index
      %c0_16 = arith.constant 0 : index
      %18 = vector.load %arg3[%c0_15, %c0_16] : memref<1x16xf32, #tpu.memory_space<vmem>>, vector<1x16xf32>
      tpu.vector_store %arg3[%c0_15, %c0_16], %17 {strides = array<i32>} : memref<1x16xf32, #tpu.memory_space<vmem>>, vector<1x16xf32>,
    } else {
    }
    %c0 = arith.constant 0 : index
    %c0_1 = arith.constant 0 : index
    %3 = vector.load %arg1[%c0, %c0_1] : memref<128x16xf32, #tpu.memory_space<vmem>>, vector<128x16xf32>
    %c0_2 = arith.constant 0 : index
    %c0_3 = arith.constant 0 : index
    %4 = vector.load %arg2[%c0_2, %c0_3] : memref<1x16xf32, #tpu.memory_space<vmem>>, vector<1x16xf32>
    %cst = arith.constant dense<0.000000e+00> : vector<16xf32>
    %5 = vector.multi_reduction <add>, %3, %cst [0] : vector<128x16xf32> to vector<16xf32>
    %6 = vector.shape_cast %5 : vector<16xf32> to vector<1x16xf32>
    %7 = arith.addf %4, %6 : vector<1x16xf32>
    %c0_4 = arith.constant 0 : index
    %c0_5 = arith.constant 0 : index
    %8 = vector.load %arg2[%c0_4, %c0_5] : memref<1x16xf32, #tpu.memory_space<vmem>>, vector<1x16xf32>
    tpu.vector_store %arg2[%c0_4, %c0_5], %7 {strides = array<i32>} : memref<1x16xf32, #tpu.memory_space<vmem>>, vector<1x16xf32>,
    %c0_6 = arith.constant 0 : index
    %c0_7 = arith.constant 0 : index
    %9 = vector.load %arg3[%c0_6, %c0_7] : memref<1x16xf32, #tpu.memory_space<vmem>>, vector<1x16xf32>
    %10 = arith.mulf %3, %3 : vector<128x16xf32>
    %cst_8 = arith.constant dense<0.000000e+00> : vector<16xf32>
    %11 = vector.multi_reduction <add>, %10, %cst_8 [0] : vector<128x16xf32> to vector<16xf32>
    %12 = vector.shape_cast %11 : vector<16xf32> to vector<1x16xf32>
    %13 = arith.addf %9, %12 : vector<1x16xf32>
    %c0_9 = arith.constant 0 : index
    %c0_10 = arith.constant 0 : index
    %14 = vector.load %arg3[%c0_9, %c0_10] : memref<1x16xf32, #tpu.memory_space<vmem>>, vector<1x16xf32>
    tpu.vector_store %arg3[%c0_9, %c0_10], %13 {strides = array<i32>} : memref<1x16xf32, #tpu.memory_space<vmem>>, vector<1x16xf32>,
    return
  }
  func.func @transform_0(%arg0: i32) -> (i32, i32) {
    %c0_i32 = arith.constant 0 : i32
    %c0_i32_0 = arith.constant 0 : i32
    return %arg0, %c0_i32 : i32, i32
  }
  func.func @transform_1(%arg0: i32) -> (i32, i32) {
    %c0_i32 = arith.constant 0 : i32
    %c0_i32_0 = arith.constant 0 : i32
    %c0_i32_1 = arith.constant 0 : i32
    return %c0_i32, %c0_i32_0 : i32, i32
  }
  func.func @transform_2(%arg0: i32) -> (i32, i32) {
    %c0_i32 = arith.constant 0 : i32
    %c0_i32_0 = arith.constant 0 : i32
    %c0_i32_1 = arith.constant 0 : i32
    return %c0_i32, %c0_i32_0 : i32, i32
  }
}

module attributes {stable_mosaic.version = 11 : i64} {
  func.func @_bn_apply_kernel(%arg0: i32, %arg1: memref<128x16xf32, #tpu.memory_space<vmem>>, %arg2: memref<1x16xf32, #tpu.memory_space<vmem>>, %arg3: memref<1x16xf32, #tpu.memory_space<vmem>>, %arg4: memref<128x16xf32, #tpu.memory_space<vmem>>) attributes {dimension_semantics = [#tpu.dimension_semantics<parallel>], iteration_bounds = array<i64: 1>, scalar_prefetch = 0 : i64, scratch_operands = 0 : i64, tpu.core_type = #tpu.core_type<tc>, window_params = [{transform_indices = @transform_0, window_bounds = array<i64: 128, 16>}, {pipeline_mode = #tpu.pipeline_mode<synchronous>, transform_indices = @transform_1, window_bounds = array<i64: 1, 16>}, {pipeline_mode = #tpu.pipeline_mode<synchronous>, transform_indices = @transform_2, window_bounds = array<i64: 1, 16>}, {transform_indices = @transform_3, window_bounds = array<i64: 128, 16>}]} {
    %c0 = arith.constant 0 : index
    %c0_0 = arith.constant 0 : index
    %0 = vector.load %arg1[%c0, %c0_0] : memref<128x16xf32, #tpu.memory_space<vmem>>, vector<128x16xf32>
    %c0_1 = arith.constant 0 : index
    %c0_2 = arith.constant 0 : index
    %1 = vector.load %arg2[%c0_1, %c0_2] : memref<1x16xf32, #tpu.memory_space<vmem>>, vector<1x16xf32>
    %2 = vector.broadcast %1 : vector<1x16xf32> to vector<128x16xf32>
    %3 = arith.mulf %0, %2 : vector<128x16xf32>
    %c0_3 = arith.constant 0 : index
    %c0_4 = arith.constant 0 : index
    %4 = vector.load %arg3[%c0_3, %c0_4] : memref<1x16xf32, #tpu.memory_space<vmem>>, vector<1x16xf32>
    %5 = vector.broadcast %4 : vector<1x16xf32> to vector<128x16xf32>
    %6 = arith.addf %3, %5 : vector<128x16xf32>
    %c0_5 = arith.constant 0 : index
    %c0_6 = arith.constant 0 : index
    %7 = vector.load %arg4[%c0_5, %c0_6] : memref<128x16xf32, #tpu.memory_space<vmem>>, vector<128x16xf32>
    tpu.vector_store %arg4[%c0_5, %c0_6], %6 {strides = array<i32>} : memref<128x16xf32, #tpu.memory_space<vmem>>, vector<128x16xf32>,
    return
  }
  func.func @transform_0(%arg0: i32) -> (i32, i32) {
    %c0_i32 = arith.constant 0 : i32
    %c0_i32_0 = arith.constant 0 : i32
    return %arg0, %c0_i32 : i32, i32
  }
  func.func @transform_1(%arg0: i32) -> (i32, i32) {
    %c0_i32 = arith.constant 0 : i32
    %c0_i32_0 = arith.constant 0 : i32
    %c0_i32_1 = arith.constant 0 : i32
    return %c0_i32, %c0_i32_0 : i32, i32
  }
  func.func @transform_2(%arg0: i32) -> (i32, i32) {
    %c0_i32 = arith.constant 0 : i32
    %c0_i32_0 = arith.constant 0 : i32
    %c0_i32_1 = arith.constant 0 : i32
    return %c0_i32, %c0_i32_0 : i32, i32
  }
  func.func @transform_3(%arg0: i32) -> (i32, i32) {
    %c0_i32 = arith.constant 0 : i32
    %c0_i32_0 = arith.constant 0 : i32
    return %arg0, %c0_i32 : i32, i32
  }
}

module attributes {stable_mosaic.version = 11 : i64} {
  func.func @kernel(%arg0: i32, %arg1: i32, %arg2: i32, %arg3: memref<32x256xbf16, #tpu.memory_space<vmem>>, %arg4: memref<256x128xbf16, #tpu.memory_space<vmem>>, %arg5: memref<1x128xf32, #tpu.memory_space<vmem>>, %arg6: memref<32x128xf32, #tpu.memory_space<vmem>>, %arg7: memref<32x128xf32, #tpu.memory_space<vmem>>) attributes {dimension_semantics = [#tpu.dimension_semantics<parallel>, #tpu.dimension_semantics<parallel>, #tpu.dimension_semantics<arbitrary>], iteration_bounds = array<i64: 1, 1, 1>, scalar_prefetch = 0 : i64, scratch_operands = 1 : i64, tpu.core_type = #tpu.core_type<tc>, window_params = [{transform_indices = @transform_0, window_bounds = array<i64: 32, 256>}, {transform_indices = @transform_1, window_bounds = array<i64: 256, 128>}, {transform_indices = @transform_2, window_bounds = array<i64: 1, 128>}, {transform_indices = @transform_3, window_bounds = array<i64: 32, 128>}]} {
    %c0_i32 = arith.constant 0 : i32
    %0 = arith.cmpi eq, %arg2, %c0_i32 : i32
    %1 = arith.extui %0 : i1 to i32
    %c0_i32_0 = arith.constant 0 : i32
    %2 = arith.cmpi ne, %1, %c0_i32_0 : i32
    scf.if %2 {
      %cst_12 = arith.constant 0.000000e+00 : f32
      %17 = vector.broadcast %cst_12 : f32 to vector<32x128xf32>
      %c0_13 = arith.constant 0 : index
      %c0_14 = arith.constant 0 : index
      %18 = vector.load %arg7[%c0_13, %c0_14] : memref<32x128xf32, #tpu.memory_space<vmem>>, vector<32x128xf32>
      tpu.vector_store %arg7[%c0_13, %c0_14], %17 {strides = array<i32>} : memref<32x128xf32, #tpu.memory_space<vmem>>, vector<32x128xf32>,
    } else {
    }
    %c0 = arith.constant 0 : index
    %c0_1 = arith.constant 0 : index
    %3 = vector.load %arg3[%c0, %c0_1] : memref<32x256xbf16, #tpu.memory_space<vmem>>, vector<32x256xbf16>
    %cst = arith.constant 0.000000e+00 : bf16
    %4 = vector.broadcast %cst : bf16 to vector<32x256xbf16>
    %5 = arith.cmpf oge, %3, %4 : vector<32x256xbf16>
    %cst_2 = arith.constant 2.001950e-01 : bf16
    %6 = vector.broadcast %cst_2 : bf16 to vector<32x256xbf16>
    %7 = arith.mulf %6, %3 : vector<32x256xbf16>
    %8 = arith.select %5, %3, %7 : vector<32x256xi1>, vector<32x256xbf16>
    %c0_3 = arith.constant 0 : index
    %c0_4 = arith.constant 0 : index
    %9 = vector.load %arg7[%c0_3, %c0_4] : memref<32x128xf32, #tpu.memory_space<vmem>>, vector<32x128xf32>
    %c0_5 = arith.constant 0 : index
    %c0_6 = arith.constant 0 : index
    %10 = vector.load %arg4[%c0_5, %c0_6] : memref<256x128xbf16, #tpu.memory_space<vmem>>, vector<256x128xbf16>
    %cst_7 = arith.constant dense<0.000000e+00> : vector<32x128xf32>
    %11 = tpu.matmul %8, %10, %cst_7 {dimension_numbers = #tpu.dot_dimension_numbers<[1], [0], [0], [1], [0, 0, 1, 1], [], []>} : vector<32x256xbf16>, vector<256x128xbf16>, vector<32x128xf32> -> vector<32x128xf32>
    %12 = arith.addf %9, %11 : vector<32x128xf32>
    %c0_8 = arith.constant 0 : index
    %c0_9 = arith.constant 0 : index
    %13 = vector.load %arg7[%c0_8, %c0_9] : memref<32x128xf32, #tpu.memory_space<vmem>>, vector<32x128xf32>
    tpu.vector_store %arg7[%c0_8, %c0_9], %12 {strides = array<i32>} : memref<32x128xf32, #tpu.memory_space<vmem>>, vector<32x128xf32>,
    %c0_i32_10 = arith.constant 0 : i32
    %14 = arith.cmpi eq, %arg2, %c0_i32_10 : i32
    %15 = arith.extui %14 : i1 to i32
    %c0_i32_11 = arith.constant 0 : i32
    %16 = arith.cmpi ne, %15, %c0_i32_11 : i32
    scf.if %16 {
      %c0_12 = arith.constant 0 : index
      %c0_13 = arith.constant 0 : index
      %17 = vector.load %arg7[%c0_12, %c0_13] : memref<32x128xf32, #tpu.memory_space<vmem>>, vector<32x128xf32>
      %c0_14 = arith.constant 0 : index
      %c0_15 = arith.constant 0 : index
      %18 = vector.load %arg5[%c0_14, %c0_15] : memref<1x128xf32, #tpu.memory_space<vmem>>, vector<1x128xf32>
      %19 = vector.broadcast %18 : vector<1x128xf32> to vector<32x128xf32>
      %20 = arith.addf %17, %19 : vector<32x128xf32>
      %c0_16 = arith.constant 0 : index
      %c0_17 = arith.constant 0 : index
      %21 = vector.load %arg6[%c0_16, %c0_17] : memref<32x128xf32, #tpu.memory_space<vmem>>, vector<32x128xf32>
      tpu.vector_store %arg6[%c0_16, %c0_17], %20 {strides = array<i32>} : memref<32x128xf32, #tpu.memory_space<vmem>>, vector<32x128xf32>,
    } else {
    }
    return
  }
  func.func @transform_0(%arg0: i32, %arg1: i32, %arg2: i32) -> (i32, i32) {
    %c0_i32 = arith.constant 0 : i32
    return %arg0, %arg2 : i32, i32
  }
  func.func @transform_1(%arg0: i32, %arg1: i32, %arg2: i32) -> (i32, i32) {
    %c0_i32 = arith.constant 0 : i32
    return %arg2, %arg1 : i32, i32
  }
  func.func @transform_2(%arg0: i32, %arg1: i32, %arg2: i32) -> (i32, i32) {
    %c0_i32 = arith.constant 0 : i32
    %c0_i32_0 = arith.constant 0 : i32
    return %c0_i32, %arg1 : i32, i32
  }
  func.func @transform_3(%arg0: i32, %arg1: i32, %arg2: i32) -> (i32, i32) {
    %c0_i32 = arith.constant 0 : i32
    return %arg0, %arg1 : i32, i32
  }
}

module attributes {stable_mosaic.version = 11 : i64} {
  func.func @_bn_stats_kernel(%arg0: i32, %arg1: memref<32x32xf32, #tpu.memory_space<vmem>>, %arg2: memref<1x32xf32, #tpu.memory_space<vmem>>, %arg3: memref<1x32xf32, #tpu.memory_space<vmem>>) attributes {dimension_semantics = [#tpu.dimension_semantics<arbitrary>], iteration_bounds = array<i64: 1>, scalar_prefetch = 0 : i64, scratch_operands = 0 : i64, tpu.core_type = #tpu.core_type<tc>, window_params = [{transform_indices = @transform_0, window_bounds = array<i64: 32, 32>}, {pipeline_mode = #tpu.pipeline_mode<synchronous>, transform_indices = @transform_1, window_bounds = array<i64: 1, 32>}, {pipeline_mode = #tpu.pipeline_mode<synchronous>, transform_indices = @transform_2, window_bounds = array<i64: 1, 32>}]} {
    %c0_i32 = arith.constant 0 : i32
    %0 = arith.cmpi eq, %arg0, %c0_i32 : i32
    %1 = arith.extui %0 : i1 to i32
    %c0_i32_0 = arith.constant 0 : i32
    %2 = arith.cmpi ne, %1, %c0_i32_0 : i32
    scf.if %2 {
      %cst_11 = arith.constant 0.000000e+00 : f32
      %15 = vector.broadcast %cst_11 : f32 to vector<1x32xf32>
      %c0_12 = arith.constant 0 : index
      %c0_13 = arith.constant 0 : index
      %16 = vector.load %arg2[%c0_12, %c0_13] : memref<1x32xf32, #tpu.memory_space<vmem>>, vector<1x32xf32>
      tpu.vector_store %arg2[%c0_12, %c0_13], %15 {strides = array<i32>} : memref<1x32xf32, #tpu.memory_space<vmem>>, vector<1x32xf32>,
      %cst_14 = arith.constant 0.000000e+00 : f32
      %17 = vector.broadcast %cst_14 : f32 to vector<1x32xf32>
      %c0_15 = arith.constant 0 : index
      %c0_16 = arith.constant 0 : index
      %18 = vector.load %arg3[%c0_15, %c0_16] : memref<1x32xf32, #tpu.memory_space<vmem>>, vector<1x32xf32>
      tpu.vector_store %arg3[%c0_15, %c0_16], %17 {strides = array<i32>} : memref<1x32xf32, #tpu.memory_space<vmem>>, vector<1x32xf32>,
    } else {
    }
    %c0 = arith.constant 0 : index
    %c0_1 = arith.constant 0 : index
    %3 = vector.load %arg1[%c0, %c0_1] : memref<32x32xf32, #tpu.memory_space<vmem>>, vector<32x32xf32>
    %c0_2 = arith.constant 0 : index
    %c0_3 = arith.constant 0 : index
    %4 = vector.load %arg2[%c0_2, %c0_3] : memref<1x32xf32, #tpu.memory_space<vmem>>, vector<1x32xf32>
    %cst = arith.constant dense<0.000000e+00> : vector<32xf32>
    %5 = vector.multi_reduction <add>, %3, %cst [0] : vector<32x32xf32> to vector<32xf32>
    %6 = vector.shape_cast %5 : vector<32xf32> to vector<1x32xf32>
    %7 = arith.addf %4, %6 : vector<1x32xf32>
    %c0_4 = arith.constant 0 : index
    %c0_5 = arith.constant 0 : index
    %8 = vector.load %arg2[%c0_4, %c0_5] : memref<1x32xf32, #tpu.memory_space<vmem>>, vector<1x32xf32>
    tpu.vector_store %arg2[%c0_4, %c0_5], %7 {strides = array<i32>} : memref<1x32xf32, #tpu.memory_space<vmem>>, vector<1x32xf32>,
    %c0_6 = arith.constant 0 : index
    %c0_7 = arith.constant 0 : index
    %9 = vector.load %arg3[%c0_6, %c0_7] : memref<1x32xf32, #tpu.memory_space<vmem>>, vector<1x32xf32>
    %10 = arith.mulf %3, %3 : vector<32x32xf32>
    %cst_8 = arith.constant dense<0.000000e+00> : vector<32xf32>
    %11 = vector.multi_reduction <add>, %10, %cst_8 [0] : vector<32x32xf32> to vector<32xf32>
    %12 = vector.shape_cast %11 : vector<32xf32> to vector<1x32xf32>
    %13 = arith.addf %9, %12 : vector<1x32xf32>
    %c0_9 = arith.constant 0 : index
    %c0_10 = arith.constant 0 : index
    %14 = vector.load %arg3[%c0_9, %c0_10] : memref<1x32xf32, #tpu.memory_space<vmem>>, vector<1x32xf32>
    tpu.vector_store %arg3[%c0_9, %c0_10], %13 {strides = array<i32>} : memref<1x32xf32, #tpu.memory_space<vmem>>, vector<1x32xf32>,
    return
  }
  func.func @transform_0(%arg0: i32) -> (i32, i32) {
    %c0_i32 = arith.constant 0 : i32
    %c0_i32_0 = arith.constant 0 : i32
    return %arg0, %c0_i32 : i32, i32
  }
  func.func @transform_1(%arg0: i32) -> (i32, i32) {
    %c0_i32 = arith.constant 0 : i32
    %c0_i32_0 = arith.constant 0 : i32
    %c0_i32_1 = arith.constant 0 : i32
    return %c0_i32, %c0_i32_0 : i32, i32
  }
  func.func @transform_2(%arg0: i32) -> (i32, i32) {
    %c0_i32 = arith.constant 0 : i32
    %c0_i32_0 = arith.constant 0 : i32
    %c0_i32_1 = arith.constant 0 : i32
    return %c0_i32, %c0_i32_0 : i32, i32
  }
}

module attributes {stable_mosaic.version = 11 : i64} {
  func.func @_bn_apply_kernel(%arg0: i32, %arg1: memref<32x32xf32, #tpu.memory_space<vmem>>, %arg2: memref<1x32xf32, #tpu.memory_space<vmem>>, %arg3: memref<1x32xf32, #tpu.memory_space<vmem>>, %arg4: memref<32x32xf32, #tpu.memory_space<vmem>>) attributes {dimension_semantics = [#tpu.dimension_semantics<parallel>], iteration_bounds = array<i64: 1>, scalar_prefetch = 0 : i64, scratch_operands = 0 : i64, tpu.core_type = #tpu.core_type<tc>, window_params = [{transform_indices = @transform_0, window_bounds = array<i64: 32, 32>}, {pipeline_mode = #tpu.pipeline_mode<synchronous>, transform_indices = @transform_1, window_bounds = array<i64: 1, 32>}, {pipeline_mode = #tpu.pipeline_mode<synchronous>, transform_indices = @transform_2, window_bounds = array<i64: 1, 32>}, {transform_indices = @transform_3, window_bounds = array<i64: 32, 32>}]} {
    %c0 = arith.constant 0 : index
    %c0_0 = arith.constant 0 : index
    %0 = vector.load %arg1[%c0, %c0_0] : memref<32x32xf32, #tpu.memory_space<vmem>>, vector<32x32xf32>
    %c0_1 = arith.constant 0 : index
    %c0_2 = arith.constant 0 : index
    %1 = vector.load %arg2[%c0_1, %c0_2] : memref<1x32xf32, #tpu.memory_space<vmem>>, vector<1x32xf32>
    %2 = vector.broadcast %1 : vector<1x32xf32> to vector<32x32xf32>
    %3 = arith.mulf %0, %2 : vector<32x32xf32>
    %c0_3 = arith.constant 0 : index
    %c0_4 = arith.constant 0 : index
    %4 = vector.load %arg3[%c0_3, %c0_4] : memref<1x32xf32, #tpu.memory_space<vmem>>, vector<1x32xf32>
    %5 = vector.broadcast %4 : vector<1x32xf32> to vector<32x32xf32>
    %6 = arith.addf %3, %5 : vector<32x32xf32>
    %c0_5 = arith.constant 0 : index
    %c0_6 = arith.constant 0 : index
    %7 = vector.load %arg4[%c0_5, %c0_6] : memref<32x32xf32, #tpu.memory_space<vmem>>, vector<32x32xf32>
    tpu.vector_store %arg4[%c0_5, %c0_6], %6 {strides = array<i32>} : memref<32x32xf32, #tpu.memory_space<vmem>>, vector<32x32xf32>,
    return
  }
  func.func @transform_0(%arg0: i32) -> (i32, i32) {
    %c0_i32 = arith.constant 0 : i32
    %c0_i32_0 = arith.constant 0 : i32
    return %arg0, %c0_i32 : i32, i32
  }
  func.func @transform_1(%arg0: i32) -> (i32, i32) {
    %c0_i32 = arith.constant 0 : i32
    %c0_i32_0 = arith.constant 0 : i32
    %c0_i32_1 = arith.constant 0 : i32
    return %c0_i32, %c0_i32_0 : i32, i32
  }
  func.func @transform_2(%arg0: i32) -> (i32, i32) {
    %c0_i32 = arith.constant 0 : i32
    %c0_i32_0 = arith.constant 0 : i32
    %c0_i32_1 = arith.constant 0 : i32
    return %c0_i32, %c0_i32_0 : i32, i32
  }
  func.func @transform_3(%arg0: i32) -> (i32, i32) {
    %c0_i32 = arith.constant 0 : i32
    %c0_i32_0 = arith.constant 0 : i32
    return %arg0, %c0_i32 : i32, i32
  }
}

module attributes {stable_mosaic.version = 11 : i64} {
  func.func @_bn_stats_kernel(%arg0: i32, %arg1: memref<8x64xf32, #tpu.memory_space<vmem>>, %arg2: memref<1x64xf32, #tpu.memory_space<vmem>>, %arg3: memref<1x64xf32, #tpu.memory_space<vmem>>) attributes {dimension_semantics = [#tpu.dimension_semantics<arbitrary>], iteration_bounds = array<i64: 1>, scalar_prefetch = 0 : i64, scratch_operands = 0 : i64, tpu.core_type = #tpu.core_type<tc>, window_params = [{transform_indices = @transform_0, window_bounds = array<i64: 8, 64>}, {pipeline_mode = #tpu.pipeline_mode<synchronous>, transform_indices = @transform_1, window_bounds = array<i64: 1, 64>}, {pipeline_mode = #tpu.pipeline_mode<synchronous>, transform_indices = @transform_2, window_bounds = array<i64: 1, 64>}]} {
    %c0_i32 = arith.constant 0 : i32
    %0 = arith.cmpi eq, %arg0, %c0_i32 : i32
    %1 = arith.extui %0 : i1 to i32
    %c0_i32_0 = arith.constant 0 : i32
    %2 = arith.cmpi ne, %1, %c0_i32_0 : i32
    scf.if %2 {
      %cst_11 = arith.constant 0.000000e+00 : f32
      %15 = vector.broadcast %cst_11 : f32 to vector<1x64xf32>
      %c0_12 = arith.constant 0 : index
      %c0_13 = arith.constant 0 : index
      %16 = vector.load %arg2[%c0_12, %c0_13] : memref<1x64xf32, #tpu.memory_space<vmem>>, vector<1x64xf32>
      tpu.vector_store %arg2[%c0_12, %c0_13], %15 {strides = array<i32>} : memref<1x64xf32, #tpu.memory_space<vmem>>, vector<1x64xf32>,
      %cst_14 = arith.constant 0.000000e+00 : f32
      %17 = vector.broadcast %cst_14 : f32 to vector<1x64xf32>
      %c0_15 = arith.constant 0 : index
      %c0_16 = arith.constant 0 : index
      %18 = vector.load %arg3[%c0_15, %c0_16] : memref<1x64xf32, #tpu.memory_space<vmem>>, vector<1x64xf32>
      tpu.vector_store %arg3[%c0_15, %c0_16], %17 {strides = array<i32>} : memref<1x64xf32, #tpu.memory_space<vmem>>, vector<1x64xf32>,
    } else {
    }
    %c0 = arith.constant 0 : index
    %c0_1 = arith.constant 0 : index
    %3 = vector.load %arg1[%c0, %c0_1] : memref<8x64xf32, #tpu.memory_space<vmem>>, vector<8x64xf32>
    %c0_2 = arith.constant 0 : index
    %c0_3 = arith.constant 0 : index
    %4 = vector.load %arg2[%c0_2, %c0_3] : memref<1x64xf32, #tpu.memory_space<vmem>>, vector<1x64xf32>
    %cst = arith.constant dense<0.000000e+00> : vector<64xf32>
    %5 = vector.multi_reduction <add>, %3, %cst [0] : vector<8x64xf32> to vector<64xf32>
    %6 = vector.shape_cast %5 : vector<64xf32> to vector<1x64xf32>
    %7 = arith.addf %4, %6 : vector<1x64xf32>
    %c0_4 = arith.constant 0 : index
    %c0_5 = arith.constant 0 : index
    %8 = vector.load %arg2[%c0_4, %c0_5] : memref<1x64xf32, #tpu.memory_space<vmem>>, vector<1x64xf32>
    tpu.vector_store %arg2[%c0_4, %c0_5], %7 {strides = array<i32>} : memref<1x64xf32, #tpu.memory_space<vmem>>, vector<1x64xf32>,
    %c0_6 = arith.constant 0 : index
    %c0_7 = arith.constant 0 : index
    %9 = vector.load %arg3[%c0_6, %c0_7] : memref<1x64xf32, #tpu.memory_space<vmem>>, vector<1x64xf32>
    %10 = arith.mulf %3, %3 : vector<8x64xf32>
    %cst_8 = arith.constant dense<0.000000e+00> : vector<64xf32>
    %11 = vector.multi_reduction <add>, %10, %cst_8 [0] : vector<8x64xf32> to vector<64xf32>
    %12 = vector.shape_cast %11 : vector<64xf32> to vector<1x64xf32>
    %13 = arith.addf %9, %12 : vector<1x64xf32>
    %c0_9 = arith.constant 0 : index
    %c0_10 = arith.constant 0 : index
    %14 = vector.load %arg3[%c0_9, %c0_10] : memref<1x64xf32, #tpu.memory_space<vmem>>, vector<1x64xf32>
    tpu.vector_store %arg3[%c0_9, %c0_10], %13 {strides = array<i32>} : memref<1x64xf32, #tpu.memory_space<vmem>>, vector<1x64xf32>,
    return
  }
  func.func @transform_0(%arg0: i32) -> (i32, i32) {
    %c0_i32 = arith.constant 0 : i32
    %c0_i32_0 = arith.constant 0 : i32
    return %arg0, %c0_i32 : i32, i32
  }
  func.func @transform_1(%arg0: i32) -> (i32, i32) {
    %c0_i32 = arith.constant 0 : i32
    %c0_i32_0 = arith.constant 0 : i32
    %c0_i32_1 = arith.constant 0 : i32
    return %c0_i32, %c0_i32_0 : i32, i32
  }
  func.func @transform_2(%arg0: i32) -> (i32, i32) {
    %c0_i32 = arith.constant 0 : i32
    %c0_i32_0 = arith.constant 0 : i32
    %c0_i32_1 = arith.constant 0 : i32
    return %c0_i32, %c0_i32_0 : i32, i32
  }
}

module attributes {stable_mosaic.version = 11 : i64} {
  func.func @kernel(%arg0: i32, %arg1: i32, %arg2: i32, %arg3: memref<8x512xbf16, #tpu.memory_space<vmem>>, %arg4: memref<512x128xbf16, #tpu.memory_space<vmem>>, %arg5: memref<1x128xf32, #tpu.memory_space<vmem>>, %arg6: memref<8x128xf32, #tpu.memory_space<vmem>>, %arg7: memref<8x128xf32, #tpu.memory_space<vmem>>) attributes {dimension_semantics = [#tpu.dimension_semantics<parallel>, #tpu.dimension_semantics<parallel>, #tpu.dimension_semantics<arbitrary>], iteration_bounds = array<i64: 1, 1, 1>, scalar_prefetch = 0 : i64, scratch_operands = 1 : i64, tpu.core_type = #tpu.core_type<tc>, window_params = [{transform_indices = @transform_0, window_bounds = array<i64: 8, 512>}, {transform_indices = @transform_1, window_bounds = array<i64: 512, 128>}, {transform_indices = @transform_2, window_bounds = array<i64: 1, 128>}, {transform_indices = @transform_3, window_bounds = array<i64: 8, 128>}]} {
    %c0_i32 = arith.constant 0 : i32
    %0 = arith.cmpi eq, %arg2, %c0_i32 : i32
    %1 = arith.extui %0 : i1 to i32
    %c0_i32_0 = arith.constant 0 : i32
    %2 = arith.cmpi ne, %1, %c0_i32_0 : i32
    scf.if %2 {
      %cst_12 = arith.constant 0.000000e+00 : f32
      %17 = vector.broadcast %cst_12 : f32 to vector<8x128xf32>
      %c0_13 = arith.constant 0 : index
      %c0_14 = arith.constant 0 : index
      %18 = vector.load %arg7[%c0_13, %c0_14] : memref<8x128xf32, #tpu.memory_space<vmem>>, vector<8x128xf32>
      tpu.vector_store %arg7[%c0_13, %c0_14], %17 {strides = array<i32>} : memref<8x128xf32, #tpu.memory_space<vmem>>, vector<8x128xf32>,
    } else {
    }
    %c0 = arith.constant 0 : index
    %c0_1 = arith.constant 0 : index
    %3 = vector.load %arg3[%c0, %c0_1] : memref<8x512xbf16, #tpu.memory_space<vmem>>, vector<8x512xbf16>
    %cst = arith.constant 0.000000e+00 : bf16
    %4 = vector.broadcast %cst : bf16 to vector<8x512xbf16>
    %5 = arith.cmpf oge, %3, %4 : vector<8x512xbf16>
    %cst_2 = arith.constant 2.001950e-01 : bf16
    %6 = vector.broadcast %cst_2 : bf16 to vector<8x512xbf16>
    %7 = arith.mulf %6, %3 : vector<8x512xbf16>
    %8 = arith.select %5, %3, %7 : vector<8x512xi1>, vector<8x512xbf16>
    %c0_3 = arith.constant 0 : index
    %c0_4 = arith.constant 0 : index
    %9 = vector.load %arg7[%c0_3, %c0_4] : memref<8x128xf32, #tpu.memory_space<vmem>>, vector<8x128xf32>
    %c0_5 = arith.constant 0 : index
    %c0_6 = arith.constant 0 : index
    %10 = vector.load %arg4[%c0_5, %c0_6] : memref<512x128xbf16, #tpu.memory_space<vmem>>, vector<512x128xbf16>
    %cst_7 = arith.constant dense<0.000000e+00> : vector<8x128xf32>
    %11 = tpu.matmul %8, %10, %cst_7 {dimension_numbers = #tpu.dot_dimension_numbers<[1], [0], [0], [1], [0, 0, 1, 1], [], []>} : vector<8x512xbf16>, vector<512x128xbf16>, vector<8x128xf32> -> vector<8x128xf32>
    %12 = arith.addf %9, %11 : vector<8x128xf32>
    %c0_8 = arith.constant 0 : index
    %c0_9 = arith.constant 0 : index
    %13 = vector.load %arg7[%c0_8, %c0_9] : memref<8x128xf32, #tpu.memory_space<vmem>>, vector<8x128xf32>
    tpu.vector_store %arg7[%c0_8, %c0_9], %12 {strides = array<i32>} : memref<8x128xf32, #tpu.memory_space<vmem>>, vector<8x128xf32>,
    %c0_i32_10 = arith.constant 0 : i32
    %14 = arith.cmpi eq, %arg2, %c0_i32_10 : i32
    %15 = arith.extui %14 : i1 to i32
    %c0_i32_11 = arith.constant 0 : i32
    %16 = arith.cmpi ne, %15, %c0_i32_11 : i32
    scf.if %16 {
      %c0_12 = arith.constant 0 : index
      %c0_13 = arith.constant 0 : index
      %17 = vector.load %arg7[%c0_12, %c0_13] : memref<8x128xf32, #tpu.memory_space<vmem>>, vector<8x128xf32>
      %c0_14 = arith.constant 0 : index
      %c0_15 = arith.constant 0 : index
      %18 = vector.load %arg5[%c0_14, %c0_15] : memref<1x128xf32, #tpu.memory_space<vmem>>, vector<1x128xf32>
      %19 = vector.broadcast %18 : vector<1x128xf32> to vector<8x128xf32>
      %20 = arith.addf %17, %19 : vector<8x128xf32>
      %c0_16 = arith.constant 0 : index
      %c0_17 = arith.constant 0 : index
      %21 = vector.load %arg6[%c0_16, %c0_17] : memref<8x128xf32, #tpu.memory_space<vmem>>, vector<8x128xf32>
      tpu.vector_store %arg6[%c0_16, %c0_17], %20 {strides = array<i32>} : memref<8x128xf32, #tpu.memory_space<vmem>>, vector<8x128xf32>,
    } else {
    }
    return
  }
  func.func @transform_0(%arg0: i32, %arg1: i32, %arg2: i32) -> (i32, i32) {
    %c0_i32 = arith.constant 0 : i32
    return %arg0, %arg2 : i32, i32
  }
  func.func @transform_1(%arg0: i32, %arg1: i32, %arg2: i32) -> (i32, i32) {
    %c0_i32 = arith.constant 0 : i32
    return %arg2, %arg1 : i32, i32
  }
  func.func @transform_2(%arg0: i32, %arg1: i32, %arg2: i32) -> (i32, i32) {
    %c0_i32 = arith.constant 0 : i32
    %c0_i32_0 = arith.constant 0 : i32
    return %c0_i32, %arg1 : i32, i32
  }
  func.func @transform_3(%arg0: i32, %arg1: i32, %arg2: i32) -> (i32, i32) {
    %c0_i32 = arith.constant 0 : i32
    return %arg0, %arg1 : i32, i32
  }
}

module attributes {stable_mosaic.version = 11 : i64} {
  func.func @kernel(%arg0: i32, %arg1: i32, %arg2: i32, %arg3: memref<2x512xbf16, #tpu.memory_space<vmem>>, %arg4: memref<512x128xbf16, #tpu.memory_space<vmem>>, %arg5: memref<1x128xf32, #tpu.memory_space<vmem>>, %arg6: memref<2x128xf32, #tpu.memory_space<vmem>>, %arg7: memref<2x128xf32, #tpu.memory_space<vmem>>) attributes {dimension_semantics = [#tpu.dimension_semantics<parallel>, #tpu.dimension_semantics<parallel>, #tpu.dimension_semantics<arbitrary>], iteration_bounds = array<i64: 1, 1, 2>, scalar_prefetch = 0 : i64, scratch_operands = 1 : i64, tpu.core_type = #tpu.core_type<tc>, window_params = [{transform_indices = @transform_0, window_bounds = array<i64: 2, 512>}, {transform_indices = @transform_1, window_bounds = array<i64: 512, 128>}, {transform_indices = @transform_2, window_bounds = array<i64: 1, 128>}, {transform_indices = @transform_3, window_bounds = array<i64: 2, 128>}]} {
    %c0_i32 = arith.constant 0 : i32
    %0 = arith.cmpi eq, %arg2, %c0_i32 : i32
    %1 = arith.extui %0 : i1 to i32
    %c0_i32_0 = arith.constant 0 : i32
    %2 = arith.cmpi ne, %1, %c0_i32_0 : i32
    scf.if %2 {
      %cst_11 = arith.constant 0.000000e+00 : f32
      %17 = vector.broadcast %cst_11 : f32 to vector<2x128xf32>
      %c0_12 = arith.constant 0 : index
      %c0_13 = arith.constant 0 : index
      %18 = vector.load %arg7[%c0_12, %c0_13] : memref<2x128xf32, #tpu.memory_space<vmem>>, vector<2x128xf32>
      tpu.vector_store %arg7[%c0_12, %c0_13], %17 {strides = array<i32>} : memref<2x128xf32, #tpu.memory_space<vmem>>, vector<2x128xf32>,
    } else {
    }
    %c0 = arith.constant 0 : index
    %c0_1 = arith.constant 0 : index
    %3 = vector.load %arg3[%c0, %c0_1] : memref<2x512xbf16, #tpu.memory_space<vmem>>, vector<2x512xbf16>
    %cst = arith.constant 0.000000e+00 : bf16
    %4 = vector.broadcast %cst : bf16 to vector<2x512xbf16>
    %5 = arith.cmpf oge, %3, %4 : vector<2x512xbf16>
    %cst_2 = arith.constant 2.001950e-01 : bf16
    %6 = vector.broadcast %cst_2 : bf16 to vector<2x512xbf16>
    %7 = arith.mulf %6, %3 : vector<2x512xbf16>
    %8 = arith.select %5, %3, %7 : vector<2x512xi1>, vector<2x512xbf16>
    %c0_3 = arith.constant 0 : index
    %c0_4 = arith.constant 0 : index
    %9 = vector.load %arg7[%c0_3, %c0_4] : memref<2x128xf32, #tpu.memory_space<vmem>>, vector<2x128xf32>
    %c0_5 = arith.constant 0 : index
    %c0_6 = arith.constant 0 : index
    %10 = vector.load %arg4[%c0_5, %c0_6] : memref<512x128xbf16, #tpu.memory_space<vmem>>, vector<512x128xbf16>
    %cst_7 = arith.constant dense<0.000000e+00> : vector<2x128xf32>
    %11 = tpu.matmul %8, %10, %cst_7 {dimension_numbers = #tpu.dot_dimension_numbers<[1], [0], [0], [1], [0, 0, 1, 1], [], []>} : vector<2x512xbf16>, vector<512x128xbf16>, vector<2x128xf32> -> vector<2x128xf32>
    %12 = arith.addf %9, %11 : vector<2x128xf32>
    %c0_8 = arith.constant 0 : index
    %c0_9 = arith.constant 0 : index
    %13 = vector.load %arg7[%c0_8, %c0_9] : memref<2x128xf32, #tpu.memory_space<vmem>>, vector<2x128xf32>
    tpu.vector_store %arg7[%c0_8, %c0_9], %12 {strides = array<i32>} : memref<2x128xf32, #tpu.memory_space<vmem>>, vector<2x128xf32>,
    %c1_i32 = arith.constant 1 : i32
    %14 = arith.cmpi eq, %arg2, %c1_i32 : i32
    %15 = arith.extui %14 : i1 to i32
    %c0_i32_10 = arith.constant 0 : i32
    %16 = arith.cmpi ne, %15, %c0_i32_10 : i32
    scf.if %16 {
      %c0_11 = arith.constant 0 : index
      %c0_12 = arith.constant 0 : index
      %17 = vector.load %arg7[%c0_11, %c0_12] : memref<2x128xf32, #tpu.memory_space<vmem>>, vector<2x128xf32>
      %c0_13 = arith.constant 0 : index
      %c0_14 = arith.constant 0 : index
      %18 = vector.load %arg5[%c0_13, %c0_14] : memref<1x128xf32, #tpu.memory_space<vmem>>, vector<1x128xf32>
      %19 = vector.broadcast %18 : vector<1x128xf32> to vector<2x128xf32>
      %20 = arith.addf %17, %19 : vector<2x128xf32>
      %c0_15 = arith.constant 0 : index
      %c0_16 = arith.constant 0 : index
      %21 = vector.load %arg6[%c0_15, %c0_16] : memref<2x128xf32, #tpu.memory_space<vmem>>, vector<2x128xf32>
      tpu.vector_store %arg6[%c0_15, %c0_16], %20 {strides = array<i32>} : memref<2x128xf32, #tpu.memory_space<vmem>>, vector<2x128xf32>,
    } else {
    }
    return
  }
  func.func @transform_0(%arg0: i32, %arg1: i32, %arg2: i32) -> (i32, i32) {
    %c0_i32 = arith.constant 0 : i32
    return %arg0, %arg2 : i32, i32
  }
  func.func @transform_1(%arg0: i32, %arg1: i32, %arg2: i32) -> (i32, i32) {
    %c0_i32 = arith.constant 0 : i32
    return %arg2, %arg1 : i32, i32
  }
  func.func @transform_2(%arg0: i32, %arg1: i32, %arg2: i32) -> (i32, i32) {
    %c0_i32 = arith.constant 0 : i32
    %c0_i32_0 = arith.constant 0 : i32
    return %c0_i32, %arg1 : i32, i32
  }
  func.func @transform_3(%arg0: i32, %arg1: i32, %arg2: i32) -> (i32, i32) {
    %c0_i32 = arith.constant 0 : i32
    return %arg0, %arg1 : i32, i32
  }
}

module attributes {stable_mosaic.version = 11 : i64} {
  func.func @_bn_apply_kernel(%arg0: i32, %arg1: memref<8x64xf32, #tpu.memory_space<vmem>>, %arg2: memref<1x64xf32, #tpu.memory_space<vmem>>, %arg3: memref<1x64xf32, #tpu.memory_space<vmem>>, %arg4: memref<8x64xf32, #tpu.memory_space<vmem>>) attributes {dimension_semantics = [#tpu.dimension_semantics<parallel>], iteration_bounds = array<i64: 1>, scalar_prefetch = 0 : i64, scratch_operands = 0 : i64, tpu.core_type = #tpu.core_type<tc>, window_params = [{transform_indices = @transform_0, window_bounds = array<i64: 8, 64>}, {pipeline_mode = #tpu.pipeline_mode<synchronous>, transform_indices = @transform_1, window_bounds = array<i64: 1, 64>}, {pipeline_mode = #tpu.pipeline_mode<synchronous>, transform_indices = @transform_2, window_bounds = array<i64: 1, 64>}, {transform_indices = @transform_3, window_bounds = array<i64: 8, 64>}]} {
    %c0 = arith.constant 0 : index
    %c0_0 = arith.constant 0 : index
    %0 = vector.load %arg1[%c0, %c0_0] : memref<8x64xf32, #tpu.memory_space<vmem>>, vector<8x64xf32>
    %c0_1 = arith.constant 0 : index
    %c0_2 = arith.constant 0 : index
    %1 = vector.load %arg2[%c0_1, %c0_2] : memref<1x64xf32, #tpu.memory_space<vmem>>, vector<1x64xf32>
    %2 = vector.broadcast %1 : vector<1x64xf32> to vector<8x64xf32>
    %3 = arith.mulf %0, %2 : vector<8x64xf32>
    %c0_3 = arith.constant 0 : index
    %c0_4 = arith.constant 0 : index
    %4 = vector.load %arg3[%c0_3, %c0_4] : memref<1x64xf32, #tpu.memory_space<vmem>>, vector<1x64xf32>
    %5 = vector.broadcast %4 : vector<1x64xf32> to vector<8x64xf32>
    %6 = arith.addf %3, %5 : vector<8x64xf32>
    %c0_5 = arith.constant 0 : index
    %c0_6 = arith.constant 0 : index
    %7 = vector.load %arg4[%c0_5, %c0_6] : memref<8x64xf32, #tpu.memory_space<vmem>>, vector<8x64xf32>
    tpu.vector_store %arg4[%c0_5, %c0_6], %6 {strides = array<i32>} : memref<8x64xf32, #tpu.memory_space<vmem>>, vector<8x64xf32>,
    return
  }
  func.func @transform_0(%arg0: i32) -> (i32, i32) {
    %c0_i32 = arith.constant 0 : i32
    %c0_i32_0 = arith.constant 0 : i32
    return %arg0, %c0_i32 : i32, i32
  }
  func.func @transform_1(%arg0: i32) -> (i32, i32) {
    %c0_i32 = arith.constant 0 : i32
    %c0_i32_0 = arith.constant 0 : i32
    %c0_i32_1 = arith.constant 0 : i32
    return %c0_i32, %c0_i32_0 : i32, i32
  }
  func.func @transform_2(%arg0: i32) -> (i32, i32) {
    %c0_i32 = arith.constant 0 : i32
    %c0_i32_0 = arith.constant 0 : i32
    %c0_i32_1 = arith.constant 0 : i32
    return %c0_i32, %c0_i32_0 : i32, i32
  }
  func.func @transform_3(%arg0: i32) -> (i32, i32) {
    %c0_i32 = arith.constant 0 : i32
    %c0_i32_0 = arith.constant 0 : i32
    return %arg0, %c0_i32 : i32, i32
  }
}

module attributes {stable_mosaic.version = 11 : i64} {
  func.func @kernel(%arg0: i32, %arg1: i32, %arg2: i32, %arg3: memref<2x256xbf16, #tpu.memory_space<vmem>>, %arg4: memref<256x128xbf16, #tpu.memory_space<vmem>>, %arg5: memref<1x128xf32, #tpu.memory_space<vmem>>, %arg6: memref<2x128xf32, #tpu.memory_space<vmem>>, %arg7: memref<2x128xf32, #tpu.memory_space<vmem>>) attributes {dimension_semantics = [#tpu.dimension_semantics<parallel>, #tpu.dimension_semantics<parallel>, #tpu.dimension_semantics<arbitrary>], iteration_bounds = array<i64: 1, 1, 1>, scalar_prefetch = 0 : i64, scratch_operands = 1 : i64, tpu.core_type = #tpu.core_type<tc>, window_params = [{transform_indices = @transform_0, window_bounds = array<i64: 2, 256>}, {transform_indices = @transform_1, window_bounds = array<i64: 256, 128>}, {transform_indices = @transform_2, window_bounds = array<i64: 1, 128>}, {transform_indices = @transform_3, window_bounds = array<i64: 2, 128>}]} {
    %c0_i32 = arith.constant 0 : i32
    %0 = arith.cmpi eq, %arg2, %c0_i32 : i32
    %1 = arith.extui %0 : i1 to i32
    %c0_i32_0 = arith.constant 0 : i32
    %2 = arith.cmpi ne, %1, %c0_i32_0 : i32
    scf.if %2 {
      %cst_11 = arith.constant 0.000000e+00 : f32
      %14 = vector.broadcast %cst_11 : f32 to vector<2x128xf32>
      %c0_12 = arith.constant 0 : index
      %c0_13 = arith.constant 0 : index
      %15 = vector.load %arg7[%c0_12, %c0_13] : memref<2x128xf32, #tpu.memory_space<vmem>>, vector<2x128xf32>
      tpu.vector_store %arg7[%c0_12, %c0_13], %14 {strides = array<i32>} : memref<2x128xf32, #tpu.memory_space<vmem>>, vector<2x128xf32>,
    } else {
    }
    %c0 = arith.constant 0 : index
    %c0_1 = arith.constant 0 : index
    %3 = vector.load %arg3[%c0, %c0_1] : memref<2x256xbf16, #tpu.memory_space<vmem>>, vector<2x256xbf16>
    %cst = arith.constant 0.000000e+00 : bf16
    %4 = vector.broadcast %cst : bf16 to vector<2x256xbf16>
    %5 = arith.maximumf %3, %4 : vector<2x256xbf16>
    %c0_2 = arith.constant 0 : index
    %c0_3 = arith.constant 0 : index
    %6 = vector.load %arg7[%c0_2, %c0_3] : memref<2x128xf32, #tpu.memory_space<vmem>>, vector<2x128xf32>
    %c0_4 = arith.constant 0 : index
    %c0_5 = arith.constant 0 : index
    %7 = vector.load %arg4[%c0_4, %c0_5] : memref<256x128xbf16, #tpu.memory_space<vmem>>, vector<256x128xbf16>
    %cst_6 = arith.constant dense<0.000000e+00> : vector<2x128xf32>
    %8 = tpu.matmul %5, %7, %cst_6 {dimension_numbers = #tpu.dot_dimension_numbers<[1], [0], [0], [1], [0, 0, 1, 1], [], []>} : vector<2x256xbf16>, vector<256x128xbf16>, vector<2x128xf32> -> vector<2x128xf32>
    %9 = arith.addf %6, %8 : vector<2x128xf32>
    %c0_7 = arith.constant 0 : index
    %c0_8 = arith.constant 0 : index
    %10 = vector.load %arg7[%c0_7, %c0_8] : memref<2x128xf32, #tpu.memory_space<vmem>>, vector<2x128xf32>
    tpu.vector_store %arg7[%c0_7, %c0_8], %9 {strides = array<i32>} : memref<2x128xf32, #tpu.memory_space<vmem>>, vector<2x128xf32>,
    %c0_i32_9 = arith.constant 0 : i32
    %11 = arith.cmpi eq, %arg2, %c0_i32_9 : i32
    %12 = arith.extui %11 : i1 to i32
    %c0_i32_10 = arith.constant 0 : i32
    %13 = arith.cmpi ne, %12, %c0_i32_10 : i32
    scf.if %13 {
      %c0_11 = arith.constant 0 : index
      %c0_12 = arith.constant 0 : index
      %14 = vector.load %arg7[%c0_11, %c0_12] : memref<2x128xf32, #tpu.memory_space<vmem>>, vector<2x128xf32>
      %c0_13 = arith.constant 0 : index
      %c0_14 = arith.constant 0 : index
      %15 = vector.load %arg5[%c0_13, %c0_14] : memref<1x128xf32, #tpu.memory_space<vmem>>, vector<1x128xf32>
      %16 = vector.broadcast %15 : vector<1x128xf32> to vector<2x128xf32>
      %17 = arith.addf %14, %16 : vector<2x128xf32>
      %c0_15 = arith.constant 0 : index
      %c0_16 = arith.constant 0 : index
      %18 = vector.load %arg6[%c0_15, %c0_16] : memref<2x128xf32, #tpu.memory_space<vmem>>, vector<2x128xf32>
      tpu.vector_store %arg6[%c0_15, %c0_16], %17 {strides = array<i32>} : memref<2x128xf32, #tpu.memory_space<vmem>>, vector<2x128xf32>,
    } else {
    }
    return
  }
  func.func @transform_0(%arg0: i32, %arg1: i32, %arg2: i32) -> (i32, i32) {
    %c0_i32 = arith.constant 0 : i32
    return %arg0, %arg2 : i32, i32
  }
  func.func @transform_1(%arg0: i32, %arg1: i32, %arg2: i32) -> (i32, i32) {
    %c0_i32 = arith.constant 0 : i32
    return %arg2, %arg1 : i32, i32
  }
  func.func @transform_2(%arg0: i32, %arg1: i32, %arg2: i32) -> (i32, i32) {
    %c0_i32 = arith.constant 0 : i32
    %c0_i32_0 = arith.constant 0 : i32
    return %c0_i32, %arg1 : i32, i32
  }
  func.func @transform_3(%arg0: i32, %arg1: i32, %arg2: i32) -> (i32, i32) {
    %c0_i32 = arith.constant 0 : i32
    return %arg0, %arg1 : i32, i32
  }
}

module attributes {stable_mosaic.version = 11 : i64} {
  func.func @kernel(%arg0: i32, %arg1: i32, %arg2: i32, %arg3: memref<8x512xbf16, #tpu.memory_space<vmem>>, %arg4: memref<512x128xbf16, #tpu.memory_space<vmem>>, %arg5: memref<1x128xf32, #tpu.memory_space<vmem>>, %arg6: memref<8x128xf32, #tpu.memory_space<vmem>>, %arg7: memref<8x128xf32, #tpu.memory_space<vmem>>) attributes {dimension_semantics = [#tpu.dimension_semantics<parallel>, #tpu.dimension_semantics<parallel>, #tpu.dimension_semantics<arbitrary>], iteration_bounds = array<i64: 1, 1, 1>, scalar_prefetch = 0 : i64, scratch_operands = 1 : i64, tpu.core_type = #tpu.core_type<tc>, window_params = [{transform_indices = @transform_0, window_bounds = array<i64: 8, 512>}, {transform_indices = @transform_1, window_bounds = array<i64: 512, 128>}, {transform_indices = @transform_2, window_bounds = array<i64: 1, 128>}, {transform_indices = @transform_3, window_bounds = array<i64: 8, 128>}]} {
    %c0_i32 = arith.constant 0 : i32
    %0 = arith.cmpi eq, %arg2, %c0_i32 : i32
    %1 = arith.extui %0 : i1 to i32
    %c0_i32_0 = arith.constant 0 : i32
    %2 = arith.cmpi ne, %1, %c0_i32_0 : i32
    scf.if %2 {
      %cst_11 = arith.constant 0.000000e+00 : f32
      %14 = vector.broadcast %cst_11 : f32 to vector<8x128xf32>
      %c0_12 = arith.constant 0 : index
      %c0_13 = arith.constant 0 : index
      %15 = vector.load %arg7[%c0_12, %c0_13] : memref<8x128xf32, #tpu.memory_space<vmem>>, vector<8x128xf32>
      tpu.vector_store %arg7[%c0_12, %c0_13], %14 {strides = array<i32>} : memref<8x128xf32, #tpu.memory_space<vmem>>, vector<8x128xf32>,
    } else {
    }
    %c0 = arith.constant 0 : index
    %c0_1 = arith.constant 0 : index
    %3 = vector.load %arg3[%c0, %c0_1] : memref<8x512xbf16, #tpu.memory_space<vmem>>, vector<8x512xbf16>
    %cst = arith.constant 0.000000e+00 : bf16
    %4 = vector.broadcast %cst : bf16 to vector<8x512xbf16>
    %5 = arith.maximumf %3, %4 : vector<8x512xbf16>
    %c0_2 = arith.constant 0 : index
    %c0_3 = arith.constant 0 : index
    %6 = vector.load %arg7[%c0_2, %c0_3] : memref<8x128xf32, #tpu.memory_space<vmem>>, vector<8x128xf32>
    %c0_4 = arith.constant 0 : index
    %c0_5 = arith.constant 0 : index
    %7 = vector.load %arg4[%c0_4, %c0_5] : memref<512x128xbf16, #tpu.memory_space<vmem>>, vector<512x128xbf16>
    %cst_6 = arith.constant dense<0.000000e+00> : vector<8x128xf32>
    %8 = tpu.matmul %5, %7, %cst_6 {dimension_numbers = #tpu.dot_dimension_numbers<[1], [0], [0], [1], [0, 0, 1, 1], [], []>} : vector<8x512xbf16>, vector<512x128xbf16>, vector<8x128xf32> -> vector<8x128xf32>
    %9 = arith.addf %6, %8 : vector<8x128xf32>
    %c0_7 = arith.constant 0 : index
    %c0_8 = arith.constant 0 : index
    %10 = vector.load %arg7[%c0_7, %c0_8] : memref<8x128xf32, #tpu.memory_space<vmem>>, vector<8x128xf32>
    tpu.vector_store %arg7[%c0_7, %c0_8], %9 {strides = array<i32>} : memref<8x128xf32, #tpu.memory_space<vmem>>, vector<8x128xf32>,
    %c0_i32_9 = arith.constant 0 : i32
    %11 = arith.cmpi eq, %arg2, %c0_i32_9 : i32
    %12 = arith.extui %11 : i1 to i32
    %c0_i32_10 = arith.constant 0 : i32
    %13 = arith.cmpi ne, %12, %c0_i32_10 : i32
    scf.if %13 {
      %c0_11 = arith.constant 0 : index
      %c0_12 = arith.constant 0 : index
      %14 = vector.load %arg7[%c0_11, %c0_12] : memref<8x128xf32, #tpu.memory_space<vmem>>, vector<8x128xf32>
      %c0_13 = arith.constant 0 : index
      %c0_14 = arith.constant 0 : index
      %15 = vector.load %arg5[%c0_13, %c0_14] : memref<1x128xf32, #tpu.memory_space<vmem>>, vector<1x128xf32>
      %16 = vector.broadcast %15 : vector<1x128xf32> to vector<8x128xf32>
      %17 = arith.addf %14, %16 : vector<8x128xf32>
      %c0_15 = arith.constant 0 : index
      %c0_16 = arith.constant 0 : index
      %18 = vector.load %arg6[%c0_15, %c0_16] : memref<8x128xf32, #tpu.memory_space<vmem>>, vector<8x128xf32>
      tpu.vector_store %arg6[%c0_15, %c0_16], %17 {strides = array<i32>} : memref<8x128xf32, #tpu.memory_space<vmem>>, vector<8x128xf32>,
    } else {
    }
    return
  }
  func.func @transform_0(%arg0: i32, %arg1: i32, %arg2: i32) -> (i32, i32) {
    %c0_i32 = arith.constant 0 : i32
    return %arg0, %arg2 : i32, i32
  }
  func.func @transform_1(%arg0: i32, %arg1: i32, %arg2: i32) -> (i32, i32) {
    %c0_i32 = arith.constant 0 : i32
    return %arg2, %arg1 : i32, i32
  }
  func.func @transform_2(%arg0: i32, %arg1: i32, %arg2: i32) -> (i32, i32) {
    %c0_i32 = arith.constant 0 : i32
    %c0_i32_0 = arith.constant 0 : i32
    return %c0_i32, %arg1 : i32, i32
  }
  func.func @transform_3(%arg0: i32, %arg1: i32, %arg2: i32) -> (i32, i32) {
    %c0_i32 = arith.constant 0 : i32
    return %arg0, %arg1 : i32, i32
  }
}

module attributes {stable_mosaic.version = 11 : i64} {
  func.func @kernel(%arg0: i32, %arg1: i32, %arg2: i32, %arg3: memref<32x256xbf16, #tpu.memory_space<vmem>>, %arg4: memref<256x128xbf16, #tpu.memory_space<vmem>>, %arg5: memref<1x128xf32, #tpu.memory_space<vmem>>, %arg6: memref<32x128xf32, #tpu.memory_space<vmem>>, %arg7: memref<32x128xf32, #tpu.memory_space<vmem>>) attributes {dimension_semantics = [#tpu.dimension_semantics<parallel>, #tpu.dimension_semantics<parallel>, #tpu.dimension_semantics<arbitrary>], iteration_bounds = array<i64: 1, 1, 1>, scalar_prefetch = 0 : i64, scratch_operands = 1 : i64, tpu.core_type = #tpu.core_type<tc>, window_params = [{transform_indices = @transform_0, window_bounds = array<i64: 32, 256>}, {transform_indices = @transform_1, window_bounds = array<i64: 256, 128>}, {transform_indices = @transform_2, window_bounds = array<i64: 1, 128>}, {transform_indices = @transform_3, window_bounds = array<i64: 32, 128>}]} {
    %c0_i32 = arith.constant 0 : i32
    %0 = arith.cmpi eq, %arg2, %c0_i32 : i32
    %1 = arith.extui %0 : i1 to i32
    %c0_i32_0 = arith.constant 0 : i32
    %2 = arith.cmpi ne, %1, %c0_i32_0 : i32
    scf.if %2 {
      %cst_11 = arith.constant 0.000000e+00 : f32
      %14 = vector.broadcast %cst_11 : f32 to vector<32x128xf32>
      %c0_12 = arith.constant 0 : index
      %c0_13 = arith.constant 0 : index
      %15 = vector.load %arg7[%c0_12, %c0_13] : memref<32x128xf32, #tpu.memory_space<vmem>>, vector<32x128xf32>
      tpu.vector_store %arg7[%c0_12, %c0_13], %14 {strides = array<i32>} : memref<32x128xf32, #tpu.memory_space<vmem>>, vector<32x128xf32>,
    } else {
    }
    %c0 = arith.constant 0 : index
    %c0_1 = arith.constant 0 : index
    %3 = vector.load %arg3[%c0, %c0_1] : memref<32x256xbf16, #tpu.memory_space<vmem>>, vector<32x256xbf16>
    %cst = arith.constant 0.000000e+00 : bf16
    %4 = vector.broadcast %cst : bf16 to vector<32x256xbf16>
    %5 = arith.maximumf %3, %4 : vector<32x256xbf16>
    %c0_2 = arith.constant 0 : index
    %c0_3 = arith.constant 0 : index
    %6 = vector.load %arg7[%c0_2, %c0_3] : memref<32x128xf32, #tpu.memory_space<vmem>>, vector<32x128xf32>
    %c0_4 = arith.constant 0 : index
    %c0_5 = arith.constant 0 : index
    %7 = vector.load %arg4[%c0_4, %c0_5] : memref<256x128xbf16, #tpu.memory_space<vmem>>, vector<256x128xbf16>
    %cst_6 = arith.constant dense<0.000000e+00> : vector<32x128xf32>
    %8 = tpu.matmul %5, %7, %cst_6 {dimension_numbers = #tpu.dot_dimension_numbers<[1], [0], [0], [1], [0, 0, 1, 1], [], []>} : vector<32x256xbf16>, vector<256x128xbf16>, vector<32x128xf32> -> vector<32x128xf32>
    %9 = arith.addf %6, %8 : vector<32x128xf32>
    %c0_7 = arith.constant 0 : index
    %c0_8 = arith.constant 0 : index
    %10 = vector.load %arg7[%c0_7, %c0_8] : memref<32x128xf32, #tpu.memory_space<vmem>>, vector<32x128xf32>
    tpu.vector_store %arg7[%c0_7, %c0_8], %9 {strides = array<i32>} : memref<32x128xf32, #tpu.memory_space<vmem>>, vector<32x128xf32>,
    %c0_i32_9 = arith.constant 0 : i32
    %11 = arith.cmpi eq, %arg2, %c0_i32_9 : i32
    %12 = arith.extui %11 : i1 to i32
    %c0_i32_10 = arith.constant 0 : i32
    %13 = arith.cmpi ne, %12, %c0_i32_10 : i32
    scf.if %13 {
      %c0_11 = arith.constant 0 : index
      %c0_12 = arith.constant 0 : index
      %14 = vector.load %arg7[%c0_11, %c0_12] : memref<32x128xf32, #tpu.memory_space<vmem>>, vector<32x128xf32>
      %c0_13 = arith.constant 0 : index
      %c0_14 = arith.constant 0 : index
      %15 = vector.load %arg5[%c0_13, %c0_14] : memref<1x128xf32, #tpu.memory_space<vmem>>, vector<1x128xf32>
      %16 = vector.broadcast %15 : vector<1x128xf32> to vector<32x128xf32>
      %17 = arith.addf %14, %16 : vector<32x128xf32>
      %c0_15 = arith.constant 0 : index
      %c0_16 = arith.constant 0 : index
      %18 = vector.load %arg6[%c0_15, %c0_16] : memref<32x128xf32, #tpu.memory_space<vmem>>, vector<32x128xf32>
      tpu.vector_store %arg6[%c0_15, %c0_16], %17 {strides = array<i32>} : memref<32x128xf32, #tpu.memory_space<vmem>>, vector<32x128xf32>,
    } else {
    }
    return
  }
  func.func @transform_0(%arg0: i32, %arg1: i32, %arg2: i32) -> (i32, i32) {
    %c0_i32 = arith.constant 0 : i32
    return %arg0, %arg2 : i32, i32
  }
  func.func @transform_1(%arg0: i32, %arg1: i32, %arg2: i32) -> (i32, i32) {
    %c0_i32 = arith.constant 0 : i32
    return %arg2, %arg1 : i32, i32
  }
  func.func @transform_2(%arg0: i32, %arg1: i32, %arg2: i32) -> (i32, i32) {
    %c0_i32 = arith.constant 0 : i32
    %c0_i32_0 = arith.constant 0 : i32
    return %c0_i32, %arg1 : i32, i32
  }
  func.func @transform_3(%arg0: i32, %arg1: i32, %arg2: i32) -> (i32, i32) {
    %c0_i32 = arith.constant 0 : i32
    return %arg0, %arg1 : i32, i32
  }
}

module attributes {stable_mosaic.version = 11 : i64} {
  func.func @kernel(%arg0: i32, %arg1: i32, %arg2: i32, %arg3: memref<128x128xbf16, #tpu.memory_space<vmem>>, %arg4: memref<128x128xbf16, #tpu.memory_space<vmem>>, %arg5: memref<1x128xf32, #tpu.memory_space<vmem>>, %arg6: memref<128x128xf32, #tpu.memory_space<vmem>>, %arg7: memref<128x128xf32, #tpu.memory_space<vmem>>) attributes {dimension_semantics = [#tpu.dimension_semantics<parallel>, #tpu.dimension_semantics<parallel>, #tpu.dimension_semantics<arbitrary>], iteration_bounds = array<i64: 1, 1, 1>, scalar_prefetch = 0 : i64, scratch_operands = 1 : i64, tpu.core_type = #tpu.core_type<tc>, window_params = [{transform_indices = @transform_0, window_bounds = array<i64: 128, 128>}, {transform_indices = @transform_1, window_bounds = array<i64: 128, 128>}, {transform_indices = @transform_2, window_bounds = array<i64: 1, 128>}, {transform_indices = @transform_3, window_bounds = array<i64: 128, 128>}]} {
    %c0_i32 = arith.constant 0 : i32
    %0 = arith.cmpi eq, %arg2, %c0_i32 : i32
    %1 = arith.extui %0 : i1 to i32
    %c0_i32_0 = arith.constant 0 : i32
    %2 = arith.cmpi ne, %1, %c0_i32_0 : i32
    scf.if %2 {
      %cst_11 = arith.constant 0.000000e+00 : f32
      %14 = vector.broadcast %cst_11 : f32 to vector<128x128xf32>
      %c0_12 = arith.constant 0 : index
      %c0_13 = arith.constant 0 : index
      %15 = vector.load %arg7[%c0_12, %c0_13] : memref<128x128xf32, #tpu.memory_space<vmem>>, vector<128x128xf32>
      tpu.vector_store %arg7[%c0_12, %c0_13], %14 {strides = array<i32>} : memref<128x128xf32, #tpu.memory_space<vmem>>, vector<128x128xf32>,
    } else {
    }
    %c0 = arith.constant 0 : index
    %c0_1 = arith.constant 0 : index
    %3 = vector.load %arg3[%c0, %c0_1] : memref<128x128xbf16, #tpu.memory_space<vmem>>, vector<128x128xbf16>
    %cst = arith.constant 0.000000e+00 : bf16
    %4 = vector.broadcast %cst : bf16 to vector<128x128xbf16>
    %5 = arith.maximumf %3, %4 : vector<128x128xbf16>
    %c0_2 = arith.constant 0 : index
    %c0_3 = arith.constant 0 : index
    %6 = vector.load %arg7[%c0_2, %c0_3] : memref<128x128xf32, #tpu.memory_space<vmem>>, vector<128x128xf32>
    %c0_4 = arith.constant 0 : index
    %c0_5 = arith.constant 0 : index
    %7 = vector.load %arg4[%c0_4, %c0_5] : memref<128x128xbf16, #tpu.memory_space<vmem>>, vector<128x128xbf16>
    %cst_6 = arith.constant dense<0.000000e+00> : vector<128x128xf32>
    %8 = tpu.matmul %5, %7, %cst_6 {dimension_numbers = #tpu.dot_dimension_numbers<[1], [0], [0], [1], [0, 0, 1, 1], [], []>} : vector<128x128xbf16>, vector<128x128xbf16>, vector<128x128xf32> -> vector<128x128xf32>
    %9 = arith.addf %6, %8 : vector<128x128xf32>
    %c0_7 = arith.constant 0 : index
    %c0_8 = arith.constant 0 : index
    %10 = vector.load %arg7[%c0_7, %c0_8] : memref<128x128xf32, #tpu.memory_space<vmem>>, vector<128x128xf32>
    tpu.vector_store %arg7[%c0_7, %c0_8], %9 {strides = array<i32>} : memref<128x128xf32, #tpu.memory_space<vmem>>, vector<128x128xf32>,
    %c0_i32_9 = arith.constant 0 : i32
    %11 = arith.cmpi eq, %arg2, %c0_i32_9 : i32
    %12 = arith.extui %11 : i1 to i32
    %c0_i32_10 = arith.constant 0 : i32
    %13 = arith.cmpi ne, %12, %c0_i32_10 : i32
    scf.if %13 {
      %c0_11 = arith.constant 0 : index
      %c0_12 = arith.constant 0 : index
      %14 = vector.load %arg7[%c0_11, %c0_12] : memref<128x128xf32, #tpu.memory_space<vmem>>, vector<128x128xf32>
      %c0_13 = arith.constant 0 : index
      %c0_14 = arith.constant 0 : index
      %15 = vector.load %arg5[%c0_13, %c0_14] : memref<1x128xf32, #tpu.memory_space<vmem>>, vector<1x128xf32>
      %16 = vector.broadcast %15 : vector<1x128xf32> to vector<128x128xf32>
      %17 = arith.addf %14, %16 : vector<128x128xf32>
      %c0_15 = arith.constant 0 : index
      %c0_16 = arith.constant 0 : index
      %18 = vector.load %arg6[%c0_15, %c0_16] : memref<128x128xf32, #tpu.memory_space<vmem>>, vector<128x128xf32>
      tpu.vector_store %arg6[%c0_15, %c0_16], %17 {strides = array<i32>} : memref<128x128xf32, #tpu.memory_space<vmem>>, vector<128x128xf32>,
    } else {
    }
    return
  }
  func.func @transform_0(%arg0: i32, %arg1: i32, %arg2: i32) -> (i32, i32) {
    %c0_i32 = arith.constant 0 : i32
    return %arg0, %arg2 : i32, i32
  }
  func.func @transform_1(%arg0: i32, %arg1: i32, %arg2: i32) -> (i32, i32) {
    %c0_i32 = arith.constant 0 : i32
    return %arg2, %arg1 : i32, i32
  }
  func.func @transform_2(%arg0: i32, %arg1: i32, %arg2: i32) -> (i32, i32) {
    %c0_i32 = arith.constant 0 : i32
    %c0_i32_0 = arith.constant 0 : i32
    return %c0_i32, %arg1 : i32, i32
  }
  func.func @transform_3(%arg0: i32, %arg1: i32, %arg2: i32) -> (i32, i32) {
    %c0_i32 = arith.constant 0 : i32
    return %arg0, %arg1 : i32, i32
  }
}

module attributes {stable_mosaic.version = 11 : i64} {
  func.func @_bn_stats_kernel(%arg0: i32, %arg1: memref<512x8xf32, #tpu.memory_space<vmem>>, %arg2: memref<1x8xf32, #tpu.memory_space<vmem>>, %arg3: memref<1x8xf32, #tpu.memory_space<vmem>>) attributes {dimension_semantics = [#tpu.dimension_semantics<arbitrary>], iteration_bounds = array<i64: 1>, scalar_prefetch = 0 : i64, scratch_operands = 0 : i64, tpu.core_type = #tpu.core_type<tc>, window_params = [{transform_indices = @transform_0, window_bounds = array<i64: 512, 8>}, {pipeline_mode = #tpu.pipeline_mode<synchronous>, transform_indices = @transform_1, window_bounds = array<i64: 1, 8>}, {pipeline_mode = #tpu.pipeline_mode<synchronous>, transform_indices = @transform_2, window_bounds = array<i64: 1, 8>}]} {
    %c0_i32 = arith.constant 0 : i32
    %0 = arith.cmpi eq, %arg0, %c0_i32 : i32
    %1 = arith.extui %0 : i1 to i32
    %c0_i32_0 = arith.constant 0 : i32
    %2 = arith.cmpi ne, %1, %c0_i32_0 : i32
    scf.if %2 {
      %cst_11 = arith.constant 0.000000e+00 : f32
      %15 = vector.broadcast %cst_11 : f32 to vector<1x8xf32>
      %c0_12 = arith.constant 0 : index
      %c0_13 = arith.constant 0 : index
      %16 = vector.load %arg2[%c0_12, %c0_13] : memref<1x8xf32, #tpu.memory_space<vmem>>, vector<1x8xf32>
      tpu.vector_store %arg2[%c0_12, %c0_13], %15 {strides = array<i32>} : memref<1x8xf32, #tpu.memory_space<vmem>>, vector<1x8xf32>,
      %cst_14 = arith.constant 0.000000e+00 : f32
      %17 = vector.broadcast %cst_14 : f32 to vector<1x8xf32>
      %c0_15 = arith.constant 0 : index
      %c0_16 = arith.constant 0 : index
      %18 = vector.load %arg3[%c0_15, %c0_16] : memref<1x8xf32, #tpu.memory_space<vmem>>, vector<1x8xf32>
      tpu.vector_store %arg3[%c0_15, %c0_16], %17 {strides = array<i32>} : memref<1x8xf32, #tpu.memory_space<vmem>>, vector<1x8xf32>,
    } else {
    }
    %c0 = arith.constant 0 : index
    %c0_1 = arith.constant 0 : index
    %3 = vector.load %arg1[%c0, %c0_1] : memref<512x8xf32, #tpu.memory_space<vmem>>, vector<512x8xf32>
    %c0_2 = arith.constant 0 : index
    %c0_3 = arith.constant 0 : index
    %4 = vector.load %arg2[%c0_2, %c0_3] : memref<1x8xf32, #tpu.memory_space<vmem>>, vector<1x8xf32>
    %cst = arith.constant dense<0.000000e+00> : vector<8xf32>
    %5 = vector.multi_reduction <add>, %3, %cst [0] : vector<512x8xf32> to vector<8xf32>
    %6 = vector.shape_cast %5 : vector<8xf32> to vector<1x8xf32>
    %7 = arith.addf %4, %6 : vector<1x8xf32>
    %c0_4 = arith.constant 0 : index
    %c0_5 = arith.constant 0 : index
    %8 = vector.load %arg2[%c0_4, %c0_5] : memref<1x8xf32, #tpu.memory_space<vmem>>, vector<1x8xf32>
    tpu.vector_store %arg2[%c0_4, %c0_5], %7 {strides = array<i32>} : memref<1x8xf32, #tpu.memory_space<vmem>>, vector<1x8xf32>,
    %c0_6 = arith.constant 0 : index
    %c0_7 = arith.constant 0 : index
    %9 = vector.load %arg3[%c0_6, %c0_7] : memref<1x8xf32, #tpu.memory_space<vmem>>, vector<1x8xf32>
    %10 = arith.mulf %3, %3 : vector<512x8xf32>
    %cst_8 = arith.constant dense<0.000000e+00> : vector<8xf32>
    %11 = vector.multi_reduction <add>, %10, %cst_8 [0] : vector<512x8xf32> to vector<8xf32>
    %12 = vector.shape_cast %11 : vector<8xf32> to vector<1x8xf32>
    %13 = arith.addf %9, %12 : vector<1x8xf32>
    %c0_9 = arith.constant 0 : index
    %c0_10 = arith.constant 0 : index
    %14 = vector.load %arg3[%c0_9, %c0_10] : memref<1x8xf32, #tpu.memory_space<vmem>>, vector<1x8xf32>
    tpu.vector_store %arg3[%c0_9, %c0_10], %13 {strides = array<i32>} : memref<1x8xf32, #tpu.memory_space<vmem>>, vector<1x8xf32>,
    return
  }
  func.func @transform_0(%arg0: i32) -> (i32, i32) {
    %c0_i32 = arith.constant 0 : i32
    %c0_i32_0 = arith.constant 0 : i32
    return %arg0, %c0_i32 : i32, i32
  }
  func.func @transform_1(%arg0: i32) -> (i32, i32) {
    %c0_i32 = arith.constant 0 : i32
    %c0_i32_0 = arith.constant 0 : i32
    %c0_i32_1 = arith.constant 0 : i32
    return %c0_i32, %c0_i32_0 : i32, i32
  }
  func.func @transform_2(%arg0: i32) -> (i32, i32) {
    %c0_i32 = arith.constant 0 : i32
    %c0_i32_0 = arith.constant 0 : i32
    %c0_i32_1 = arith.constant 0 : i32
    return %c0_i32, %c0_i32_0 : i32, i32
  }
}

module attributes {stable_mosaic.version = 11 : i64} {
  func.func @_bn_apply_kernel(%arg0: i32, %arg1: memref<512x8xf32, #tpu.memory_space<vmem>>, %arg2: memref<1x8xf32, #tpu.memory_space<vmem>>, %arg3: memref<1x8xf32, #tpu.memory_space<vmem>>, %arg4: memref<512x8xf32, #tpu.memory_space<vmem>>) attributes {dimension_semantics = [#tpu.dimension_semantics<parallel>], iteration_bounds = array<i64: 1>, scalar_prefetch = 0 : i64, scratch_operands = 0 : i64, tpu.core_type = #tpu.core_type<tc>, window_params = [{transform_indices = @transform_0, window_bounds = array<i64: 512, 8>}, {pipeline_mode = #tpu.pipeline_mode<synchronous>, transform_indices = @transform_1, window_bounds = array<i64: 1, 8>}, {pipeline_mode = #tpu.pipeline_mode<synchronous>, transform_indices = @transform_2, window_bounds = array<i64: 1, 8>}, {transform_indices = @transform_3, window_bounds = array<i64: 512, 8>}]} {
    %c0 = arith.constant 0 : index
    %c0_0 = arith.constant 0 : index
    %0 = vector.load %arg1[%c0, %c0_0] : memref<512x8xf32, #tpu.memory_space<vmem>>, vector<512x8xf32>
    %c0_1 = arith.constant 0 : index
    %c0_2 = arith.constant 0 : index
    %1 = vector.load %arg2[%c0_1, %c0_2] : memref<1x8xf32, #tpu.memory_space<vmem>>, vector<1x8xf32>
    %2 = vector.broadcast %1 : vector<1x8xf32> to vector<512x8xf32>
    %3 = arith.mulf %0, %2 : vector<512x8xf32>
    %c0_3 = arith.constant 0 : index
    %c0_4 = arith.constant 0 : index
    %4 = vector.load %arg3[%c0_3, %c0_4] : memref<1x8xf32, #tpu.memory_space<vmem>>, vector<1x8xf32>
    %5 = vector.broadcast %4 : vector<1x8xf32> to vector<512x8xf32>
    %6 = arith.addf %3, %5 : vector<512x8xf32>
    %c0_5 = arith.constant 0 : index
    %c0_6 = arith.constant 0 : index
    %7 = vector.load %arg4[%c0_5, %c0_6] : memref<512x8xf32, #tpu.memory_space<vmem>>, vector<512x8xf32>
    tpu.vector_store %arg4[%c0_5, %c0_6], %6 {strides = array<i32>} : memref<512x8xf32, #tpu.memory_space<vmem>>, vector<512x8xf32>,
    return
  }
  func.func @transform_0(%arg0: i32) -> (i32, i32) {
    %c0_i32 = arith.constant 0 : i32
    %c0_i32_0 = arith.constant 0 : i32
    return %arg0, %c0_i32 : i32, i32
  }
  func.func @transform_1(%arg0: i32) -> (i32, i32) {
    %c0_i32 = arith.constant 0 : i32
    %c0_i32_0 = arith.constant 0 : i32
    %c0_i32_1 = arith.constant 0 : i32
    return %c0_i32, %c0_i32_0 : i32, i32
  }
  func.func @transform_2(%arg0: i32) -> (i32, i32) {
    %c0_i32 = arith.constant 0 : i32
    %c0_i32_0 = arith.constant 0 : i32
    %c0_i32_1 = arith.constant 0 : i32
    return %c0_i32, %c0_i32_0 : i32, i32
  }
  func.func @transform_3(%arg0: i32) -> (i32, i32) {
    %c0_i32 = arith.constant 0 : i32
    %c0_i32_0 = arith.constant 0 : i32
    return %arg0, %c0_i32 : i32, i32
  }
}

module attributes {stable_mosaic.version = 11 : i64} {
  func.func @kernel(%arg0: i32, %arg1: i32, %arg2: i32, %arg3: memref<512x64xbf16, #tpu.memory_space<vmem>>, %arg4: memref<64x128xbf16, #tpu.memory_space<vmem>>, %arg5: memref<1x128xf32, #tpu.memory_space<vmem>>, %arg6: memref<512x128xf32, #tpu.memory_space<vmem>>, %arg7: memref<512x128xf32, #tpu.memory_space<vmem>>) attributes {dimension_semantics = [#tpu.dimension_semantics<parallel>, #tpu.dimension_semantics<parallel>, #tpu.dimension_semantics<arbitrary>], iteration_bounds = array<i64: 1, 1, 1>, scalar_prefetch = 0 : i64, scratch_operands = 1 : i64, tpu.core_type = #tpu.core_type<tc>, window_params = [{transform_indices = @transform_0, window_bounds = array<i64: 512, 64>}, {transform_indices = @transform_1, window_bounds = array<i64: 64, 128>}, {transform_indices = @transform_2, window_bounds = array<i64: 1, 128>}, {transform_indices = @transform_3, window_bounds = array<i64: 512, 128>}]} {
    %c0_i32 = arith.constant 0 : i32
    %0 = arith.cmpi eq, %arg2, %c0_i32 : i32
    %1 = arith.extui %0 : i1 to i32
    %c0_i32_0 = arith.constant 0 : i32
    %2 = arith.cmpi ne, %1, %c0_i32_0 : i32
    scf.if %2 {
      %cst_11 = arith.constant 0.000000e+00 : f32
      %14 = vector.broadcast %cst_11 : f32 to vector<512x128xf32>
      %c0_12 = arith.constant 0 : index
      %c0_13 = arith.constant 0 : index
      %15 = vector.load %arg7[%c0_12, %c0_13] : memref<512x128xf32, #tpu.memory_space<vmem>>, vector<512x128xf32>
      tpu.vector_store %arg7[%c0_12, %c0_13], %14 {strides = array<i32>} : memref<512x128xf32, #tpu.memory_space<vmem>>, vector<512x128xf32>,
    } else {
    }
    %c0 = arith.constant 0 : index
    %c0_1 = arith.constant 0 : index
    %3 = vector.load %arg3[%c0, %c0_1] : memref<512x64xbf16, #tpu.memory_space<vmem>>, vector<512x64xbf16>
    %cst = arith.constant 0.000000e+00 : bf16
    %4 = vector.broadcast %cst : bf16 to vector<512x64xbf16>
    %5 = arith.maximumf %3, %4 : vector<512x64xbf16>
    %c0_2 = arith.constant 0 : index
    %c0_3 = arith.constant 0 : index
    %6 = vector.load %arg7[%c0_2, %c0_3] : memref<512x128xf32, #tpu.memory_space<vmem>>, vector<512x128xf32>
    %c0_4 = arith.constant 0 : index
    %c0_5 = arith.constant 0 : index
    %7 = vector.load %arg4[%c0_4, %c0_5] : memref<64x128xbf16, #tpu.memory_space<vmem>>, vector<64x128xbf16>
    %cst_6 = arith.constant dense<0.000000e+00> : vector<512x128xf32>
    %8 = tpu.matmul %5, %7, %cst_6 {dimension_numbers = #tpu.dot_dimension_numbers<[1], [0], [0], [1], [0, 0, 1, 1], [], []>} : vector<512x64xbf16>, vector<64x128xbf16>, vector<512x128xf32> -> vector<512x128xf32>
    %9 = arith.addf %6, %8 : vector<512x128xf32>
    %c0_7 = arith.constant 0 : index
    %c0_8 = arith.constant 0 : index
    %10 = vector.load %arg7[%c0_7, %c0_8] : memref<512x128xf32, #tpu.memory_space<vmem>>, vector<512x128xf32>
    tpu.vector_store %arg7[%c0_7, %c0_8], %9 {strides = array<i32>} : memref<512x128xf32, #tpu.memory_space<vmem>>, vector<512x128xf32>,
    %c0_i32_9 = arith.constant 0 : i32
    %11 = arith.cmpi eq, %arg2, %c0_i32_9 : i32
    %12 = arith.extui %11 : i1 to i32
    %c0_i32_10 = arith.constant 0 : i32
    %13 = arith.cmpi ne, %12, %c0_i32_10 : i32
    scf.if %13 {
      %c0_11 = arith.constant 0 : index
      %c0_12 = arith.constant 0 : index
      %14 = vector.load %arg7[%c0_11, %c0_12] : memref<512x128xf32, #tpu.memory_space<vmem>>, vector<512x128xf32>
      %c0_13 = arith.constant 0 : index
      %c0_14 = arith.constant 0 : index
      %15 = vector.load %arg5[%c0_13, %c0_14] : memref<1x128xf32, #tpu.memory_space<vmem>>, vector<1x128xf32>
      %16 = vector.broadcast %15 : vector<1x128xf32> to vector<512x128xf32>
      %17 = arith.addf %14, %16 : vector<512x128xf32>
      %18 = math.tanh %17 : vector<512x128xf32>
      %c0_15 = arith.constant 0 : index
      %c0_16 = arith.constant 0 : index
      %19 = vector.load %arg6[%c0_15, %c0_16] : memref<512x128xf32, #tpu.memory_space<vmem>>, vector<512x128xf32>
      tpu.vector_store %arg6[%c0_15, %c0_16], %18 {strides = array<i32>} : memref<512x128xf32, #tpu.memory_space<vmem>>, vector<512x128xf32>,
    } else {
    }
    return
  }
  func.func @transform_0(%arg0: i32, %arg1: i32, %arg2: i32) -> (i32, i32) {
    %c0_i32 = arith.constant 0 : i32
    return %arg0, %arg2 : i32, i32
  }
  func.func @transform_1(%arg0: i32, %arg1: i32, %arg2: i32) -> (i32, i32) {
    %c0_i32 = arith.constant 0 : i32
    return %arg2, %arg1 : i32, i32
  }
  func.func @transform_2(%arg0: i32, %arg1: i32, %arg2: i32) -> (i32, i32) {
    %c0_i32 = arith.constant 0 : i32
    %c0_i32_0 = arith.constant 0 : i32
    return %c0_i32, %arg1 : i32, i32
  }
  func.func @transform_3(%arg0: i32, %arg1: i32, %arg2: i32) -> (i32, i32) {
    %c0_i32 = arith.constant 0 : i32
    return %arg0, %arg1 : i32, i32
  }
}

</mosaic_0001>

<bundles_post_ra>
// kernel: _lambda_.40
= control target key start
LH: loop header
LB: loop body
LE: loop exit
PB: predicated region body
PF: predicated region fallthrough
CT: control target
= control target key end

     0   :  { %s655_s1 = inlined_call_operand.vmem [shape: bf16[128,128], index: 1, kind: input, shape index: {}]   ;;  %s656_s0 = inlined_call_operand.vmem [shape: bf16[128,128], index: 0, kind: input, shape index: {}]   ;;  %s657_s2 = inlined_call_operand.vmem [shape: f32[1,128], index: 2, kind: input, shape index: {}]   ;;  %s658_s3 = inlined_call_operand.vmem [shape: f32[128,128], index: 3, kind: output, shape index: {}]  }
   0x1   :  { %v500_v0 = vld [vmem:[%s655_s1] sm:$0xff]   ;;  %v501_v1 = vld [vmem:[%s655_s1 + $0x8] sm:$0xff]   ;;  %v502_v2 = vld [vmem:[%s655_s1 + $0x10] sm:$0xff]  }
   0x2   :  { %452 = vmatprep.subr.bf16.mxu0 %v500_v0  ;;  %484 = vmatprep.subr.bf16.mxu1 %v500_v0  ;;  %v503_v3 = vld [vmem:[%s655_s1 + $0x18] sm:$0xff]   ;;  %v36_v4 = vld [vmem:[%s656_s0] sm:$0xf]  ;;  %v37_v5 = vld [vmem:[%s656_s0 + $0x4] sm:$0xf] }
   0x3   :  { %453 = vmatpush3.bf16.msra.mxu0 %v500_v0  ;;  %492 = vmatpush3.bf16.msra.mxu1 %v500_v0  ;;  %v44_v6 = vld [vmem:[%s656_s0 + $0x20] sm:$0xf]  ;;  %vm52_vm0 = vcmp.ge.bf16.partialorder %v36_v4, 0  ;;  %vm53_vm1 = vcmp.ge.bf16.partialorder %v37_v5, 0  ;;  %v68_v7 = vmul.bf16 1045249613, %v36_v4 }
   0x4   :  { %454 = vmatprep.subr.bf16.mxu0 %v501_v1  ;;  %485 = vmatprep.subr.bf16.mxu1 %v501_v1  ;;  %v69_v8 = vmul.bf16 1045249613, %v37_v5  ;;  %v45_v9 = vld [vmem:[%s656_s0 + $0x24] sm:$0xf]  ;;  %vm60_vm2 = vcmp.ge.bf16.partialorder %v44_v6, 0  ;;  %v505_v19 = vld [vmem:[%s655_s1 + $0x28] sm:$0xff]  }
   0x5   :  { %v76_v10 = vmul.bf16 1045249613, %v44_v6  ;;  %v84_v11 = vsel %vm52_vm0, %v36_v4, %v68_v7  ;;  %vm61_vm3 = vcmp.ge.bf16.partialorder %v45_v9, 0  ;;  %v77_v13 = vmul.bf16 1045249613, %v45_v9  ;;  %v504_v14 = vld [vmem:[%s655_s1 + $0x20] sm:$0xff]  }
   0x6   :  { %v85_v12 = vsel %vm53_vm1, %v37_v5, %v69_v8  ;;  %v38_v20 = vld [vmem:[%s656_s0 + $0x8] sm:$0xf]  ;;  %v39_v21 = vld [vmem:[%s656_s0 + $0xc] sm:$0xf]  ;;  %v506_v22 = vld [vmem:[%s655_s1 + $0x30] sm:$0xff]  }
   0x7   :  { %455 = vmatpush3.bf16.msra.mxu0 %v501_v1  ;;  %493 = vmatpush3.bf16.msra.mxu1 %v501_v1  ;;  %v419_v15 = vcombine.low %v84_v11, %v85_v12  ;;  %v92_v16 = vsel %vm60_vm2, %v44_v6, %v76_v10  ;;  %v93_v17 = vsel %vm61_vm3, %v45_v9, %v77_v13  ;;  %v46_v23 = vld [vmem:[%s656_s0 + $0x28] sm:$0xf]  ;;  %v47_v24 = vld [vmem:[%s656_s0 + $0x2c] sm:$0xf]  ;;  %v70_v25 = vmul.bf16 1045249613, %v38_v20 }
   0x8   :  { %456 = vmatprep.subr.bf16.mxu0 %v502_v2  ;;  %486 = vmatprep.subr.bf16.mxu1 %v502_v2  ;;  %v423_v18 = vcombine.low %v92_v16, %v93_v17  ;;  %v40_v26 = vld [vmem:[%s656_s0 + $0x10] sm:$0xf]  ;;  %v41_v27 = vld [vmem:[%s656_s0 + $0x14] sm:$0xf]  ;;  %vm54_vm4 = vcmp.ge.bf16.partialorder %v38_v20, 0  ;;  %vm55_vm5 = vcmp.ge.bf16.partialorder %v39_v21, 0 }
   0x9   :  { %468 = vmatprep.mubr.bf16.mxu0 %v419_v15  ;;  %v48_v28 = vld [vmem:[%s656_s0 + $0x30] sm:$0xf]  ;;  %v49_v29 = vld [vmem:[%s656_s0 + $0x34] sm:$0xf]  ;;  %v507_v30 = vld [vmem:[%s655_s1 + $0x38] sm:$0xff]   ;;  %vm62_vm6 = vcmp.ge.bf16.partialorder %v46_v23, 0  ;;  %v86_v38 = vsel %vm54_vm4, %v38_v20, %v70_v25 }
   0xa   :  { %476 = vmatprep.mubr.bf16.mxu1 %v423_v18  ;;  %v71_v31 = vmul.bf16 1045249613, %v39_v21  ;;  %vm63_vm7 = vcmp.ge.bf16.partialorder %v47_v24, 0  ;;  %v78_v32 = vmul.bf16 1045249613, %v46_v23  ;;  %vm56_vm8 = vcmp.ge.bf16.partialorder %v40_v26, 0 }
   0xb   :  { %457 = vmatpush3.bf16.msra.mxu0 %v502_v2  ;;  %494 = vmatpush3.bf16.msra.mxu1 %v502_v2  ;;  %v79_v33 = vmul.bf16 1045249613, %v47_v24  ;;  %v72_v34 = vmul.bf16 1045249613, %v40_v26  ;;  %v73_v35 = vmul.bf16 1045249613, %v41_v27 }
   0xc   :  { %458 = vmatprep.subr.bf16.mxu0 %v503_v3  ;;  %487 = vmatprep.subr.bf16.mxu1 %v503_v3  ;;  %vm57_vm9 = vcmp.ge.bf16.partialorder %v41_v27, 0  ;;  %v80_v36 = vmul.bf16 1045249613, %v48_v28  ;;  %v81_v37 = vmul.bf16 1045249613, %v49_v29  ;;  %vm64_vm10 = vcmp.ge.bf16.partialorder %v48_v28, 0 }
   0xd   :  { %vm65_vm11 = vcmp.ge.bf16.partialorder %v49_v29, 0  ;;  %v87_v39 = vsel %vm55_vm5, %v39_v21, %v71_v31  ;;  %v94_v40 = vsel %vm62_vm6, %v46_v23, %v78_v32  ;;  %v95_v41 = vsel %vm63_vm7, %v47_v24, %v79_v33  ;;  %v42_v44 = vld [vmem:[%s656_s0 + $0x18] sm:$0xf]  ;;  %v43_v47 = vld [vmem:[%s656_s0 + $0x1c] sm:$0xf] }
   0xe   :  { %v88_v42 = vsel %vm56_vm8, %v40_v26, %v72_v34  ;;  %v89_v43 = vsel %vm57_vm9, %v41_v27, %v73_v35  ;;  %v96_v45 = vsel %vm64_vm10, %v48_v28, %v80_v36  ;;  %v97_v46 = vsel %vm65_vm11, %v49_v29, %v81_v37  ;;  %v50_v48 = vld [vmem:[%s656_s0 + $0x38] sm:$0xf]  ;;  %v51_v49 = vld [vmem:[%s656_s0 + $0x3c] sm:$0xf]  ;;  %v435_v0 = vld [vmem:[%s657_s2] ss:$0 sm:$0xff] }
   0xf   :  { %459 = vmatpush3.bf16.msra.mxu0 %v503_v3  ;;  %495 = vmatpush3.bf16.msra.mxu1 %v503_v3  ;;  %v420_v50 = vcombine.low %v86_v38, %v87_v39  ;;  %v424_v51 = vcombine.low %v94_v40, %v95_v41  ;;  %v421_v52 = vcombine.low %v88_v42, %v89_v43  ;;  %vm58_vm12 = vcmp.ge.bf16.partialorder %v42_v44, 0 }
  0x10   :  { %460 = vmatprep.subr.bf16.mxu0 %v504_v14  ;;  %488 = vmatprep.subr.bf16.mxu1 %v504_v14  ;;  %v74_v53 = vmul.bf16 1045249613, %v42_v44  ;;  %v425_v54 = vcombine.low %v96_v45, %v97_v46  ;;  %v75_v55 = vmul.bf16 1045249613, %v43_v47  ;;  %v82_v56 = vmul.bf16 1045249613, %v50_v48 }
  0x11   :  { %v83_v57 = vmul.bf16 1045249613, %v51_v49  ;;  %vm59_vm13 = vcmp.ge.bf16.partialorder %v43_v47, 0  ;;  %vm66_vm14 = vcmp.ge.bf16.partialorder %v50_v48, 0  ;;  %vm67_vm15 = vcmp.ge.bf16.partialorder %v51_v49, 0 }
  0x12   :  { %v90_v58 = vsel %vm58_vm12, %v42_v44, %v74_v53  ;;  %v91_v59 = vsel %vm59_vm13, %v43_v47, %v75_v55  ;;  %v98_v60 = vsel %vm66_vm14, %v50_v48, %v82_v56 }
  0x13   :  { %461 = vmatpush3.bf16.msra.mxu0 %v504_v14  ;;  %496 = vmatpush3.bf16.msra.mxu1 %v504_v14  ;;  %v99_v61 = vsel %vm67_vm15, %v51_v49, %v83_v57  ;;  %v422_v62 = vcombine.low %v90_v58, %v91_v59 }
  0x14   :  { %462 = vmatprep.subr.bf16.mxu0 %v505_v19  ;;  %489 = vmatprep.subr.bf16.mxu1 %v505_v19  ;;  %v426_v63 = vcombine.low %v98_v60, %v99_v61 }
  0x17   :  { %463 = vmatpush3.bf16.msra.mxu0 %v505_v19  ;;  %497 = vmatpush3.bf16.msra.mxu1 %v505_v19 }
  0x18   :  { %464 = vmatprep.subr.bf16.mxu0 %v506_v22  ;;  %490 = vmatprep.subr.bf16.mxu1 %v506_v22 }
  0x1b   :  { %465 = vmatpush3.bf16.msra.mxu0 %v506_v22  ;;  %498 = vmatpush3.bf16.msra.mxu1 %v506_v22 }
  0x1c   :  { %466 = vmatprep.subr.bf16.mxu0 %v507_v30  ;;  %491 = vmatprep.subr.bf16.mxu1 %v507_v30 }
  0x1f   :  { %467 = vmatpush3.bf16.msra.mxu0 %v507_v30  ;;  %499 = vmatpush3.bf16.msra.mxu1 %v507_v30 }
  0x22   :  { %469 = vmatmul.mubr.bf16.vlgmr.msra.gmra.mrb[0].mxu0 %v420_v50  ;;  %477 = vmatmul.mubr.bf16.vlgmr.msra.gmra.mrb[0].mxu1 %v424_v51 }
  0x23   :  { %472 = vmatprep.mubr.bf16.mxu0 %v421_v52  ;;  %480 = vmatprep.mubr.bf16.mxu1 %v425_v54 }
  0x2a   :  { %473 = vmatmul.mubr.bf16.gmra.mrb[4].mxu0 %v422_v62  ;;  %481 = vmatmul.mubr.bf16.gmra.mrb[4].mxu1 %v426_v63 }
  0xf5   :  { %v470_v1 = vpop.f32.mrb[0].mxu0  ;;  %v478_v2 = vpop.f32.mrb[0].mxu1 }
  0xf6   :  { %v385_v3 = vadd.f32 %v470_v1, %v435_v0  ;;  %v393_v4 = vadd.f32 %v478_v2, %v435_v0  ;;  %v262_v5 = vpop.f32.mrb[1].mxu0  ;;  %v294_v6 = vpop.f32.mrb[1].mxu1 }
  0xf7   :  { %v383_v7 = vadd.f32 %v435_v0, %v262_v5  ;;  %v391_v8 = vadd.f32 %v435_v0, %v294_v6  ;;  %v471_v9 = vpop.f32.mrb[2].mxu0  ;;  %v479_v10 = vpop.f32.mrb[2].mxu1 }
  0xf8   :  { %401 = vst [vmem:[%s658_s3 + $0x10] sm:$0xff] %v385_v3  ;;  %409 = vst [vmem:[%s658_s3 + $0x50] sm:$0xff] %v393_v4  ;;  %v386_v11 = vadd.f32 %v471_v9, %v435_v0  ;;  %v394_v12 = vadd.f32 %v479_v10, %v435_v0  ;;  %v265_v13 = vpop.f32.mrb[3].mxu0  ;;  %v297_v14 = vpop.f32.mrb[3].mxu1 }
  0xf9   :  { %399 = vst [vmem:[%s658_s3] sm:$0xff] %v383_v7  ;;  %407 = vst [vmem:[%s658_s3 + $0x40] sm:$0xff] %v391_v8  ;;  %v384_v15 = vadd.f32 %v435_v0, %v265_v13  ;;  %v392_v16 = vadd.f32 %v435_v0, %v297_v14 }
  0xfa   :  { %402 = vst [vmem:[%s658_s3 + $0x18] sm:$0xff] %v386_v11  ;;  %410 = vst [vmem:[%s658_s3 + $0x58] sm:$0xff] %v394_v12 }
  0xfb   :  { %400 = vst [vmem:[%s658_s3 + $0x8] sm:$0xff] %v384_v15  ;;  %408 = vst [vmem:[%s658_s3 + $0x48] sm:$0xff] %v392_v16 }
  0xfd   :  { %v474_v17 = vpop.f32.mrb[4].mxu0  ;;  %v482_v18 = vpop.f32.mrb[4].mxu1 }
  0xfe   :  { %v389_v19 = vadd.f32 %v474_v17, %v435_v0  ;;  %v397_v20 = vadd.f32 %v482_v18, %v435_v0  ;;  %v278_v21 = vpop.f32.mrb[5].mxu0  ;;  %v310_v22 = vpop.f32.mrb[5].mxu1 }
  0xff   :  { %v387_v23 = vadd.f32 %v435_v0, %v278_v21  ;;  %v395_v24 = vadd.f32 %v435_v0, %v310_v22  ;;  %v475_v25 = vpop.f32.mrb[6].mxu0  ;;  %v483_v26 = vpop.f32.mrb[6].mxu1 }
 0x100   :  { %405 = vst [vmem:[%s658_s3 + $0x30] sm:$0xff] %v389_v19  ;;  %413 = vst [vmem:[%s658_s3 + $0x70] sm:$0xff] %v397_v20  ;;  %v390_v27 = vadd.f32 %v475_v25, %v435_v0  ;;  %v398_v28 = vadd.f32 %v483_v26, %v435_v0  ;;  %v281_v29 = vpop.f32.mrb[7].mxu0  ;;  %v313_v30 = vpop.f32.mrb[7].mxu1 }
 0x101   :  { %403 = vst [vmem:[%s658_s3 + $0x20] sm:$0xff] %v387_v23  ;;  %411 = vst [vmem:[%s658_s3 + $0x60] sm:$0xff] %v395_v24  ;;  %v388_v31 = vadd.f32 %v435_v0, %v281_v29  ;;  %v396_v32 = vadd.f32 %v435_v0, %v313_v30 }
 0x102   :  { %406 = vst [vmem:[%s658_s3 + $0x38] sm:$0xff] %v390_v27  ;;  %414 = vst [vmem:[%s658_s3 + $0x78] sm:$0xff] %v398_v28 }
 0x103   :  { %404 = vst [vmem:[%s658_s3 + $0x28] sm:$0xff] %v388_v31  ;;  %412 = vst [vmem:[%s658_s3 + $0x68] sm:$0xff] %v396_v32 }

// kernel: _lambda_.41
= control target key start
LH: loop header
LB: loop body
LE: loop exit
PB: predicated region body
PF: predicated region fallthrough
CT: control target
= control target key end

     0   :  { %vm14_vm0 = vcmask 122880   ;;  %vm34_vm1 = vcmask 130048   ;;  %v140_v0 = vmov 0.0   ;;  %s258_s0 = inlined_call_operand.vmem [shape: f32[128,16], index: 0, kind: input, shape index: {}]   ;;  %s259_s1 = inlined_call_operand.vmem [shape: f32[1,16], index: 1, kind: output, shape index: {0}]   ;;  %s260_s2 = inlined_call_operand.vmem [shape: f32[1,16], index: 2, kind: output, shape index: {1}]  }
   0x1   :  { %15 = vst.msk [vmem:[%s259_s1] sm:$0x1] %vm14_vm0, %v140_v0  ;;  %v17_v1 = vld [vmem:[%s258_s0] sm:$0xff]  ;;  %v18_v2 = vld [vmem:[%s258_s0 + $0x8] sm:$0xff]  ;;  %v19_v3 = vld [vmem:[%s258_s0 + $0x10] sm:$0xff] }
   0x2   :  { %16 = vst.msk [vmem:[%s260_s2] sm:$0x1] %vm14_vm0, %v140_v0  ;;  %v35_v4 = vsel %vm34_vm1, %v17_v1, 0.0  ;;  %v36_v5 = vsel %vm34_vm1, %v18_v2, 0.0  ;;  %v38_v6 = vsel %vm34_vm1, %v19_v3, 0.0  ;;  %v20_v7 = vld [vmem:[%s258_s0 + $0x18] sm:$0xff]  ;;  %v76_v15 = vmul.f32 %v17_v1, %v17_v1 }
   0x3   :  { %v37_v8 = vadd.f32 %v36_v5, %v35_v4  ;;  %v40_v9 = vsel %vm34_vm1, %v20_v7, 0.0  ;;  %v21_v10 = vld [vmem:[%s258_s0 + $0x20] sm:$0xff]  ;;  %v22_v13 = vld [vmem:[%s258_s0 + $0x28] sm:$0xff]  ;;  %v77_v16 = vmul.f32 %v18_v2, %v18_v2  ;;  %v78_v17 = vmul.f32 %v19_v3, %v19_v3  ;;  %v23_v19 = vld [vmem:[%s258_s0 + $0x30] sm:$0xff] }
   0x4   :  { %v42_v12 = vsel %vm34_vm1, %v21_v10, 0.0  ;;  %v44_v18 = vsel %vm34_vm1, %v22_v13, 0.0  ;;  %v79_v21 = vmul.f32 %v20_v7, %v20_v7  ;;  %v46_v22 = vsel %vm34_vm1, %v23_v19, 0.0  ;;  %v24_v24 = vld [vmem:[%s258_s0 + $0x38] sm:$0xff]  ;;  %v25_v31 = vld [vmem:[%s258_s0 + $0x40] sm:$0xff]  ;;  %v26_v37 = vld [vmem:[%s258_s0 + $0x48] sm:$0xff] }
   0x5   :  { %v39_v11 = vadd.f32 %v38_v6, %v37_v8  ;;  %v80_v23 = vmul.f32 %v21_v10, %v21_v10  ;;  %v92_v26 = vsel %vm34_vm1, %v76_v15, 0.0  ;;  %v93_v27 = vsel %vm34_vm1, %v77_v16, 0.0  ;;  %v27_v43 = vld [vmem:[%s258_s0 + $0x50] sm:$0xff]  ;;  %v28_v49 = vld [vmem:[%s258_s0 + $0x58] sm:$0xff]  ;;  %v29_v55 = vld [vmem:[%s258_s0 + $0x60] sm:$0xff] }
   0x6   :  { %v95_v28 = vsel %vm34_vm1, %v78_v17, 0.0  ;;  %v48_v29 = vsel %vm34_vm1, %v24_v24, 0.0  ;;  %v94_v30 = vadd.f32 %v93_v27, %v92_v26  ;;  %v81_v33 = vmul.f32 %v22_v13, %v22_v13  ;;  %v30_v61 = vld [vmem:[%s258_s0 + $0x68] sm:$0xff]  ;;  %v31_v3 = vld [vmem:[%s258_s0 + $0x70] sm:$0xff] }
   0x7   :  { %v41_v14 = vadd.f32 %v40_v9, %v39_v11  ;;  %v97_v34 = vsel %vm34_vm1, %v79_v21, 0.0  ;;  %v50_v35 = vsel %vm34_vm1, %v25_v31, 0.0  ;;  %v82_v39 = vmul.f32 %v23_v19, %v23_v19  ;;  %v32_v9 = vld [vmem:[%s258_s0 + $0x78] sm:$0xff] }
   0x8   :  { %v96_v36 = vadd.f32 %v95_v28, %v94_v30  ;;  %v99_v40 = vsel %vm34_vm1, %v80_v23, 0.0  ;;  %v52_v41 = vsel %vm34_vm1, %v26_v37, 0.0  ;;  %v83_v45 = vmul.f32 %v24_v24, %v24_v24 }
   0x9   :  { %v43_v20 = vadd.f32 %v42_v12, %v41_v14  ;;  %v101_v46 = vsel %vm34_vm1, %v81_v33, 0.0  ;;  %v54_v47 = vsel %vm34_vm1, %v27_v43, 0.0  ;;  %v84_v51 = vmul.f32 %v25_v31, %v25_v31 }
   0xa   :  { %v98_v42 = vadd.f32 %v97_v34, %v96_v36  ;;  %v103_v52 = vsel %vm34_vm1, %v82_v39, 0.0  ;;  %v56_v53 = vsel %vm34_vm1, %v28_v49, 0.0  ;;  %v85_v57 = vmul.f32 %v26_v37, %v26_v37  ;;  %v33_v36 = vld [vmem:[%s259_s1] sm:$0x1] }
   0xb   :  { %v45_v25 = vadd.f32 %v44_v18, %v43_v20  ;;  %v105_v58 = vsel %vm34_vm1, %v83_v45, 0.0  ;;  %v58_v59 = vsel %vm34_vm1, %v29_v55, 0.0  ;;  %v86_v63 = vmul.f32 %v27_v43, %v27_v43 }
   0xc   :  { %v100_v48 = vadd.f32 %v99_v40, %v98_v42  ;;  %v107_v0 = vsel %vm34_vm1, %v84_v51, 0.0  ;;  %v60_v1 = vsel %vm34_vm1, %v30_v61, 0.0  ;;  %v87_v5 = vmul.f32 %v28_v49, %v28_v49 }
   0xd   :  { %v47_v32 = vadd.f32 %v46_v22, %v45_v25  ;;  %v109_v6 = vsel %vm34_vm1, %v85_v57, 0.0  ;;  %v62_v7 = vsel %vm34_vm1, %v31_v3, 0.0  ;;  %v88_v11 = vmul.f32 %v29_v55, %v29_v55 }
   0xe   :  { %v102_v54 = vadd.f32 %v101_v46, %v100_v48  ;;  %v111_v12 = vsel %vm34_vm1, %v86_v63, 0.0  ;;  %v64_v13 = vsel %vm34_vm1, %v32_v9, 0.0  ;;  %v89_v16 = vmul.f32 %v30_v61, %v30_v61 }
   0xf   :  { %v49_v38 = vadd.f32 %v48_v29, %v47_v32  ;;  %v113_v17 = vsel %vm34_vm1, %v87_v5, 0.0  ;;  %v90_v20 = vmul.f32 %v31_v3, %v31_v3  ;;  %v115_v21 = vsel %vm34_vm1, %v88_v11, 0.0 }
  0x10   :  { %v104_v60 = vadd.f32 %v103_v52, %v102_v54  ;;  %v91_v24 = vmul.f32 %v32_v9, %v32_v9  ;;  %v117_v25 = vsel %vm34_vm1, %v89_v16, 0.0 }
  0x11   :  { %v51_v44 = vadd.f32 %v50_v35, %v49_v38  ;;  %v119_v28 = vsel %vm34_vm1, %v90_v20, 0.0 }
  0x12   :  { %v106_v2 = vadd.f32 %v105_v58, %v104_v60  ;;  %v121_v31 = vsel %vm34_vm1, %v91_v24, 0.0 }
  0x13   :  { %v53_v50 = vadd.f32 %v52_v41, %v51_v44  ;;  %v75_v44 = vld [vmem:[%s260_s2] sm:$0x1] }
  0x14   :  { %v108_v8 = vadd.f32 %v107_v0, %v106_v2 }
  0x15   :  { %v55_v56 = vadd.f32 %v54_v47, %v53_v50 }
  0x16   :  { %v110_v14 = vadd.f32 %v109_v6, %v108_v8 }
  0x17   :  { %v57_v62 = vadd.f32 %v56_v53, %v55_v56 }
  0x18   :  { %v112_v18 = vadd.f32 %v111_v12, %v110_v14 }
  0x19   :  { %v59_v4 = vadd.f32 %v58_v59, %v57_v62 }
  0x1a   :  { %v114_v22 = vadd.f32 %v113_v17, %v112_v18 }
  0x1b   :  { %v61_v10 = vadd.f32 %v60_v1, %v59_v4 }
  0x1c   :  { %v116_v26 = vadd.f32 %v115_v21, %v114_v22 }
  0x1d   :  { %v63_v15 = vadd.f32 %v62_v7, %v61_v10 }
  0x1e   :  { %v118_v29 = vadd.f32 %v117_v25, %v116_v26 }
  0x1f   :  { %v65_v19 = vadd.f32 %v64_v13, %v63_v15 }
  0x20   :  { %v120_v32 = vadd.f32 %v119_v28, %v118_v29 }
  0x21   :  { %v66_v23 = vrot.slane %v65_v19, 4 }
  0x22   :  { %v122_v34 = vadd.f32 %v121_v31, %v120_v32 }
  0x23   :  { %v67_v27 = vadd.f32 %v66_v23, %v65_v19 }
  0x24   :  { %v123_v37 = vrot.slane %v122_v34, 4 }
  0x25   :  { %v68_v30 = vrot.slane %v67_v27, 2 }
  0x26   :  { %v124_v39 = vadd.f32 %v123_v37, %v122_v34 }
  0x27   :  { %v69_v33 = vadd.f32 %v68_v30, %v67_v27 }
  0x28   :  { %v125_v41 = vrot.slane %v124_v39, 2 }
  0x29   :  { %v70_v35 = vrot.slane %v69_v33, 1 }
  0x2a   :  { %v126_v42 = vadd.f32 %v125_v41, %v124_v39 }
  0x2b   :  { %v71_v38 = vadd.f32 %v70_v35, %v69_v33 }
  0x2c   :  { %v127_v43 = vrot.slane %v126_v42, 1 }
  0x2d   :  { %v72_v40 = vadd.f32 %v71_v38, %v33_v36 }
  0x2e   :  { %v128_v45 = vadd.f32 %v127_v43, %v126_v42 }
  0x2f   :  { %74 = vst.msk [vmem:[%s259_s1] sm:$0x1] %vm14_vm0, %v72_v40 }
  0x30   :  { %v129_v46 = vadd.f32 %v128_v45, %v75_v44 }
  0x32   :  { %130 = vst.msk [vmem:[%s260_s2] sm:$0x1] %vm14_vm0, %v129_v46 }

// kernel: _lambda_.39
= control target key start
LH: loop header
LB: loop body
LE: loop exit
PB: predicated region body
PF: predicated region fallthrough
CT: control target
= control target key end

     0   :  { %vm395_vm0 = vcmask 392192   ;;  %s1747_s1 = inlined_call_operand.vmem [shape: bf16[48,128], index: 1, kind: input, shape index: {}]   ;;  %s1748_s0 = inlined_call_operand.vmem [shape: bf16[512,48], index: 0, kind: input, shape index: {}]   ;;  %s1749_s2 = inlined_call_operand.vmem [shape: f32[1,128], index: 2, kind: input, shape index: {}]   ;;  %s1750_s3 = inlined_call_operand.vmem [shape: f32[512,128], index: 3, kind: output, shape index: {}]  }
   0x1   :  { %v1294_v0 = vld [vmem:[%s1747_s1] sm:$0xff]   ;;  %v1295_v1 = vld [vmem:[%s1747_s1 + $0x8] sm:$0xff]   ;;  %v1296_v2 = vld [vmem:[%s1747_s1 + $0x10] sm:$0xff]  }
   0x2   :  { %1218 = vmatprep.subr.bf16.mxu0 %v1294_v0  ;;  %1288 = vmatprep.subr.bf16.mxu1 %v1294_v0  ;;  %v1297_v3 = vld [vmem:[%s1748_s0] sm:$0xff]   ;;  %v1299_v5 = vld [vmem:[%s1748_s0 + $0x8] sm:$0xff]   ;;  %v1301_v7 = vld [vmem:[%s1748_s0 + $0x10] sm:$0xff]  }
   0x3   :  { %1219 = vmatpush3.bf16.msra.mxu0 %v1294_v0  ;;  %1291 = vmatpush3.bf16.msra.mxu1 %v1294_v0  ;;  %v1298_v4 = vld [vmem:[%s1748_s0 + $0x80] sm:$0xff]   ;;  %v1300_v6 = vld [vmem:[%s1748_s0 + $0x88] sm:$0xff]   ;;  %v1302_v8 = vld [vmem:[%s1748_s0 + $0x90] sm:$0xff]  }
   0x4   :  { %1220 = vmatprep.subr.bf16.mxu0 %v1295_v1  ;;  %1289 = vmatprep.subr.bf16.mxu1 %v1295_v1  ;;  %v1303_v9 = vld [vmem:[%s1748_s0 + $0x18] sm:$0xff]   ;;  %v1305_v11 = vld [vmem:[%s1748_s0 + $0x20] sm:$0xff]   ;;  %v1307_v13 = vld [vmem:[%s1748_s0 + $0x28] sm:$0xff]  }
   0x5   :  { %1224 = vmatprep.mubr.msk.bf16.mxu0 %vm395_vm0, %v1297_v3  ;;  %1256 = vmatprep.mubr.msk.bf16.mxu1 %vm395_vm0, %v1298_v4  ;;  %v1304_v10 = vld [vmem:[%s1748_s0 + $0x98] sm:$0xff]   ;;  %v1306_v12 = vld [vmem:[%s1748_s0 + $0xa0] sm:$0xff]   ;;  %v1308_v14 = vld [vmem:[%s1748_s0 + $0xa8] sm:$0xff]  }
   0x6   :  { %v1309_v15 = vld [vmem:[%s1748_s0 + $0x30] sm:$0xff]   ;;  %v1311_v17 = vld [vmem:[%s1748_s0 + $0x38] sm:$0xff]   ;;  %v1313_v19 = vld [vmem:[%s1748_s0 + $0x40] sm:$0xff]  }
   0x7   :  { %1221 = vmatpush3.bf16.msra.mxu0 %v1295_v1  ;;  %1292 = vmatpush3.bf16.msra.mxu1 %v1295_v1  ;;  %v1310_v16 = vld [vmem:[%s1748_s0 + $0xb0] sm:$0xff]   ;;  %v1312_v18 = vld [vmem:[%s1748_s0 + $0xb8] sm:$0xff]   ;;  %v1314_v20 = vld [vmem:[%s1748_s0 + $0xc0] sm:$0xff]  }
   0x8   :  { %1222 = vmatprep.subr.bf16.mxu0 %v1296_v2  ;;  %1290 = vmatprep.subr.bf16.mxu1 %v1296_v2  ;;  %v1315_v21 = vld [vmem:[%s1748_s0 + $0x48] sm:$0xff]   ;;  %v1317_v23 = vld [vmem:[%s1748_s0 + $0x50] sm:$0xff]   ;;  %v1319_v25 = vld [vmem:[%s1748_s0 + $0x58] sm:$0xff]  }
   0x9   :  { %v1316_v22 = vld [vmem:[%s1748_s0 + $0xc8] sm:$0xff]   ;;  %v1318_v24 = vld [vmem:[%s1748_s0 + $0xd0] sm:$0xff]   ;;  %v1320_v26 = vld [vmem:[%s1748_s0 + $0xd8] sm:$0xff]  }
   0xa   :  { %v1321_v27 = vld [vmem:[%s1748_s0 + $0x60] sm:$0xff]   ;;  %v1323_v29 = vld [vmem:[%s1748_s0 + $0x68] sm:$0xff]   ;;  %v1325_v31 = vld [vmem:[%s1748_s0 + $0x70] sm:$0xff]  }
   0xb   :  { %1223 = vmatpush3.bf16.msra.mxu0 %v1296_v2  ;;  %1293 = vmatpush3.bf16.msra.mxu1 %v1296_v2  ;;  %v1322_v28 = vld [vmem:[%s1748_s0 + $0xe0] sm:$0xff]   ;;  %v1324_v30 = vld [vmem:[%s1748_s0 + $0xe8] sm:$0xff]   ;;  %v1326_v32 = vld [vmem:[%s1748_s0 + $0xf0] sm:$0xff]  }
   0xc   :  { %v1327_v33 = vld [vmem:[%s1748_s0 + $0x78] sm:$0xff]   ;;  %v1489_v35 = vld [vmem:[%s1749_s2] ss:$0 sm:$0xff] }
   0xd   :  { %v1328_v34 = vld [vmem:[%s1748_s0 + $0xf8] sm:$0xff]  }
   0xe   :  { %1225 = vmatmul.mubr.msk.bf16.vlgmr.msra.gmra.mrb[0].mxu0 %vm395_vm0, %v1299_v5  ;;  %1257 = vmatmul.mubr.msk.bf16.vlgmr.msra.gmra.mrb[0].mxu1 %vm395_vm0, %v1300_v6 }
   0xf   :  { %1228 = vmatprep.mubr.msk.bf16.mxu0 %vm395_vm0, %v1301_v7  ;;  %1260 = vmatprep.mubr.msk.bf16.mxu1 %vm395_vm0, %v1302_v8 }
  0x16   :  { %1229 = vmatmul.mubr.msk.bf16.gmra.mrb[4].mxu0 %vm395_vm0, %v1303_v9  ;;  %1261 = vmatmul.mubr.msk.bf16.gmra.mrb[4].mxu1 %vm395_vm0, %v1304_v10 }
  0x17   :  { %1232 = vmatprep.mubr.msk.bf16.mxu0 %vm395_vm0, %v1305_v11  ;;  %1264 = vmatprep.mubr.msk.bf16.mxu1 %vm395_vm0, %v1306_v12 }
  0x1e   :  { %1233 = vmatmul.mubr.msk.bf16.gmra.mrb[8].mxu0 %vm395_vm0, %v1307_v13  ;;  %1265 = vmatmul.mubr.msk.bf16.gmra.mrb[8].mxu1 %vm395_vm0, %v1308_v14 }
  0x1f   :  { %1236 = vmatprep.mubr.msk.bf16.mxu0 %vm395_vm0, %v1309_v15  ;;  %1268 = vmatprep.mubr.msk.bf16.mxu1 %vm395_vm0, %v1310_v16 }
  0x26   :  { %1237 = vmatmul.mubr.msk.bf16.gmra.mrb[12].mxu0 %vm395_vm0, %v1311_v17  ;;  %1269 = vmatmul.mubr.msk.bf16.gmra.mrb[12].mxu1 %vm395_vm0, %v1312_v18 }
  0x27   :  { %1240 = vmatprep.mubr.msk.bf16.mxu0 %vm395_vm0, %v1313_v19  ;;  %1272 = vmatprep.mubr.msk.bf16.mxu1 %vm395_vm0, %v1314_v20 }
  0x2e   :  { %1241 = vmatmul.mubr.msk.bf16.gmra.mrb[16].mxu0 %vm395_vm0, %v1315_v21  ;;  %1273 = vmatmul.mubr.msk.bf16.gmra.mrb[16].mxu1 %vm395_vm0, %v1316_v22 }
  0x2f   :  { %1244 = vmatprep.mubr.msk.bf16.mxu0 %vm395_vm0, %v1317_v23  ;;  %1276 = vmatprep.mubr.msk.bf16.mxu1 %vm395_vm0, %v1318_v24 }
  0x36   :  { %1245 = vmatmul.mubr.msk.bf16.gmra.mrb[20].mxu0 %vm395_vm0, %v1319_v25  ;;  %1277 = vmatmul.mubr.msk.bf16.gmra.mrb[20].mxu1 %vm395_vm0, %v1320_v26 }
  0x37   :  { %1248 = vmatprep.mubr.msk.bf16.mxu0 %vm395_vm0, %v1321_v27  ;;  %1280 = vmatprep.mubr.msk.bf16.mxu1 %vm395_vm0, %v1322_v28 }
  0x3e   :  { %1249 = vmatmul.mubr.msk.bf16.gmra.mrb[24].mxu0 %vm395_vm0, %v1323_v29  ;;  %1281 = vmatmul.mubr.msk.bf16.gmra.mrb[24].mxu1 %vm395_vm0, %v1324_v30 }
  0x3f   :  { %1252 = vmatprep.mubr.msk.bf16.mxu0 %vm395_vm0, %v1325_v31  ;;  %1284 = vmatprep.mubr.msk.bf16.mxu1 %vm395_vm0, %v1326_v32 }
  0x46   :  { %1253 = vmatmul.mubr.msk.bf16.gmra.mrb[28].mxu0 %vm395_vm0, %v1327_v33  ;;  %1285 = vmatmul.mubr.msk.bf16.gmra.mrb[28].mxu1 %vm395_vm0, %v1328_v34 }
  0xe1   :  { %v1226_v36 = vpop.f32.mrb[0].mxu0  ;;  %v1258_v37 = vpop.f32.mrb[0].mxu1 }
  0xe2   :  { %v985_v38 = vadd.f32 %v1226_v36, %v1489_v35  ;;  %v1017_v39 = vadd.f32 %v1258_v37, %v1489_v35  ;;  %v526_v40 = vpop.f32.mrb[1].mxu0  ;;  %v654_v41 = vpop.f32.mrb[1].mxu1 }
  0xe3   :  { %v983_v42 = vadd.f32 %v1489_v35, %v526_v40  ;;  %v1015_v43 = vadd.f32 %v1489_v35, %v654_v41  ;;  %v1227_v44 = vpop.f32.mrb[2].mxu0  ;;  %v1259_v45 = vpop.f32.mrb[2].mxu1 }
  0xe4   :  { %1049 = vst [vmem:[%s1750_s3 + $0x10] sm:$0xff] %v985_v38  ;;  %1081 = vst [vmem:[%s1750_s3 + $0x110] sm:$0xff] %v1017_v39  ;;  %v986_v46 = vadd.f32 %v1227_v44, %v1489_v35  ;;  %v1018_v47 = vadd.f32 %v1259_v45, %v1489_v35  ;;  %v529_v48 = vpop.f32.mrb[3].mxu0  ;;  %v657_v49 = vpop.f32.mrb[3].mxu1 }
  0xe5   :  { %1047 = vst [vmem:[%s1750_s3] sm:$0xff] %v983_v42  ;;  %1079 = vst [vmem:[%s1750_s3 + $0x100] sm:$0xff] %v1015_v43  ;;  %v984_v50 = vadd.f32 %v1489_v35, %v529_v48  ;;  %v1016_v51 = vadd.f32 %v1489_v35, %v657_v49 }
  0xe6   :  { %1050 = vst [vmem:[%s1750_s3 + $0x18] sm:$0xff] %v986_v46  ;;  %1082 = vst [vmem:[%s1750_s3 + $0x118] sm:$0xff] %v1018_v47 }
  0xe7   :  { %1048 = vst [vmem:[%s1750_s3 + $0x8] sm:$0xff] %v984_v50  ;;  %1080 = vst [vmem:[%s1750_s3 + $0x108] sm:$0xff] %v1016_v51 }
  0xe9   :  { %v1230_v52 = vpop.f32.mrb[4].mxu0  ;;  %v1262_v53 = vpop.f32.mrb[4].mxu1 }
  0xea   :  { %v989_v54 = vadd.f32 %v1230_v52, %v1489_v35  ;;  %v1021_v55 = vadd.f32 %v1262_v53, %v1489_v35  ;;  %v542_v56 = vpop.f32.mrb[5].mxu0  ;;  %v670_v57 = vpop.f32.mrb[5].mxu1 }
  0xeb   :  { %v987_v58 = vadd.f32 %v1489_v35, %v542_v56  ;;  %v1019_v59 = vadd.f32 %v1489_v35, %v670_v57  ;;  %v1231_v60 = vpop.f32.mrb[6].mxu0  ;;  %v1263_v61 = vpop.f32.mrb[6].mxu1 }
  0xec   :  { %1053 = vst [vmem:[%s1750_s3 + $0x30] sm:$0xff] %v989_v54  ;;  %1085 = vst [vmem:[%s1750_s3 + $0x130] sm:$0xff] %v1021_v55  ;;  %v990_v62 = vadd.f32 %v1231_v60, %v1489_v35  ;;  %v1022_v63 = vadd.f32 %v1263_v61, %v1489_v35  ;;  %v545_v0 = vpop.f32.mrb[7].mxu0  ;;  %v673_v1 = vpop.f32.mrb[7].mxu1 }
  0xed   :  { %1051 = vst [vmem:[%s1750_s3 + $0x20] sm:$0xff] %v987_v58  ;;  %1083 = vst [vmem:[%s1750_s3 + $0x120] sm:$0xff] %v1019_v59  ;;  %v988_v2 = vadd.f32 %v1489_v35, %v545_v0  ;;  %v1020_v3 = vadd.f32 %v1489_v35, %v673_v1 }
  0xee   :  { %1054 = vst [vmem:[%s1750_s3 + $0x38] sm:$0xff] %v990_v62  ;;  %1086 = vst [vmem:[%s1750_s3 + $0x138] sm:$0xff] %v1022_v63 }
  0xef   :  { %1052 = vst [vmem:[%s1750_s3 + $0x28] sm:$0xff] %v988_v2  ;;  %1084 = vst [vmem:[%s1750_s3 + $0x128] sm:$0xff] %v1020_v3 }
  0xf1   :  { %v1234_v4 = vpop.f32.mrb[8].mxu0  ;;  %v1266_v5 = vpop.f32.mrb[8].mxu1 }
  0xf2   :  { %v993_v6 = vadd.f32 %v1234_v4, %v1489_v35  ;;  %v1025_v7 = vadd.f32 %v1266_v5, %v1489_v35  ;;  %v558_v8 = vpop.f32.mrb[9].mxu0  ;;  %v686_v9 = vpop.f32.mrb[9].mxu1 }
  0xf3   :  { %v991_v10 = vadd.f32 %v1489_v35, %v558_v8  ;;  %v1023_v11 = vadd.f32 %v1489_v35, %v686_v9  ;;  %v1235_v12 = vpop.f32.mrb[10].mxu0  ;;  %v1267_v13 = vpop.f32.mrb[10].mxu1 }
  0xf4   :  { %1057 = vst [vmem:[%s1750_s3 + $0x50] sm:$0xff] %v993_v6  ;;  %1089 = vst [vmem:[%s1750_s3 + $0x150] sm:$0xff] %v1025_v7  ;;  %v994_v14 = vadd.f32 %v1235_v12, %v1489_v35  ;;  %v1026_v15 = vadd.f32 %v1267_v13, %v1489_v35  ;;  %v561_v16 = vpop.f32.mrb[11].mxu0  ;;  %v689_v17 = vpop.f32.mrb[11].mxu1 }
  0xf5   :  { %1055 = vst [vmem:[%s1750_s3 + $0x40] sm:$0xff] %v991_v10  ;;  %1087 = vst [vmem:[%s1750_s3 + $0x140] sm:$0xff] %v1023_v11  ;;  %v992_v18 = vadd.f32 %v1489_v35, %v561_v16  ;;  %v1024_v19 = vadd.f32 %v1489_v35, %v689_v17 }
  0xf6   :  { %1058 = vst [vmem:[%s1750_s3 + $0x58] sm:$0xff] %v994_v14  ;;  %1090 = vst [vmem:[%s1750_s3 + $0x158] sm:$0xff] %v1026_v15 }
  0xf7   :  { %1056 = vst [vmem:[%s1750_s3 + $0x48] sm:$0xff] %v992_v18  ;;  %1088 = vst [vmem:[%s1750_s3 + $0x148] sm:$0xff] %v1024_v19 }
  0xf9   :  { %v1238_v20 = vpop.f32.mrb[12].mxu0  ;;  %v1270_v21 = vpop.f32.mrb[12].mxu1 }
  0xfa   :  { %v997_v22 = vadd.f32 %v1238_v20, %v1489_v35  ;;  %v1029_v23 = vadd.f32 %v1270_v21, %v1489_v35  ;;  %v574_v24 = vpop.f32.mrb[13].mxu0  ;;  %v702_v25 = vpop.f32.mrb[13].mxu1 }
  0xfb   :  { %v995_v26 = vadd.f32 %v1489_v35, %v574_v24  ;;  %v1027_v27 = vadd.f32 %v1489_v35, %v702_v25  ;;  %v1239_v28 = vpop.f32.mrb[14].mxu0  ;;  %v1271_v29 = vpop.f32.mrb[14].mxu1 }
  0xfc   :  { %1061 = vst [vmem:[%s1750_s3 + $0x70] sm:$0xff] %v997_v22  ;;  %1093 = vst [vmem:[%s1750_s3 + $0x170] sm:$0xff] %v1029_v23  ;;  %v998_v30 = vadd.f32 %v1239_v28, %v1489_v35  ;;  %v1030_v31 = vadd.f32 %v1271_v29, %v1489_v35  ;;  %v577_v32 = vpop.f32.mrb[15].mxu0  ;;  %v705_v33 = vpop.f32.mrb[15].mxu1 }
  0xfd   :  { %1059 = vst [vmem:[%s1750_s3 + $0x60] sm:$0xff] %v995_v26  ;;  %1091 = vst [vmem:[%s1750_s3 + $0x160] sm:$0xff] %v1027_v27  ;;  %v996_v34 = vadd.f32 %v1489_v35, %v577_v32  ;;  %v1028_v36 = vadd.f32 %v1489_v35, %v705_v33 }
  0xfe   :  { %1062 = vst [vmem:[%s1750_s3 + $0x78] sm:$0xff] %v998_v30  ;;  %1094 = vst [vmem:[%s1750_s3 + $0x178] sm:$0xff] %v1030_v31 }
  0xff   :  { %1060 = vst [vmem:[%s1750_s3 + $0x68] sm:$0xff] %v996_v34  ;;  %1092 = vst [vmem:[%s1750_s3 + $0x168] sm:$0xff] %v1028_v36 }
 0x101   :  { %v1242_v37 = vpop.f32.mrb[16].mxu0  ;;  %v1274_v38 = vpop.f32.mrb[16].mxu1 }
 0x102   :  { %v1001_v39 = vadd.f32 %v1242_v37, %v1489_v35  ;;  %v1033_v40 = vadd.f32 %v1274_v38, %v1489_v35  ;;  %v590_v41 = vpop.f32.mrb[17].mxu0  ;;  %v718_v42 = vpop.f32.mrb[17].mxu1 }
 0x103   :  { %v999_v43 = vadd.f32 %v1489_v35, %v590_v41  ;;  %v1031_v44 = vadd.f32 %v1489_v35, %v718_v42  ;;  %v1243_v45 = vpop.f32.mrb[18].mxu0  ;;  %v1275_v46 = vpop.f32.mrb[18].mxu1 }
 0x104   :  { %1065 = vst [vmem:[%s1750_s3 + $0x90] sm:$0xff] %v1001_v39  ;;  %1097 = vst [vmem:[%s1750_s3 + $0x190] sm:$0xff] %v1033_v40  ;;  %v1002_v47 = vadd.f32 %v1243_v45, %v1489_v35  ;;  %v1034_v48 = vadd.f32 %v1275_v46, %v1489_v35  ;;  %v593_v49 = vpop.f32.mrb[19].mxu0  ;;  %v721_v50 = vpop.f32.mrb[19].mxu1 }
 0x105   :  { %1063 = vst [vmem:[%s1750_s3 + $0x80] sm:$0xff] %v999_v43  ;;  %1095 = vst [vmem:[%s1750_s3 + $0x180] sm:$0xff] %v1031_v44  ;;  %v1000_v51 = vadd.f32 %v1489_v35, %v593_v49  ;;  %v1032_v52 = vadd.f32 %v1489_v35, %v721_v50 }
 0x106   :  { %1066 = vst [vmem:[%s1750_s3 + $0x98] sm:$0xff] %v1002_v47  ;;  %1098 = vst [vmem:[%s1750_s3 + $0x198] sm:$0xff] %v1034_v48 }
 0x107   :  { %1064 = vst [vmem:[%s1750_s3 + $0x88] sm:$0xff] %v1000_v51  ;;  %1096 = vst [vmem:[%s1750_s3 + $0x188] sm:$0xff] %v1032_v52 }
 0x109   :  { %v1246_v53 = vpop.f32.mrb[20].mxu0  ;;  %v1278_v54 = vpop.f32.mrb[20].mxu1 }
 0x10a   :  { %v1005_v55 = vadd.f32 %v1246_v53, %v1489_v35  ;;  %v1037_v56 = vadd.f32 %v1278_v54, %v1489_v35  ;;  %v606_v57 = vpop.f32.mrb[21].mxu0  ;;  %v734_v58 = vpop.f32.mrb[21].mxu1 }
 0x10b   :  { %v1003_v59 = vadd.f32 %v1489_v35, %v606_v57  ;;  %v1035_v60 = vadd.f32 %v1489_v35, %v734_v58  ;;  %v1247_v61 = vpop.f32.mrb[22].mxu0  ;;  %v1279_v62 = vpop.f32.mrb[22].mxu1 }
 0x10c   :  { %1069 = vst [vmem:[%s1750_s3 + $0xb0] sm:$0xff] %v1005_v55  ;;  %1101 = vst [vmem:[%s1750_s3 + $0x1b0] sm:$0xff] %v1037_v56  ;;  %v1006_v63 = vadd.f32 %v1247_v61, %v1489_v35  ;;  %v1038_v0 = vadd.f32 %v1279_v62, %v1489_v35  ;;  %v609_v1 = vpop.f32.mrb[23].mxu0  ;;  %v737_v2 = vpop.f32.mrb[23].mxu1 }
 0x10d   :  { %1067 = vst [vmem:[%s1750_s3 + $0xa0] sm:$0xff] %v1003_v59  ;;  %1099 = vst [vmem:[%s1750_s3 + $0x1a0] sm:$0xff] %v1035_v60  ;;  %v1004_v3 = vadd.f32 %v1489_v35, %v609_v1  ;;  %v1036_v4 = vadd.f32 %v1489_v35, %v737_v2 }
 0x10e   :  { %1070 = vst [vmem:[%s1750_s3 + $0xb8] sm:$0xff] %v1006_v63  ;;  %1102 = vst [vmem:[%s1750_s3 + $0x1b8] sm:$0xff] %v1038_v0 }
 0x10f   :  { %1068 = vst [vmem:[%s1750_s3 + $0xa8] sm:$0xff] %v1004_v3  ;;  %1100 = vst [vmem:[%s1750_s3 + $0x1a8] sm:$0xff] %v1036_v4 }
 0x111   :  { %v1250_v5 = vpop.f32.mrb[24].mxu0  ;;  %v1282_v6 = vpop.f32.mrb[24].mxu1 }
 0x112   :  { %v1009_v7 = vadd.f32 %v1250_v5, %v1489_v35  ;;  %v1041_v8 = vadd.f32 %v1282_v6, %v1489_v35  ;;  %v622_v9 = vpop.f32.mrb[25].mxu0  ;;  %v750_v10 = vpop.f32.mrb[25].mxu1 }
 0x113   :  { %v1007_v11 = vadd.f32 %v1489_v35, %v622_v9  ;;  %v1039_v12 = vadd.f32 %v1489_v35, %v750_v10  ;;  %v1251_v13 = vpop.f32.mrb[26].mxu0  ;;  %v1283_v14 = vpop.f32.mrb[26].mxu1 }
 0x114   :  { %1073 = vst [vmem:[%s1750_s3 + $0xd0] sm:$0xff] %v1009_v7  ;;  %1105 = vst [vmem:[%s1750_s3 + $0x1d0] sm:$0xff] %v1041_v8  ;;  %v1010_v15 = vadd.f32 %v1251_v13, %v1489_v35  ;;  %v1042_v16 = vadd.f32 %v1283_v14, %v1489_v35  ;;  %v625_v17 = vpop.f32.mrb[27].mxu0  ;;  %v753_v18 = vpop.f32.mrb[27].mxu1 }
 0x115   :  { %1071 = vst [vmem:[%s1750_s3 + $0xc0] sm:$0xff] %v1007_v11  ;;  %1103 = vst [vmem:[%s1750_s3 + $0x1c0] sm:$0xff] %v1039_v12  ;;  %v1008_v19 = vadd.f32 %v1489_v35, %v625_v17  ;;  %v1040_v20 = vadd.f32 %v1489_v35, %v753_v18 }
 0x116   :  { %1074 = vst [vmem:[%s1750_s3 + $0xd8] sm:$0xff] %v1010_v15  ;;  %1106 = vst [vmem:[%s1750_s3 + $0x1d8] sm:$0xff] %v1042_v16 }
 0x117   :  { %1072 = vst [vmem:[%s1750_s3 + $0xc8] sm:$0xff] %v1008_v19  ;;  %1104 = vst [vmem:[%s1750_s3 + $0x1c8] sm:$0xff] %v1040_v20 }
 0x119   :  { %v1254_v21 = vpop.f32.mrb[28].mxu0  ;;  %v1286_v22 = vpop.f32.mrb[28].mxu1 }
 0x11a   :  { %v1013_v23 = vadd.f32 %v1254_v21, %v1489_v35  ;;  %v1045_v24 = vadd.f32 %v1286_v22, %v1489_v35  ;;  %v638_v25 = vpop.f32.mrb[29].mxu0  ;;  %v766_v26 = vpop.f32.mrb[29].mxu1 }
 0x11b   :  { %v1011_v27 = vadd.f32 %v1489_v35, %v638_v25  ;;  %v1043_v28 = vadd.f32 %v1489_v35, %v766_v26  ;;  %v1255_v29 = vpop.f32.mrb[30].mxu0  ;;  %v1287_v30 = vpop.f32.mrb[30].mxu1 }
 0x11c   :  { %1077 = vst [vmem:[%s1750_s3 + $0xf0] sm:$0xff] %v1013_v23  ;;  %1109 = vst [vmem:[%s1750_s3 + $0x1f0] sm:$0xff] %v1045_v24  ;;  %v1014_v31 = vadd.f32 %v1255_v29, %v1489_v35  ;;  %v1046_v32 = vadd.f32 %v1287_v30, %v1489_v35  ;;  %v641_v33 = vpop.f32.mrb[31].mxu0  ;;  %v769_v34 = vpop.f32.mrb[31].mxu1 }
 0x11d   :  { %1075 = vst [vmem:[%s1750_s3 + $0xe0] sm:$0xff] %v1011_v27  ;;  %1107 = vst [vmem:[%s1750_s3 + $0x1e0] sm:$0xff] %v1043_v28  ;;  %v1012_v36 = vadd.f32 %v1489_v35, %v641_v33  ;;  %v1044_v37 = vadd.f32 %v1489_v35, %v769_v34 }
 0x11e   :  { %1078 = vst [vmem:[%s1750_s3 + $0xf8] sm:$0xff] %v1014_v31  ;;  %1110 = vst [vmem:[%s1750_s3 + $0x1f8] sm:$0xff] %v1046_v32 }
 0x11f   :  { %1076 = vst [vmem:[%s1750_s3 + $0xe8] sm:$0xff] %v1012_v36  ;;  %1108 = vst [vmem:[%s1750_s3 + $0x1e8] sm:$0xff] %v1044_v37 }

// kernel: _lambda_.42
= control target key start
LH: loop header
LB: loop body
LE: loop exit
PB: predicated region body
PF: predicated region fallthrough
CT: control target
= control target key end

     0   :  { %vm76_vm0 = vcmask 130048   ;;  %s237_s0 = inlined_call_operand.vmem [shape: f32[128,16], index: 0, kind: input, shape index: {}]   ;;  %s238_s1 = inlined_call_operand.vmem [shape: f32[1,16], index: 1, kind: input, shape index: {}]   ;;  %s239_s2 = inlined_call_operand.vmem [shape: f32[1,16], index: 2, kind: input, shape index: {}]   ;;  %s240_s3 = inlined_call_operand.vmem [shape: f32[128,16], index: 3, kind: output, shape index: {}]  }
   0x1   :  { %v14_v0 = vld [vmem:[%s237_s0] sm:$0xff]  ;;  %v15_v4 = vld [vmem:[%s237_s0 + $0x8] sm:$0xff]  ;;  %v16_v5 = vld [vmem:[%s237_s0 + $0x10] sm:$0xff] }
   0x2   :  { %v97_v1 = vld [vmem:[%s238_s1] ss:$0 sm:$0xff]  ;;  %v17_v6 = vld [vmem:[%s237_s0 + $0x18] sm:$0xff]  ;;  %v19_v11 = vld [vmem:[%s237_s0 + $0x28] sm:$0xff] }
   0x3   :  { %v98_v2 = vld [vmem:[%s239_s2] ss:$0 sm:$0xff]  ;;  %v37_v3 = vmul.f32 %v97_v1, %v14_v0  ;;  %v38_v7 = vmul.f32 %v97_v1, %v15_v4  ;;  %v39_v8 = vmul.f32 %v97_v1, %v16_v5  ;;  %v40_v9 = vmul.f32 %v97_v1, %v17_v6  ;;  %v20_v12 = vld [vmem:[%s237_s0 + $0x30] sm:$0xff]  ;;  %v21_v17 = vld [vmem:[%s237_s0 + $0x38] sm:$0xff] }
   0x4   :  { %v18_v10 = vld [vmem:[%s237_s0 + $0x20] sm:$0xff]  ;;  %v42_v15 = vmul.f32 %v97_v1, %v19_v11  ;;  %v43_v16 = vmul.f32 %v97_v1, %v20_v12  ;;  %v23_v19 = vld [vmem:[%s237_s0 + $0x48] sm:$0xff]  ;;  %v44_v23 = vmul.f32 %v97_v1, %v21_v17  ;;  %v24_v24 = vld [vmem:[%s237_s0 + $0x50] sm:$0xff] }
   0x5   :  { %v60_v13 = vadd.f32 %v98_v2, %v37_v3  ;;  %v41_v14 = vmul.f32 %v97_v1, %v18_v10  ;;  %v22_v18 = vld [vmem:[%s237_s0 + $0x40] sm:$0xff]  ;;  %v61_v20 = vadd.f32 %v98_v2, %v38_v7  ;;  %v62_v21 = vadd.f32 %v98_v2, %v39_v8  ;;  %v25_v25 = vld [vmem:[%s237_s0 + $0x58] sm:$0xff]  ;;  %v27_v31 = vld [vmem:[%s237_s0 + $0x68] sm:$0xff] }
   0x6   :  { %v63_v22 = vadd.f32 %v98_v2, %v40_v9  ;;  %v26_v26 = vld [vmem:[%s237_s0 + $0x60] sm:$0xff]  ;;  %v65_v28 = vadd.f32 %v98_v2, %v42_v15  ;;  %v66_v29 = vadd.f32 %v98_v2, %v43_v16  ;;  %v45_v30 = vmul.f32 %v97_v1, %v22_v18  ;;  %v28_v32 = vld [vmem:[%s237_s0 + $0x70] sm:$0xff]  ;;  %v29_v33 = vld [vmem:[%s237_s0 + $0x78] sm:$0xff] }
   0x7   :  { %77 = vst.msk [vmem:[%s240_s3] sm:$0xff] %vm76_vm0, %v60_v13  ;;  %v64_v27 = vadd.f32 %v98_v2, %v41_v14  ;;  %78 = vst.msk [vmem:[%s240_s3 + $0x8] sm:$0xff] %vm76_vm0, %v61_v20  ;;  %v67_v34 = vadd.f32 %v98_v2, %v44_v23  ;;  %v46_v35 = vmul.f32 %v97_v1, %v23_v19 }
   0x8   :  { %79 = vst.msk [vmem:[%s240_s3 + $0x10] sm:$0xff] %vm76_vm0, %v62_v21  ;;  %80 = vst.msk [vmem:[%s240_s3 + $0x18] sm:$0xff] %vm76_vm0, %v63_v22  ;;  %v47_v36 = vmul.f32 %v97_v1, %v24_v24  ;;  %v48_v37 = vmul.f32 %v97_v1, %v25_v25  ;;  %v68_v38 = vadd.f32 %v98_v2, %v45_v30 }
   0x9   :  { %81 = vst.msk [vmem:[%s240_s3 + $0x20] sm:$0xff] %vm76_vm0, %v64_v27  ;;  %82 = vst.msk [vmem:[%s240_s3 + $0x28] sm:$0xff] %vm76_vm0, %v65_v28  ;;  %v49_v39 = vmul.f32 %v97_v1, %v26_v26  ;;  %v50_v40 = vmul.f32 %v97_v1, %v27_v31  ;;  %v51_v41 = vmul.f32 %v97_v1, %v28_v32 }
   0xa   :  { %83 = vst.msk [vmem:[%s240_s3 + $0x30] sm:$0xff] %vm76_vm0, %v66_v29  ;;  %84 = vst.msk [vmem:[%s240_s3 + $0x38] sm:$0xff] %vm76_vm0, %v67_v34  ;;  %v69_v42 = vadd.f32 %v98_v2, %v46_v35  ;;  %v70_v43 = vadd.f32 %v98_v2, %v47_v36  ;;  %v71_v44 = vadd.f32 %v98_v2, %v48_v37 }
   0xb   :  { %v52_v45 = vmul.f32 %v97_v1, %v29_v33  ;;  %85 = vst.msk [vmem:[%s240_s3 + $0x40] sm:$0xff] %vm76_vm0, %v68_v38  ;;  %v72_v46 = vadd.f32 %v98_v2, %v49_v39  ;;  %v73_v47 = vadd.f32 %v98_v2, %v50_v40  ;;  %v74_v48 = vadd.f32 %v98_v2, %v51_v41 }
   0xc   :  { %86 = vst.msk [vmem:[%s240_s3 + $0x48] sm:$0xff] %vm76_vm0, %v69_v42  ;;  %87 = vst.msk [vmem:[%s240_s3 + $0x50] sm:$0xff] %vm76_vm0, %v70_v43 }
   0xd   :  { %88 = vst.msk [vmem:[%s240_s3 + $0x58] sm:$0xff] %vm76_vm0, %v71_v44  ;;  %v75_v49 = vadd.f32 %v98_v2, %v52_v45  ;;  %89 = vst.msk [vmem:[%s240_s3 + $0x60] sm:$0xff] %vm76_vm0, %v72_v46 }
   0xe   :  { %90 = vst.msk [vmem:[%s240_s3 + $0x68] sm:$0xff] %vm76_vm0, %v73_v47  ;;  %91 = vst.msk [vmem:[%s240_s3 + $0x70] sm:$0xff] %vm76_vm0, %v74_v48 }
   0xf   :  { %92 = vst.msk [vmem:[%s240_s3 + $0x78] sm:$0xff] %vm76_vm0, %v75_v49 }

// kernel: _lambda_.44
= control target key start
LH: loop header
LB: loop body
LE: loop exit
PB: predicated region body
PF: predicated region fallthrough
CT: control target
= control target key end

     0   :  { %vm14_vm0 = vcmask 253952   ;;  %vm22_vm1 = vcmask 261120   ;;  %v68_v0 = vmov 0.0   ;;  %s126_s0 = inlined_call_operand.vmem [shape: f32[32,32], index: 0, kind: input, shape index: {}]   ;;  %s127_s1 = inlined_call_operand.vmem [shape: f32[1,32], index: 1, kind: output, shape index: {0}]   ;;  %s128_s2 = inlined_call_operand.vmem [shape: f32[1,32], index: 2, kind: output, shape index: {1}]  }
   0x1   :  { %15 = vst.msk [vmem:[%s127_s1] sm:$0x1] %vm14_vm0, %v68_v0  ;;  %v17_v1 = vld [vmem:[%s126_s0] sm:$0xff]  ;;  %v18_v2 = vld [vmem:[%s126_s0 + $0x8] sm:$0xff]  ;;  %v19_v3 = vld [vmem:[%s126_s0 + $0x10] sm:$0xff] }
   0x2   :  { %16 = vst.msk [vmem:[%s128_s2] sm:$0x1] %vm14_vm0, %v68_v0  ;;  %v20_v4 = vld [vmem:[%s126_s0 + $0x18] sm:$0xff]  ;;  %v23_v5 = vsel %vm22_vm1, %v17_v1, 0.0  ;;  %v24_v6 = vsel %vm22_vm1, %v18_v2, 0.0  ;;  %v26_v7 = vsel %vm22_vm1, %v19_v3, 0.0  ;;  %v40_v8 = vmul.f32 %v17_v1, %v17_v1 }
   0x3   :  { %v25_v9 = vadd.f32 %v24_v6, %v23_v5  ;;  %v41_v10 = vmul.f32 %v18_v2, %v18_v2  ;;  %v42_v11 = vmul.f32 %v19_v3, %v19_v3  ;;  %v28_v12 = vsel %vm22_vm1, %v20_v4, 0.0 }
   0x4   :  { %v43_v13 = vmul.f32 %v20_v4, %v20_v4  ;;  %v44_v14 = vsel %vm22_vm1, %v40_v8, 0.0 }
   0x5   :  { %v27_v15 = vadd.f32 %v26_v7, %v25_v9  ;;  %v45_v16 = vsel %vm22_vm1, %v41_v10, 0.0  ;;  %v47_v17 = vsel %vm22_vm1, %v42_v11, 0.0 }
   0x6   :  { %v46_v18 = vadd.f32 %v45_v16, %v44_v14  ;;  %v49_v20 = vsel %vm22_vm1, %v43_v13, 0.0 }
   0x7   :  { %v29_v19 = vadd.f32 %v28_v12, %v27_v15 }
   0x8   :  { %v48_v21 = vadd.f32 %v47_v17, %v46_v18  ;;  %v21_v31 = vld [vmem:[%s127_s1] sm:$0x1] }
   0x9   :  { %v30_v22 = vrot.slane %v29_v19, 4  ;;  %v39_v36 = vld [vmem:[%s128_s2] sm:$0x1] }
   0xa   :  { %v50_v23 = vadd.f32 %v49_v20, %v48_v21 }
   0xb   :  { %v31_v24 = vadd.f32 %v30_v22, %v29_v19 }
   0xc   :  { %v51_v25 = vrot.slane %v50_v23, 4 }
   0xd   :  { %v32_v26 = vrot.slane %v31_v24, 2 }
   0xe   :  { %v52_v27 = vadd.f32 %v51_v25, %v50_v23 }
   0xf   :  { %v33_v28 = vadd.f32 %v32_v26, %v31_v24 }
  0x10   :  { %v53_v29 = vrot.slane %v52_v27, 2 }
  0x11   :  { %v34_v30 = vrot.slane %v33_v28, 1 }
  0x12   :  { %v54_v32 = vadd.f32 %v53_v29, %v52_v27 }
  0x13   :  { %v35_v33 = vadd.f32 %v34_v30, %v33_v28 }
  0x14   :  { %v55_v34 = vrot.slane %v54_v32, 1 }
  0x15   :  { %v36_v35 = vadd.f32 %v35_v33, %v21_v31 }
  0x16   :  { %v56_v37 = vadd.f32 %v55_v34, %v54_v32 }
  0x17   :  { %38 = vst.msk [vmem:[%s127_s1] sm:$0x1] %vm14_vm0, %v36_v35 }
  0x18   :  { %v57_v38 = vadd.f32 %v56_v37, %v39_v36 }
  0x1a   :  { %58 = vst.msk [vmem:[%s128_s2] sm:$0x1] %vm14_vm0, %v57_v38 }

// kernel: _lambda_.43
= control target key start
LH: loop header
LB: loop body
LE: loop exit
PB: predicated region body
PF: predicated region fallthrough
CT: control target
= control target key end

     0   :  { %s451_s1 = inlined_call_operand.vmem [shape: bf16[256,128], index: 1, kind: input, shape index: {}]   ;;  %s452_s0 = inlined_call_operand.vmem [shape: bf16[32,256], index: 0, kind: input, shape index: {}]   ;;  %s453_s2 = inlined_call_operand.vmem [shape: f32[1,128], index: 2, kind: input, shape index: {}]   ;;  %s454_s3 = inlined_call_operand.vmem [shape: f32[32,128], index: 3, kind: output, shape index: {}]  }
   0x1   :  { %v340_v0 = vld [vmem:[%s451_s1 + $0x40] sm:$0xff]   ;;  %v342_v2 = vld [vmem:[%s451_s1 + $0x48] sm:$0xff]   ;;  %v344_v4 = vld [vmem:[%s451_s1 + $0x50] sm:$0xff]  }
   0x2   :  { %v341_v1 = vld [vmem:[%s451_s1] sm:$0xff]   ;;  %296 = vmatprep.subr.bf16.mxu0 %v340_v0  ;;  %324 = vmatprep.subr.bf16.mxu1 %v340_v0  ;;  %v343_v3 = vld [vmem:[%s451_s1 + $0x8] sm:$0xff]   ;;  %v345_v5 = vld [vmem:[%s451_s1 + $0x10] sm:$0xff]  }
   0x3   :  { %297 = vmatpush3.bf16.msra.mxu0 %v341_v1  ;;  %332 = vmatpush3.bf16.msra.mxu1 %v341_v1  ;;  %v346_v6 = vld [vmem:[%s451_s1 + $0x58] sm:$0xff]   ;;  %v348_v8 = vld [vmem:[%s451_s1 + $0x60] sm:$0xff]   ;;  %v350_v10 = vld [vmem:[%s451_s1 + $0x68] sm:$0xff]  }
   0x4   :  { %298 = vmatprep.subr.bf16.mxu0 %v342_v2  ;;  %325 = vmatprep.subr.bf16.mxu1 %v342_v2  ;;  %v347_v7 = vld [vmem:[%s451_s1 + $0x18] sm:$0xff]   ;;  %v349_v9 = vld [vmem:[%s451_s1 + $0x20] sm:$0xff]   ;;  %v25_v12 = vld [vmem:[%s452_s0 + $0x8] sm:$0xff] }
   0x5   :  { %v24_v11 = vld [vmem:[%s452_s0] sm:$0xff]  ;;  %v26_v13 = vld [vmem:[%s452_s0 + $0x10] sm:$0xff]  ;;  %vm29_vm1 = vcmp.ge.bf16.partialorder %v25_v12, 0  ;;  %v33_v15 = vmul.bf16 1045249613, %v25_v12  ;;  %v27_v16 = vld [vmem:[%s452_s0 + $0x18] sm:$0xff] }
   0x6   :  { %vm28_vm0 = vcmp.ge.bf16.partialorder %v24_v11, 0  ;;  %v32_v14 = vmul.bf16 1045249613, %v24_v11  ;;  %vm30_vm2 = vcmp.ge.bf16.partialorder %v26_v13, 0  ;;  %v34_v17 = vmul.bf16 1045249613, %v26_v13 }
   0x7   :  { %299 = vmatpush3.bf16.msra.mxu0 %v343_v3  ;;  %333 = vmatpush3.bf16.msra.mxu1 %v343_v3  ;;  %v351_v18 = vld [vmem:[%s451_s1 + $0x28] sm:$0xff]   ;;  %v37_v20 = vsel %vm29_vm1, %v25_v12, %v33_v15  ;;  %vm31_vm3 = vcmp.ge.bf16.partialorder %v27_v16, 0  ;;  %v35_v21 = vmul.bf16 1045249613, %v27_v16  ;;  %v352_v22 = vld [vmem:[%s451_s1 + $0x70] sm:$0xff]   ;;  %v354_v28 = vld [vmem:[%s451_s1 + $0x78] sm:$0xff]  }
   0x8   :  { %300 = vmatprep.subr.bf16.mxu0 %v344_v4  ;;  %326 = vmatprep.subr.bf16.mxu1 %v344_v4  ;;  %v36_v19 = vsel %vm28_vm0, %v24_v11, %v32_v14  ;;  %v38_v24 = vsel %vm30_vm2, %v26_v13, %v34_v17  ;;  %v353_v27 = vld [vmem:[%s451_s1 + $0x30] sm:$0xff]   ;;  %v355_v29 = vld [vmem:[%s451_s1 + $0x38] sm:$0xff]   ;;  %v295_v35 = vld [vmem:[%s453_s2] ss:$0 sm:$0xff] }
   0x9   :  { %v276_v23 = vcombine.high %v36_v19, %v37_v20  ;;  %v39_v25 = vsel %vm31_vm3, %v27_v16, %v35_v21  ;;  %v275_v30 = vcombine.low %v36_v19, %v37_v20 }
   0xa   :  { %v278_v26 = vcombine.high %v38_v24, %v39_v25  ;;  %v277_v31 = vcombine.low %v38_v24, %v39_v25 }
   0xb   :  { %301 = vmatpush3.bf16.msra.mxu0 %v345_v5  ;;  %334 = vmatpush3.bf16.msra.mxu1 %v345_v5 }
   0xc   :  { %302 = vmatprep.subr.bf16.mxu0 %v346_v6  ;;  %327 = vmatprep.subr.bf16.mxu1 %v346_v6 }
   0xd   :  { %224 = vmatprep.mubr.bf16.mxu0 %v276_v23  ;;  %232 = vmatprep.mubr.bf16.mxu1 %v278_v26 }
   0xf   :  { %303 = vmatpush3.bf16.msra.mxu0 %v347_v7  ;;  %335 = vmatpush3.bf16.msra.mxu1 %v347_v7 }
  0x10   :  { %304 = vmatprep.subr.bf16.mxu0 %v348_v8  ;;  %328 = vmatprep.subr.bf16.mxu1 %v348_v8 }
  0x13   :  { %305 = vmatpush3.bf16.msra.mxu0 %v349_v9  ;;  %336 = vmatpush3.bf16.msra.mxu1 %v349_v9 }
  0x14   :  { %306 = vmatprep.subr.bf16.mxu0 %v350_v10  ;;  %329 = vmatprep.subr.bf16.mxu1 %v350_v10 }
  0x17   :  { %307 = vmatpush3.bf16.msra.mxu0 %v351_v18  ;;  %337 = vmatpush3.bf16.msra.mxu1 %v351_v18 }
  0x18   :  { %308 = vmatprep.subr.bf16.mxu0 %v352_v22  ;;  %330 = vmatprep.subr.bf16.mxu1 %v352_v22 }
  0x1b   :  { %309 = vmatpush3.bf16.msra.mxu0 %v353_v27  ;;  %338 = vmatpush3.bf16.msra.mxu1 %v353_v27 }
  0x1c   :  { %310 = vmatprep.subr.bf16.mxu0 %v354_v28  ;;  %331 = vmatprep.subr.bf16.mxu1 %v354_v28 }
  0x1f   :  { %311 = vmatpush3.bf16.msra.mxu0 %v355_v29  ;;  %339 = vmatpush3.bf16.msra.mxu1 %v355_v29 }
  0x22   :  { %225 = vmatmul.mubr.bf16.vlgmr.msra.gmra.mrb[0].mxu0 %v275_v30  ;;  %233 = vmatmul.mubr.bf16.vlgmr.msra.gmra.mrb[0].mxu1 %v277_v31 }
  0xf5   :  { %v312_v32 = vpop.f32.mrb[0].mxu0  ;;  %v318_v33 = vpop.f32.mrb[0].mxu1 }
  0xf6   :  { %v313_v34 = vpop.f32.mrb[1].mxu0  ;;  %v319_v36 = vpop.f32.mrb[1].mxu1 }
  0xf7   :  { %v314_v37 = vadd.f32 %v313_v34, %v312_v32  ;;  %v320_v38 = vadd.f32 %v319_v36, %v318_v33  ;;  %v315_v39 = vpop.f32.mrb[2].mxu0  ;;  %v321_v40 = vpop.f32.mrb[2].mxu1 }
  0xf8   :  { %v316_v41 = vpop.f32.mrb[3].mxu0  ;;  %v322_v42 = vpop.f32.mrb[3].mxu1 }
  0xf9   :  { %v263_v43 = vadd.f32 %v314_v37, %v295_v35  ;;  %v265_v44 = vadd.f32 %v320_v38, %v295_v35  ;;  %v317_v45 = vadd.f32 %v316_v41, %v315_v39  ;;  %v323_v46 = vadd.f32 %v322_v42, %v321_v40 }
  0xfb   :  { %267 = vst [vmem:[%s454_s3] sm:$0xff] %v263_v43  ;;  %269 = vst [vmem:[%s454_s3 + $0x10] sm:$0xff] %v265_v44  ;;  %v264_v47 = vadd.f32 %v317_v45, %v295_v35  ;;  %v266_v48 = vadd.f32 %v323_v46, %v295_v35 }
  0xfd   :  { %268 = vst [vmem:[%s454_s3 + $0x8] sm:$0xff] %v264_v47  ;;  %270 = vst [vmem:[%s454_s3 + $0x18] sm:$0xff] %v266_v48 }

// kernel: _lambda_.45
= control target key start
LH: loop header
LB: loop body
LE: loop exit
PB: predicated region body
PF: predicated region fallthrough
CT: control target
= control target key end

     0   :  { %vm40_vm0 = vcmask 261120   ;;  %s101_s0 = inlined_call_operand.vmem [shape: f32[32,32], index: 0, kind: input, shape index: {}]   ;;  %s102_s1 = inlined_call_operand.vmem [shape: f32[1,32], index: 1, kind: input, shape index: {}]   ;;  %s103_s2 = inlined_call_operand.vmem [shape: f32[1,32], index: 2, kind: input, shape index: {}]   ;;  %s104_s3 = inlined_call_operand.vmem [shape: f32[32,32], index: 3, kind: output, shape index: {}]  }
   0x1   :  { %v14_v0 = vld [vmem:[%s101_s0] sm:$0xff]  ;;  %v15_v4 = vld [vmem:[%s101_s0 + $0x8] sm:$0xff]  ;;  %v16_v5 = vld [vmem:[%s101_s0 + $0x10] sm:$0xff] }
   0x2   :  { %v49_v1 = vld [vmem:[%s102_s1] ss:$0 sm:$0xff]  ;;  %v17_v6 = vld [vmem:[%s101_s0 + $0x18] sm:$0xff] }
   0x3   :  { %v50_v2 = vld [vmem:[%s103_s2] ss:$0 sm:$0xff]  ;;  %v25_v3 = vmul.f32 %v49_v1, %v14_v0  ;;  %v26_v7 = vmul.f32 %v49_v1, %v15_v4  ;;  %v27_v8 = vmul.f32 %v49_v1, %v16_v5  ;;  %v28_v9 = vmul.f32 %v49_v1, %v17_v6 }
   0x5   :  { %v36_v10 = vadd.f32 %v50_v2, %v25_v3  ;;  %v37_v11 = vadd.f32 %v50_v2, %v26_v7  ;;  %v38_v12 = vadd.f32 %v50_v2, %v27_v8  ;;  %v39_v13 = vadd.f32 %v50_v2, %v28_v9 }
   0x7   :  { %41 = vst.msk [vmem:[%s104_s3] sm:$0xff] %vm40_vm0, %v36_v10  ;;  %42 = vst.msk [vmem:[%s104_s3 + $0x8] sm:$0xff] %vm40_vm0, %v37_v11 }
   0x8   :  { %43 = vst.msk [vmem:[%s104_s3 + $0x10] sm:$0xff] %vm40_vm0, %v38_v12  ;;  %44 = vst.msk [vmem:[%s104_s3 + $0x18] sm:$0xff] %vm40_vm0, %v39_v13 }

// kernel: _lambda_.47
= control target key start
LH: loop header
LB: loop body
LE: loop exit
PB: predicated region body
PF: predicated region fallthrough
CT: control target
= control target key end

     0   :  { %vm14_vm0 = vcmask 516096   ;;  %vm19_vm1 = vcmask 523264   ;;  %v50_v0 = vmov 0.0   ;;  %s91_s0 = inlined_call_operand.vmem [shape: f32[8,64], index: 0, kind: input, shape index: {}]   ;;  %s92_s1 = inlined_call_operand.vmem [shape: f32[1,64], index: 1, kind: output, shape index: {0}]   ;;  %s93_s2 = inlined_call_operand.vmem [shape: f32[1,64], index: 2, kind: output, shape index: {1}]  }
   0x1   :  { %15 = vst.msk [vmem:[%s92_s1] sm:$0x1] %vm14_vm0, %v50_v0  ;;  %v17_v1 = vld [vmem:[%s91_s0] sm:$0xff]  ;;  %16 = vst.msk [vmem:[%s93_s2] sm:$0x1] %vm14_vm0, %v50_v0 }
   0x2   :  { %v20_v2 = vsel %vm19_vm1, %v17_v1, 0.0  ;;  %v31_v3 = vmul.f32 %v17_v1, %v17_v1 }
   0x3   :  { %v21_v4 = vrot.slane %v20_v2, 4 }
   0x4   :  { %v32_v5 = vsel %vm19_vm1, %v31_v3, 0.0 }
   0x5   :  { %v22_v6 = vadd.f32 %v21_v4, %v20_v2  ;;  %v33_v7 = vrot.slane %v32_v5, 4 }
   0x7   :  { %v23_v8 = vrot.slane %v22_v6, 2  ;;  %v34_v9 = vadd.f32 %v33_v7, %v32_v5 }
   0x8   :  { %v18_v14 = vld [vmem:[%s92_s1] sm:$0x1] }
   0x9   :  { %v24_v10 = vadd.f32 %v23_v8, %v22_v6  ;;  %v35_v11 = vrot.slane %v34_v9, 2  ;;  %v30_v17 = vld [vmem:[%s93_s2] sm:$0x1] }
   0xb   :  { %v25_v12 = vrot.slane %v24_v10, 1  ;;  %v36_v13 = vadd.f32 %v35_v11, %v34_v9 }
   0xd   :  { %v26_v15 = vadd.f32 %v25_v12, %v24_v10  ;;  %v37_v16 = vrot.slane %v36_v13, 1 }
   0xf   :  { %v27_v18 = vadd.f32 %v26_v15, %v18_v14  ;;  %v38_v19 = vadd.f32 %v37_v16, %v36_v13 }
  0x11   :  { %29 = vst.msk [vmem:[%s92_s1] sm:$0x1] %vm14_vm0, %v27_v18  ;;  %v39_v20 = vadd.f32 %v38_v19, %v30_v17 }
  0x13   :  { %40 = vst.msk [vmem:[%s93_s2] sm:$0x1] %vm14_vm0, %v39_v20 }

// kernel: _lambda_.49
= control target key start
LH: loop header
LB: loop body
LE: loop exit
PB: predicated region body
PF: predicated region fallthrough
CT: control target
= control target key end

     0   :  { %s945_s12 = smov 0   ;;  %s947_s13 = smov 0   ;;  %s1032_s0 = inlined_call_operand.vmem [shape: bf16[2,1024], index: 0, kind: input, shape index: {}]   ;;  %s1033_s1 = inlined_call_operand.vmem [shape: bf16[1024,128], index: 1, kind: input, shape index: {}]   ;;  %s1034_s2 = inlined_call_operand.vmem [shape: f32[1,128], index: 2, kind: input, shape index: {}]   ;;  %s1035_s3 = inlined_call_operand.vmem [shape: f32[2,128], index: 3, kind: output, shape index: {}]  }
   0x1   :  { %s949_s14 = smov 0  }
   0x2 LB: > { %s25_s15 = sadd.s32 1, %s917_s13  ;;  %p755_p0 = scmp.ge.s32.totalorder %s921_s14, 1  ;;  %s921_s14 = sphi %s949_s14, %s13_s14   ;;  %s917_s13 = sphi %s947_s13, %s1037_s13   ;;  %s913_s12 = sphi %s945_s12, %s1036_s12  }
   0x3   : > { %p26_p1 = scmp.ge.s32.totalorder %s25_s15, 2  ;;  %p188_p2 = scmp.lt.s32.totalorder %s921_s14, 3 }
   0x5   : > { %s1039_s15 = smov (%p26_p1, %s25_s15), 0  ;;  %p189_p3 = pnand %p755_p0, %p188_p2 }
   0x6   : > { %s756_s16 = sshll.u32 (!%p189_p3), %s913_s12, 2  ;;  %s757_s17 = sshll.u32 (!%p189_p3), %s913_s12, 6 }
   0x7   : > { %192 = sbr.rel (%p189_p3) target bundleno = 288 (0x120), region = 32  ;;  %p231_p4 = scmp.lt.s32.totalorder (!%p189_p3), %s756_s16, 7 }
   0x8   : > { %p238_p5 = scmp.lt.s32.totalorder (!%p189_p3), %s757_s17, 127  ;;  %p759_p6 = scmp.ne.s32.totalorder (!%p189_p3), %s913_s12, 0 }
   0xe   : > { %s1041_s16 = smov (!%p231_p4, %s756_s16), 7  ;;  %s1043_s17 = smov (!%p238_p5, %s757_s17), 127 }
   0xf   : > { %s235_s20 = scalar_lea.vmem %s1032_s0, %s1041_s16  ;;  %s758_s21 = sshll.u32 %s1043_s17, 2  ;;  %v923_v0 = vmov (!%p759_p6), 0.0  }
  0x10   : > { %s976_s24 = scalar_lea.vmem %s1033_s1, %s758_s21  ;;  %261 = sbr.rel (%p759_p6) target bundleno = 23 (0x17), region = 36  ;;  %262 = vst [vmem:[#allocation2] sm:$0x3] (!%p759_p6), %v923_v0 }
  0x17 PF: > { %v867_v1 = vld [vmem:[%s976_s24 + $0x40] sm:$0xff]   ;;  %v871_v5 = vld [vmem:[%s976_s24 + $0x48] sm:$0xff]   ;;  %v875_v9 = vld [vmem:[%s976_s24 + $0x50] sm:$0xff]   ;;  %v336_v31 = vlaneseq  ;;  %v924_v36 = vmov 1966171168   ;;  %p792_p7 = scmp.ne.s32.totalorder %s913_s12, 1 }
  0x18   : > { %v868_v2 = vld [vmem:[%s976_s24 + $0xc0] sm:$0xff]   ;;  %797 = vmatprep.subr.bf16.mxu0 %v867_v1  ;;  %v872_v6 = vld [vmem:[%s976_s24 + $0xc8] sm:$0xff]   ;;  %v876_v10 = vld [vmem:[%s976_s24 + $0xd0] sm:$0xff]   ;;  %v334_v37 = vunpack.c.l.s4 %v924_v36 }
  0x19   : > { %v869_v3 = vld [vmem:[%s976_s24] sm:$0xff]   ;;  %819 = vmatprep.subr.bf16.mxu1 %v868_v2  ;;  %v873_v7 = vld [vmem:[%s976_s24 + $0x8] sm:$0xff]   ;;  %v877_v11 = vld [vmem:[%s976_s24 + $0x10] sm:$0xff]   ;;  %v337_v38 = vshrl.u32 %v336_v31, 7 }
  0x1a   : > { %v870_v4 = vld [vmem:[%s976_s24 + $0x80] sm:$0xff]   ;;  %798 = vmatpush3.bf16.msra.mxu0 %v869_v3  ;;  %v874_v8 = vld [vmem:[%s976_s24 + $0x88] sm:$0xff]   ;;  %v878_v12 = vld [vmem:[%s976_s24 + $0x90] sm:$0xff]   ;;  %v335_v39 = vunpack.c.0.s8 %v334_v37 }
  0x1b   : > { %820 = vmatpush3.bf16.msra.mxu1 %v870_v4  ;;  %799 = vmatprep.subr.bf16.mxu0 %v871_v5  ;;  %v879_v13 = vld [vmem:[%s976_s24 + $0x58] sm:$0xff]   ;;  %v883_v17 = vld [vmem:[%s976_s24 + $0x60] sm:$0xff]   ;;  %v887_v21 = vld [vmem:[%s976_s24 + $0x68] sm:$0xff]  }
  0x1c   : > { %821 = vmatprep.subr.bf16.mxu1 %v872_v6  ;;  %v880_v14 = vld [vmem:[%s976_s24 + $0xd8] sm:$0xff]   ;;  %v884_v18 = vld [vmem:[%s976_s24 + $0xe0] sm:$0xff]   ;;  %v888_v22 = vld [vmem:[%s976_s24 + $0xe8] sm:$0xff]   ;;  %v338_v41 = vsub.s32 %v335_v39, %v337_v38 }
  0x1d   : > { %v881_v15 = vld [vmem:[%s976_s24 + $0x18] sm:$0xff]   ;;  %v885_v19 = vld [vmem:[%s976_s24 + $0x20] sm:$0xff]   ;;  %v889_v23 = vld [vmem:[%s976_s24 + $0x28] sm:$0xff]  }
  0x1e   : > { %800 = vmatpush3.bf16.msra.mxu0 %v873_v7  ;;  %v882_v16 = vld [vmem:[%s976_s24 + $0x98] sm:$0xff]   ;;  %v886_v20 = vld [vmem:[%s976_s24 + $0xa0] sm:$0xff]   ;;  %v890_v24 = vld [vmem:[%s976_s24 + $0xa8] sm:$0xff]  }
  0x1f   : > { %822 = vmatpush3.bf16.msra.mxu1 %v874_v8  ;;  %801 = vmatprep.subr.bf16.mxu0 %v875_v9  ;;  %v891_v25 = vld [vmem:[%s976_s24 + $0x70] sm:$0xff]   ;;  %v895_v29 = vld [vmem:[%s976_s24 + $0x78] sm:$0xff]   ;;  %v263_v34 = vld [vmem:[%s235_s20] sm:$0xf] }
  0x20   : > { %823 = vmatprep.subr.bf16.mxu1 %v876_v10  ;;  %v892_v26 = vld [vmem:[%s976_s24 + $0xf0] sm:$0xff]   ;;  %v896_v30 = vld [vmem:[%s976_s24 + $0xf8] sm:$0xff]   ;;  %vm264_vm0 = vcmp.ge.bf16.partialorder %v263_v34, 0  ;;  %v265_v35 = vmul.bf16 1045249613, %v263_v34 }
  0x21   : > { %v893_v27 = vld [vmem:[%s976_s24 + $0x30] sm:$0xff]   ;;  %v897_v32 = vld [vmem:[%s976_s24 + $0x38] sm:$0xff]   ;;  %v267_v57 = vld [vmem:[#allocation2] sm:$0x3] }
  0x22   : > { %802 = vmatpush3.bf16.msra.mxu0 %v877_v11  ;;  %v894_v28 = vld [vmem:[%s976_s24 + $0xb0] sm:$0xff]   ;;  %v898_v33 = vld [vmem:[%s976_s24 + $0xb8] sm:$0xff]   ;;  %v266_v40 = vsel %vm264_vm0, %v263_v34, %v265_v35  ;;  %v793_v62 = vld [vmem:[%s1034_s2] ss:$0 sm:$0xff] (!%p792_p7) }
  0x23   : > { %824 = vmatpush3.bf16.msra.mxu1 %v878_v12  ;;  %803 = vmatprep.subr.bf16.mxu0 %v879_v13  ;;  %v339_v42 = vrot.slane %v266_v40, %v338_v41 }
  0x24   : > { %825 = vmatprep.subr.bf16.mxu1 %v880_v14 }
  0x25   : > { %v340_v43 = vcombine.high %v339_v42, %v339_v42  ;;  %v347_v44 = vrot.slane %v339_v42, %v338_v41 }
  0x26   : > { %804 = vmatpush3.bf16.msra.mxu0 %v881_v15 }
  0x27   : > { %826 = vmatpush3.bf16.msra.mxu1 %v882_v16  ;;  %805 = vmatprep.subr.bf16.mxu0 %v883_v17  ;;  %v354_v45 = vrot.slane %v340_v43, %v338_v41  ;;  %v355_v46 = vcombine.high %v347_v44, %v347_v44 }
  0x28   : > { %827 = vmatprep.subr.bf16.mxu1 %v884_v18 }
  0x29   : > { %585 = vmatprep.mubr.bf16.mxu0 %v354_v45  ;;  %v356_v47 = vcombine.high %v354_v45, %v354_v45 }
  0x2a   : > { %806 = vmatpush3.bf16.msra.mxu0 %v885_v19 }
  0x2b   : > { %828 = vmatpush3.bf16.msra.mxu1 %v886_v20  ;;  %807 = vmatprep.subr.bf16.mxu0 %v887_v21 }
  0x2c   : > { %829 = vmatprep.subr.bf16.mxu1 %v888_v22  ;;  %625 = vmatprep.mubr.bf16.mxu1 %v356_v47 }
  0x2e   : > { %808 = vmatpush3.bf16.msra.mxu0 %v889_v23 }
  0x2f   : > { %830 = vmatpush3.bf16.msra.mxu1 %v890_v24  ;;  %809 = vmatprep.subr.bf16.mxu0 %v891_v25 }
  0x30   : > { %831 = vmatprep.subr.bf16.mxu1 %v892_v26 }
  0x32   : > { %810 = vmatpush3.bf16.msra.mxu0 %v893_v27 }
  0x33   : > { %832 = vmatpush3.bf16.msra.mxu1 %v894_v28  ;;  %811 = vmatprep.subr.bf16.mxu0 %v895_v29 }
  0x34   : > { %833 = vmatprep.subr.bf16.mxu1 %v896_v30 }
  0x36   : > { %812 = vmatpush3.bf16.msra.mxu0 %v897_v32 }
  0x37   : > { %834 = vmatpush3.bf16.msra.mxu1 %v898_v33 }
  0x39   : > { %586 = vmatmul.mubr.bf16.vlgmr.msra.gmra.mrb[0].mxu0 %v347_v44 }
  0x3a   : > { %626 = vmatmul.mubr.bf16.vlgmr.msra.gmra.mrb[0].mxu1 %v355_v46 }
 0x10c   : > { %v813_v48 = vpop.f32.mrb[0].mxu0 }
 0x10d   : > { %v814_v49 = vpop.f32.mrb[1].mxu0  ;;  %v835_v50 = vpop.f32.mrb[0].mxu1 }
 0x10e   : > { %v815_v51 = vadd.f32 %v814_v49, %v813_v48  ;;  %v816_v52 = vpop.f32.mrb[2].mxu0  ;;  %v836_v53 = vpop.f32.mrb[1].mxu1 }
 0x10f   : > { %v817_v54 = vpop.f32.mrb[3].mxu0  ;;  %v837_v55 = vadd.f32 %v836_v53, %v835_v50  ;;  %v838_v56 = vpop.f32.mrb[2].mxu1  ;;  %638 = sbr.rel (%p792_p7) target bundleno = 288 (0x120), region = 40 }
 0x110   : > { %v839_v58 = vpop.f32.mrb[3].mxu1 }
 0x111   : > { %v628_v59 = vadd.f32 %v837_v55, %v815_v51 }
 0x113   : > { %v633_v60 = vadd.f32 %v628_v59, %v267_v57 }
 0x115   : > { %634 = vst [vmem:[#allocation2] sm:$0x3] %v633_v60 }
 0x11c   : > { %v639_v61 = vld [vmem:[#allocation2] sm:$0x3] }
 0x11d   : > { %v647_v63 = vadd.f32 %v793_v62, %v639_v61 }
 0x11f   : > { %648 = vst [vmem:[%s1035_s3] sm:$0x3] %v647_v63 }
 0x120 PF: > { %s13_s14 = sadd.s32 1, %s921_s14   ;;  %s1036_s12 = smov %s917_s13 }
 0x121   : > { %p10_p8 = scmp.ge.s32.totalorder %s13_s14, 4   ;;  %s1037_s13 = smov %s1039_s15 }
 0x123   :  { %12 = sbr.rel (!%p10_p8) target bundleno = 2 (0x2), region = 76 }

// kernel: _lambda_.48
= control target key start
LH: loop header
LB: loop body
LE: loop exit
PB: predicated region body
PF: predicated region fallthrough
CT: control target
= control target key end

     0   :  { %vm31_vm0 = vcmask 523264   ;;  %s71_s0 = inlined_call_operand.vmem [shape: f32[8,64], index: 0, kind: input, shape index: {}]   ;;  %s72_s1 = inlined_call_operand.vmem [shape: f32[1,64], index: 1, kind: input, shape index: {}]   ;;  %s73_s2 = inlined_call_operand.vmem [shape: f32[1,64], index: 2, kind: input, shape index: {}]   ;;  %s74_s3 = inlined_call_operand.vmem [shape: f32[8,64], index: 3, kind: output, shape index: {}]  }
   0x1   :  { %v14_v0 = vld [vmem:[%s71_s0] sm:$0xff] }
   0x2   :  { %v37_v1 = vld [vmem:[%s72_s1] ss:$0 sm:$0xff] }
   0x3   :  { %v38_v2 = vld [vmem:[%s73_s2] ss:$0 sm:$0xff]  ;;  %v22_v3 = vmul.f32 %v37_v1, %v14_v0 }
   0x5   :  { %v30_v4 = vadd.f32 %v38_v2, %v22_v3 }
   0x7   :  { %32 = vst.msk [vmem:[%s74_s3] sm:$0xff] %vm31_vm0, %v30_v4 }

// kernel: _lambda_.46
= control target key start
LH: loop header
LB: loop body
LE: loop exit
PB: predicated region body
PF: predicated region fallthrough
CT: control target
= control target key end

     0   :  { %s640_s1 = inlined_call_operand.vmem [shape: bf16[512,128], index: 1, kind: input, shape index: {}]   ;;  %s641_s0 = inlined_call_operand.vmem [shape: bf16[8,512], index: 0, kind: input, shape index: {}]   ;;  %s642_s2 = inlined_call_operand.vmem [shape: f32[1,128], index: 2, kind: input, shape index: {}]   ;;  %s643_s3 = inlined_call_operand.vmem [shape: f32[8,128], index: 3, kind: output, shape index: {}]  }
   0x1   :  { %v480_v0 = vld [vmem:[%s640_s1 + $0x40] sm:$0xff]   ;;  %v484_v4 = vld [vmem:[%s640_s1 + $0x48] sm:$0xff]   ;;  %v488_v8 = vld [vmem:[%s640_s1 + $0x50] sm:$0xff]  }
   0x2   :  { %v481_v1 = vld [vmem:[%s640_s1 + $0xc0] sm:$0xff]   ;;  %436 = vmatprep.subr.bf16.mxu0 %v480_v0  ;;  %v485_v5 = vld [vmem:[%s640_s1 + $0xc8] sm:$0xff]   ;;  %v489_v9 = vld [vmem:[%s640_s1 + $0xd0] sm:$0xff]  }
   0x3   :  { %v482_v2 = vld [vmem:[%s640_s1] sm:$0xff]   ;;  %458 = vmatprep.subr.bf16.mxu1 %v481_v1  ;;  %v486_v6 = vld [vmem:[%s640_s1 + $0x8] sm:$0xff]   ;;  %v490_v10 = vld [vmem:[%s640_s1 + $0x10] sm:$0xff]  }
   0x4   :  { %v483_v3 = vld [vmem:[%s640_s1 + $0x80] sm:$0xff]   ;;  %437 = vmatpush3.bf16.msra.mxu0 %v482_v2  ;;  %v487_v7 = vld [vmem:[%s640_s1 + $0x88] sm:$0xff]   ;;  %v491_v11 = vld [vmem:[%s640_s1 + $0x90] sm:$0xff]  }
   0x5   :  { %459 = vmatpush3.bf16.msra.mxu1 %v483_v3  ;;  %438 = vmatprep.subr.bf16.mxu0 %v484_v4  ;;  %v492_v12 = vld [vmem:[%s640_s1 + $0x58] sm:$0xff]   ;;  %v496_v16 = vld [vmem:[%s640_s1 + $0x60] sm:$0xff]   ;;  %v500_v20 = vld [vmem:[%s640_s1 + $0x68] sm:$0xff]  }
   0x6   :  { %460 = vmatprep.subr.bf16.mxu1 %v485_v5  ;;  %v493_v13 = vld [vmem:[%s640_s1 + $0xd8] sm:$0xff]   ;;  %v497_v17 = vld [vmem:[%s640_s1 + $0xe0] sm:$0xff]   ;;  %v501_v21 = vld [vmem:[%s640_s1 + $0xe8] sm:$0xff]  }
   0x7   :  { %v494_v14 = vld [vmem:[%s640_s1 + $0x18] sm:$0xff]   ;;  %v498_v18 = vld [vmem:[%s640_s1 + $0x20] sm:$0xff]   ;;  %v502_v22 = vld [vmem:[%s640_s1 + $0x28] sm:$0xff]  }
   0x8   :  { %439 = vmatpush3.bf16.msra.mxu0 %v486_v6  ;;  %v495_v15 = vld [vmem:[%s640_s1 + $0x98] sm:$0xff]   ;;  %v499_v19 = vld [vmem:[%s640_s1 + $0xa0] sm:$0xff]   ;;  %v503_v23 = vld [vmem:[%s640_s1 + $0xa8] sm:$0xff]  }
   0x9   :  { %461 = vmatpush3.bf16.msra.mxu1 %v487_v7  ;;  %440 = vmatprep.subr.bf16.mxu0 %v488_v8  ;;  %v504_v24 = vld [vmem:[%s640_s1 + $0x70] sm:$0xff]   ;;  %v508_v28 = vld [vmem:[%s640_s1 + $0x78] sm:$0xff]   ;;  %v21_v32 = vld [vmem:[%s641_s0] sm:$0xff] }
   0xa   :  { %462 = vmatprep.subr.bf16.mxu1 %v489_v9  ;;  %v505_v25 = vld [vmem:[%s640_s1 + $0xf0] sm:$0xff]   ;;  %v509_v29 = vld [vmem:[%s640_s1 + $0xf8] sm:$0xff]   ;;  %v22_v33 = vld [vmem:[%s641_s0 + $0x8] sm:$0xff]  ;;  %vm23_vm0 = vcmp.ge.bf16.partialorder %v21_v32, 0  ;;  %v25_v34 = vmul.bf16 1045249613, %v21_v32 }
   0xb   :  { %v506_v26 = vld [vmem:[%s640_s1 + $0x30] sm:$0xff]   ;;  %v510_v30 = vld [vmem:[%s640_s1 + $0x38] sm:$0xff]   ;;  %vm24_vm1 = vcmp.ge.bf16.partialorder %v22_v33, 0  ;;  %v26_v35 = vmul.bf16 1045249613, %v22_v33 }
   0xc   :  { %441 = vmatpush3.bf16.msra.mxu0 %v490_v10  ;;  %v507_v27 = vld [vmem:[%s640_s1 + $0xb0] sm:$0xff]   ;;  %v511_v31 = vld [vmem:[%s640_s1 + $0xb8] sm:$0xff]   ;;  %v27_v36 = vsel %vm23_vm0, %v21_v32, %v25_v34  ;;  %v435_v50 = vld [vmem:[%s642_s2] ss:$0 sm:$0xff] }
   0xd   :  { %463 = vmatpush3.bf16.msra.mxu1 %v491_v11  ;;  %442 = vmatprep.subr.bf16.mxu0 %v492_v12  ;;  %v28_v37 = vsel %vm24_vm1, %v22_v33, %v26_v35  ;;  %v399_v38 = vcombine.low %v27_v36, %v27_v36  ;;  %v400_v39 = vcombine.high %v27_v36, %v27_v36 }
   0xe   :  { %464 = vmatprep.subr.bf16.mxu1 %v493_v13  ;;  %v401_v40 = vcombine.low %v28_v37, %v28_v37  ;;  %v402_v41 = vcombine.high %v28_v37, %v28_v37 }
   0xf   :  { %332 = vmatprep.mubr.bf16.mxu0 %v400_v39 }
  0x10   :  { %443 = vmatpush3.bf16.msra.mxu0 %v494_v14  ;;  %372 = vmatprep.mubr.bf16.mxu1 %v402_v41 }
  0x11   :  { %465 = vmatpush3.bf16.msra.mxu1 %v495_v15  ;;  %444 = vmatprep.subr.bf16.mxu0 %v496_v16 }
  0x12   :  { %466 = vmatprep.subr.bf16.mxu1 %v497_v17 }
  0x14   :  { %445 = vmatpush3.bf16.msra.mxu0 %v498_v18 }
  0x15   :  { %467 = vmatpush3.bf16.msra.mxu1 %v499_v19  ;;  %446 = vmatprep.subr.bf16.mxu0 %v500_v20 }
  0x16   :  { %468 = vmatprep.subr.bf16.mxu1 %v501_v21 }
  0x18   :  { %447 = vmatpush3.bf16.msra.mxu0 %v502_v22 }
  0x19   :  { %469 = vmatpush3.bf16.msra.mxu1 %v503_v23  ;;  %448 = vmatprep.subr.bf16.mxu0 %v504_v24 }
  0x1a   :  { %470 = vmatprep.subr.bf16.mxu1 %v505_v25 }
  0x1c   :  { %449 = vmatpush3.bf16.msra.mxu0 %v506_v26 }
  0x1d   :  { %471 = vmatpush3.bf16.msra.mxu1 %v507_v27  ;;  %450 = vmatprep.subr.bf16.mxu0 %v508_v28 }
  0x1e   :  { %472 = vmatprep.subr.bf16.mxu1 %v509_v29 }
  0x20   :  { %451 = vmatpush3.bf16.msra.mxu0 %v510_v30 }
  0x21   :  { %473 = vmatpush3.bf16.msra.mxu1 %v511_v31 }
  0x23   :  { %333 = vmatmul.mubr.bf16.vlgmr.msra.gmra.mrb[0].mxu0 %v399_v38 }
  0x24   :  { %373 = vmatmul.mubr.bf16.vlgmr.msra.gmra.mrb[0].mxu1 %v401_v40 }
  0xf6   :  { %v452_v42 = vpop.f32.mrb[0].mxu0 }
  0xf7   :  { %v474_v43 = vpop.f32.mrb[0].mxu1  ;;  %v453_v44 = vpop.f32.mrb[1].mxu0 }
  0xf8   :  { %v475_v45 = vpop.f32.mrb[1].mxu1  ;;  %v454_v46 = vadd.f32 %v453_v44, %v452_v42  ;;  %v455_v48 = vpop.f32.mrb[2].mxu0 }
  0xf9   :  { %v476_v47 = vadd.f32 %v475_v45, %v474_v43  ;;  %v477_v49 = vpop.f32.mrb[2].mxu1  ;;  %v456_v51 = vpop.f32.mrb[3].mxu0 }
  0xfa   :  { %v478_v52 = vpop.f32.mrb[3].mxu1 }
  0xfb   :  { %v375_v53 = vadd.f32 %v476_v47, %v454_v46 }
  0xfd   :  { %v393_v54 = vadd.f32 %v435_v50, %v375_v53 }
  0xff   :  { %394 = vst [vmem:[%s643_s3] sm:$0xff] %v393_v54 }

// kernel: _lambda_.50
= control target key start
LH: loop header
LB: loop body
LE: loop exit
PB: predicated region body
PF: predicated region fallthrough
CT: control target
= control target key end

     0   :  { %v293_v6 = vmov 1966171168   ;;  %v59_v8 = vlaneseq  ;;  %v294_v18 = vmov 0   ;;  %v295_v29 = vmov 0.0   ;;  %s373_s1 = inlined_call_operand.vmem [shape: bf16[256,128], index: 1, kind: input, shape index: {}]   ;;  %s374_s0 = inlined_call_operand.vmem [shape: bf16[2,256], index: 0, kind: input, shape index: {}]   ;;  %s375_s2 = inlined_call_operand.vmem [shape: f32[1,128], index: 2, kind: input, shape index: {}]   ;;  %s376_s3 = inlined_call_operand.vmem [shape: f32[2,128], index: 3, kind: output, shape index: {}]  }
   0x1   :  { %v277_v0 = vld [vmem:[%s373_s1 + $0x40] sm:$0xff]   ;;  %v279_v2 = vld [vmem:[%s373_s1 + $0x48] sm:$0xff]   ;;  %v281_v4 = vld [vmem:[%s373_s1 + $0x50] sm:$0xff]   ;;  %v57_v7 = vunpack.c.l.s4 %v293_v6  ;;  %19 = vst [vmem:[#allocation2] sm:$0x3] %v295_v29 }
   0x2   :  { %v278_v1 = vld [vmem:[%s373_s1] sm:$0xff]   ;;  %252 = vmatprep.subr.bf16.mxu0 %v277_v0  ;;  %v280_v3 = vld [vmem:[%s373_s1 + $0x8] sm:$0xff]   ;;  %v282_v5 = vld [vmem:[%s373_s1 + $0x10] sm:$0xff]   ;;  %v60_v12 = vshrl.u32 %v59_v8, 7 }
   0x3   :  { %253 = vmatpush3.bf16.msra.mxu0 %v278_v1  ;;  %v283_v9 = vld [vmem:[%s373_s1 + $0x58] sm:$0xff]   ;;  %v58_v11 = vunpack.c.0.s8 %v57_v7  ;;  %v285_v13 = vld [vmem:[%s373_s1 + $0x60] sm:$0xff]   ;;  %v287_v16 = vld [vmem:[%s373_s1 + $0x68] sm:$0xff]  }
   0x4   :  { %254 = vmatprep.subr.bf16.mxu0 %v279_v2  ;;  %v284_v10 = vld [vmem:[%s373_s1 + $0x18] sm:$0xff]   ;;  %v286_v14 = vld [vmem:[%s373_s1 + $0x20] sm:$0xff]   ;;  %v288_v20 = vld [vmem:[%s373_s1 + $0x28] sm:$0xff]  }
   0x5   :  { %v61_v15 = vsub.s32 %v58_v11, %v60_v12  ;;  %v20_v17 = vld [vmem:[%s374_s0] sm:$0x3]  ;;  %v289_v22 = vld [vmem:[%s373_s1 + $0x70] sm:$0xff]   ;;  %v291_v26 = vld [vmem:[%s373_s1 + $0x78] sm:$0xff]  }
   0x6   :  { %v21_v19 = vmax.bf16 %v294_v18, %v20_v17  ;;  %v290_v24 = vld [vmem:[%s373_s1 + $0x30] sm:$0xff]   ;;  %v292_v27 = vld [vmem:[%s373_s1 + $0x38] sm:$0xff]   ;;  %v251_v37 = vld [vmem:[%s375_s2] ss:$0 sm:$0xff] }
   0x7   :  { %255 = vmatpush3.bf16.msra.mxu0 %v280_v3 }
   0x8   :  { %256 = vmatprep.subr.bf16.mxu0 %v281_v4  ;;  %v62_v21 = vrot.slane %v21_v19, %v61_v15  ;;  %v22_v31 = vld [vmem:[#allocation2] sm:$0x3] }
   0xa   :  { %v63_v23 = vcombine.high %v62_v21, %v62_v21  ;;  %v70_v28 = vrot.slane %v62_v21, %v61_v15 }
   0xb   :  { %257 = vmatpush3.bf16.msra.mxu0 %v282_v5 }
   0xc   :  { %258 = vmatprep.subr.bf16.mxu0 %v283_v9  ;;  %v77_v25 = vrot.slane %v63_v23, %v61_v15 }
   0xe   :  { %208 = vmatprep.mubr.bf16.mxu0 %v77_v25 }
   0xf   :  { %259 = vmatpush3.bf16.msra.mxu0 %v284_v10 }
  0x10   :  { %260 = vmatprep.subr.bf16.mxu0 %v285_v13 }
  0x13   :  { %261 = vmatpush3.bf16.msra.mxu0 %v286_v14 }
  0x14   :  { %262 = vmatprep.subr.bf16.mxu0 %v287_v16 }
  0x17   :  { %263 = vmatpush3.bf16.msra.mxu0 %v288_v20 }
  0x18   :  { %264 = vmatprep.subr.bf16.mxu0 %v289_v22 }
  0x1b   :  { %265 = vmatpush3.bf16.msra.mxu0 %v290_v24 }
  0x1c   :  { %266 = vmatprep.subr.bf16.mxu0 %v291_v26 }
  0x1f   :  { %267 = vmatpush3.bf16.msra.mxu0 %v292_v27 }
  0x22   :  { %209 = vmatmul.mubr.bf16.vlgmr.msra.gmra.mrb[0].mxu0 %v70_v28 }
  0xf5   :  { %v268_v30 = vpop.f32.mrb[0].mxu0 }
  0xf6   :  { %v269_v32 = vpop.f32.mrb[1].mxu0 }
  0xf7   :  { %v270_v33 = vadd.f32 %v269_v32, %v268_v30  ;;  %v271_v34 = vpop.f32.mrb[2].mxu0 }
  0xf8   :  { %v272_v35 = vpop.f32.mrb[3].mxu0 }
  0xf9   :  { %v216_v36 = vadd.f32 %v270_v33, %v22_v31 }
  0xfb   :  { %217 = vst [vmem:[#allocation2] sm:$0x3] %v216_v36 }
 0x102   :  { %v221_v38 = vld [vmem:[#allocation2] sm:$0x3] }
 0x103   :  { %v229_v39 = vadd.f32 %v251_v37, %v221_v38 }
 0x105   :  { %230 = vst [vmem:[%s376_s3] sm:$0x3] %v229_v39 }

// kernel: _lambda_.62
= control target key start
LH: loop header
LB: loop body
LE: loop exit
PB: predicated region body
PF: predicated region fallthrough
CT: control target
= control target key end

     0   :  { %v348_v14 = vmov 0   ;;  %s444_s1 = inlined_call_operand.vmem [shape: bf16[256,128], index: 1, kind: input, shape index: {}]   ;;  %s445_s0 = inlined_call_operand.vmem [shape: bf16[32,256], index: 0, kind: input, shape index: {}]   ;;  %s446_s2 = inlined_call_operand.vmem [shape: f32[1,128], index: 2, kind: input, shape index: {}]   ;;  %s447_s3 = inlined_call_operand.vmem [shape: f32[32,128], index: 3, kind: output, shape index: {}]  }
   0x1   :  { %v332_v0 = vld [vmem:[%s444_s1 + $0x40] sm:$0xff]   ;;  %v334_v2 = vld [vmem:[%s444_s1 + $0x48] sm:$0xff]   ;;  %v336_v4 = vld [vmem:[%s444_s1 + $0x50] sm:$0xff]  }
   0x2   :  { %v333_v1 = vld [vmem:[%s444_s1] sm:$0xff]   ;;  %287 = vmatprep.subr.bf16.mxu0 %v332_v0  ;;  %315 = vmatprep.subr.bf16.mxu1 %v332_v0  ;;  %v335_v3 = vld [vmem:[%s444_s1 + $0x8] sm:$0xff]   ;;  %v337_v5 = vld [vmem:[%s444_s1 + $0x10] sm:$0xff]  }
   0x3   :  { %288 = vmatpush3.bf16.msra.mxu0 %v333_v1  ;;  %323 = vmatpush3.bf16.msra.mxu1 %v333_v1  ;;  %v338_v6 = vld [vmem:[%s444_s1 + $0x58] sm:$0xff]   ;;  %v340_v8 = vld [vmem:[%s444_s1 + $0x60] sm:$0xff]   ;;  %v342_v10 = vld [vmem:[%s444_s1 + $0x68] sm:$0xff]  }
   0x4   :  { %289 = vmatprep.subr.bf16.mxu0 %v334_v2  ;;  %316 = vmatprep.subr.bf16.mxu1 %v334_v2  ;;  %v339_v7 = vld [vmem:[%s444_s1 + $0x18] sm:$0xff]   ;;  %v341_v9 = vld [vmem:[%s444_s1 + $0x20] sm:$0xff]   ;;  %v24_v12 = vld [vmem:[%s445_s0 + $0x8] sm:$0xff] }
   0x5   :  { %v23_v11 = vld [vmem:[%s445_s0] sm:$0xff]  ;;  %v25_v13 = vld [vmem:[%s445_s0 + $0x10] sm:$0xff]  ;;  %v28_v16 = vmax.bf16 %v348_v14, %v24_v12  ;;  %v26_v17 = vld [vmem:[%s445_s0 + $0x18] sm:$0xff] }
   0x6   :  { %v27_v15 = vmax.bf16 %v348_v14, %v23_v11  ;;  %v29_v18 = vmax.bf16 %v348_v14, %v25_v13  ;;  %v30_v19 = vmax.bf16 %v348_v14, %v26_v17  ;;  %v343_v20 = vld [vmem:[%s444_s1 + $0x28] sm:$0xff]   ;;  %v344_v22 = vld [vmem:[%s444_s1 + $0x70] sm:$0xff]   ;;  %v346_v25 = vld [vmem:[%s444_s1 + $0x78] sm:$0xff]  }
   0x7   :  { %290 = vmatpush3.bf16.msra.mxu0 %v335_v3  ;;  %324 = vmatpush3.bf16.msra.mxu1 %v335_v3  ;;  %v345_v24 = vld [vmem:[%s444_s1 + $0x30] sm:$0xff]   ;;  %v347_v26 = vld [vmem:[%s444_s1 + $0x38] sm:$0xff]   ;;  %v286_v32 = vld [vmem:[%s446_s2] ss:$0 sm:$0xff] }
   0x8   :  { %291 = vmatprep.subr.bf16.mxu0 %v336_v4  ;;  %317 = vmatprep.subr.bf16.mxu1 %v336_v4  ;;  %v267_v21 = vcombine.high %v27_v15, %v28_v16  ;;  %v269_v23 = vcombine.high %v29_v18, %v30_v19  ;;  %v266_v27 = vcombine.low %v27_v15, %v28_v16 }
   0x9   :  { %v268_v28 = vcombine.low %v29_v18, %v30_v19 }
   0xa   :  { %215 = vmatprep.mubr.bf16.mxu0 %v267_v21  ;;  %223 = vmatprep.mubr.bf16.mxu1 %v269_v23 }
   0xb   :  { %292 = vmatpush3.bf16.msra.mxu0 %v337_v5  ;;  %325 = vmatpush3.bf16.msra.mxu1 %v337_v5 }
   0xc   :  { %293 = vmatprep.subr.bf16.mxu0 %v338_v6  ;;  %318 = vmatprep.subr.bf16.mxu1 %v338_v6 }
   0xf   :  { %294 = vmatpush3.bf16.msra.mxu0 %v339_v7  ;;  %326 = vmatpush3.bf16.msra.mxu1 %v339_v7 }
  0x10   :  { %295 = vmatprep.subr.bf16.mxu0 %v340_v8  ;;  %319 = vmatprep.subr.bf16.mxu1 %v340_v8 }
  0x13   :  { %296 = vmatpush3.bf16.msra.mxu0 %v341_v9  ;;  %327 = vmatpush3.bf16.msra.mxu1 %v341_v9 }
  0x14   :  { %297 = vmatprep.subr.bf16.mxu0 %v342_v10  ;;  %320 = vmatprep.subr.bf16.mxu1 %v342_v10 }
  0x17   :  { %298 = vmatpush3.bf16.msra.mxu0 %v343_v20  ;;  %328 = vmatpush3.bf16.msra.mxu1 %v343_v20 }
  0x18   :  { %299 = vmatprep.subr.bf16.mxu0 %v344_v22  ;;  %321 = vmatprep.subr.bf16.mxu1 %v344_v22 }
  0x1b   :  { %300 = vmatpush3.bf16.msra.mxu0 %v345_v24  ;;  %329 = vmatpush3.bf16.msra.mxu1 %v345_v24 }
  0x1c   :  { %301 = vmatprep.subr.bf16.mxu0 %v346_v25  ;;  %322 = vmatprep.subr.bf16.mxu1 %v346_v25 }
  0x1f   :  { %302 = vmatpush3.bf16.msra.mxu0 %v347_v26  ;;  %330 = vmatpush3.bf16.msra.mxu1 %v347_v26 }
  0x22   :  { %216 = vmatmul.mubr.bf16.vlgmr.msra.gmra.mrb[0].mxu0 %v266_v27  ;;  %224 = vmatmul.mubr.bf16.vlgmr.msra.gmra.mrb[0].mxu1 %v268_v28 }
  0xf5   :  { %v303_v29 = vpop.f32.mrb[0].mxu0  ;;  %v309_v30 = vpop.f32.mrb[0].mxu1 }
  0xf6   :  { %v304_v31 = vpop.f32.mrb[1].mxu0  ;;  %v310_v33 = vpop.f32.mrb[1].mxu1 }
  0xf7   :  { %v305_v34 = vadd.f32 %v304_v31, %v303_v29  ;;  %v311_v35 = vadd.f32 %v310_v33, %v309_v30  ;;  %v306_v36 = vpop.f32.mrb[2].mxu0  ;;  %v312_v37 = vpop.f32.mrb[2].mxu1 }
  0xf8   :  { %v307_v38 = vpop.f32.mrb[3].mxu0  ;;  %v313_v39 = vpop.f32.mrb[3].mxu1 }
  0xf9   :  { %v254_v40 = vadd.f32 %v305_v34, %v286_v32  ;;  %v256_v41 = vadd.f32 %v311_v35, %v286_v32  ;;  %v308_v42 = vadd.f32 %v307_v38, %v306_v36  ;;  %v314_v43 = vadd.f32 %v313_v39, %v312_v37 }
  0xfb   :  { %258 = vst [vmem:[%s447_s3] sm:$0xff] %v254_v40  ;;  %260 = vst [vmem:[%s447_s3 + $0x10] sm:$0xff] %v256_v41  ;;  %v255_v44 = vadd.f32 %v308_v42, %v286_v32  ;;  %v257_v45 = vadd.f32 %v314_v43, %v286_v32 }
  0xfd   :  { %259 = vst [vmem:[%s447_s3 + $0x8] sm:$0xff] %v255_v44  ;;  %261 = vst [vmem:[%s447_s3 + $0x18] sm:$0xff] %v257_v45 }

// kernel: _lambda_.56
= control target key start
LH: loop header
LB: loop body
LE: loop exit
PB: predicated region body
PF: predicated region fallthrough
CT: control target
= control target key end

     0   :  { %v508_v34 = vmov 0   ;;  %s637_s1 = inlined_call_operand.vmem [shape: bf16[512,128], index: 1, kind: input, shape index: {}]   ;;  %s638_s0 = inlined_call_operand.vmem [shape: bf16[8,512], index: 0, kind: input, shape index: {}]   ;;  %s639_s2 = inlined_call_operand.vmem [shape: f32[1,128], index: 2, kind: input, shape index: {}]   ;;  %s640_s3 = inlined_call_operand.vmem [shape: f32[8,128], index: 3, kind: output, shape index: {}]  }
   0x1   :  { %v476_v0 = vld [vmem:[%s637_s1 + $0x40] sm:$0xff]   ;;  %v480_v4 = vld [vmem:[%s637_s1 + $0x48] sm:$0xff]   ;;  %v484_v8 = vld [vmem:[%s637_s1 + $0x50] sm:$0xff]  }
   0x2   :  { %v477_v1 = vld [vmem:[%s637_s1 + $0xc0] sm:$0xff]   ;;  %431 = vmatprep.subr.bf16.mxu0 %v476_v0  ;;  %v481_v5 = vld [vmem:[%s637_s1 + $0xc8] sm:$0xff]   ;;  %v485_v9 = vld [vmem:[%s637_s1 + $0xd0] sm:$0xff]  }
   0x3   :  { %v478_v2 = vld [vmem:[%s637_s1] sm:$0xff]   ;;  %453 = vmatprep.subr.bf16.mxu1 %v477_v1  ;;  %v482_v6 = vld [vmem:[%s637_s1 + $0x8] sm:$0xff]   ;;  %v486_v10 = vld [vmem:[%s637_s1 + $0x10] sm:$0xff]  }
   0x4   :  { %v479_v3 = vld [vmem:[%s637_s1 + $0x80] sm:$0xff]   ;;  %432 = vmatpush3.bf16.msra.mxu0 %v478_v2  ;;  %v483_v7 = vld [vmem:[%s637_s1 + $0x88] sm:$0xff]   ;;  %v487_v11 = vld [vmem:[%s637_s1 + $0x90] sm:$0xff]  }
   0x5   :  { %454 = vmatpush3.bf16.msra.mxu1 %v479_v3  ;;  %433 = vmatprep.subr.bf16.mxu0 %v480_v4  ;;  %v488_v12 = vld [vmem:[%s637_s1 + $0x58] sm:$0xff]   ;;  %v492_v16 = vld [vmem:[%s637_s1 + $0x60] sm:$0xff]   ;;  %v496_v20 = vld [vmem:[%s637_s1 + $0x68] sm:$0xff]  }
   0x6   :  { %455 = vmatprep.subr.bf16.mxu1 %v481_v5  ;;  %v489_v13 = vld [vmem:[%s637_s1 + $0xd8] sm:$0xff]   ;;  %v493_v17 = vld [vmem:[%s637_s1 + $0xe0] sm:$0xff]   ;;  %v497_v21 = vld [vmem:[%s637_s1 + $0xe8] sm:$0xff]  }
   0x7   :  { %v490_v14 = vld [vmem:[%s637_s1 + $0x18] sm:$0xff]   ;;  %v494_v18 = vld [vmem:[%s637_s1 + $0x20] sm:$0xff]   ;;  %v498_v22 = vld [vmem:[%s637_s1 + $0x28] sm:$0xff]  }
   0x8   :  { %434 = vmatpush3.bf16.msra.mxu0 %v482_v6  ;;  %v491_v15 = vld [vmem:[%s637_s1 + $0x98] sm:$0xff]   ;;  %v495_v19 = vld [vmem:[%s637_s1 + $0xa0] sm:$0xff]   ;;  %v499_v23 = vld [vmem:[%s637_s1 + $0xa8] sm:$0xff]  }
   0x9   :  { %456 = vmatpush3.bf16.msra.mxu1 %v483_v7  ;;  %435 = vmatprep.subr.bf16.mxu0 %v484_v8  ;;  %v500_v24 = vld [vmem:[%s637_s1 + $0x70] sm:$0xff]   ;;  %v504_v28 = vld [vmem:[%s637_s1 + $0x78] sm:$0xff]   ;;  %v20_v32 = vld [vmem:[%s638_s0] sm:$0xff] }
   0xa   :  { %457 = vmatprep.subr.bf16.mxu1 %v485_v9  ;;  %v501_v25 = vld [vmem:[%s637_s1 + $0xf0] sm:$0xff]   ;;  %v505_v29 = vld [vmem:[%s637_s1 + $0xf8] sm:$0xff]   ;;  %v21_v33 = vld [vmem:[%s638_s0 + $0x8] sm:$0xff]  ;;  %v22_v35 = vmax.bf16 %v508_v34, %v20_v32 }
   0xb   :  { %v502_v26 = vld [vmem:[%s637_s1 + $0x30] sm:$0xff]   ;;  %v506_v30 = vld [vmem:[%s637_s1 + $0x38] sm:$0xff]   ;;  %v23_v36 = vmax.bf16 %v508_v34, %v21_v33  ;;  %v430_v49 = vld [vmem:[%s639_s2] ss:$0 sm:$0xff] }
   0xc   :  { %436 = vmatpush3.bf16.msra.mxu0 %v486_v10  ;;  %v503_v27 = vld [vmem:[%s637_s1 + $0xb0] sm:$0xff]   ;;  %v507_v31 = vld [vmem:[%s637_s1 + $0xb8] sm:$0xff]   ;;  %v395_v37 = vcombine.high %v22_v35, %v22_v35  ;;  %v394_v39 = vcombine.low %v22_v35, %v22_v35 }
   0xd   :  { %458 = vmatpush3.bf16.msra.mxu1 %v487_v11  ;;  %437 = vmatprep.subr.bf16.mxu0 %v488_v12  ;;  %v397_v38 = vcombine.high %v23_v36, %v23_v36  ;;  %v396_v40 = vcombine.low %v23_v36, %v23_v36 }
   0xe   :  { %459 = vmatprep.subr.bf16.mxu1 %v489_v13  ;;  %327 = vmatprep.mubr.bf16.mxu0 %v395_v37 }
   0xf   :  { %367 = vmatprep.mubr.bf16.mxu1 %v397_v38 }
  0x10   :  { %438 = vmatpush3.bf16.msra.mxu0 %v490_v14 }
  0x11   :  { %460 = vmatpush3.bf16.msra.mxu1 %v491_v15  ;;  %439 = vmatprep.subr.bf16.mxu0 %v492_v16 }
  0x12   :  { %461 = vmatprep.subr.bf16.mxu1 %v493_v17 }
  0x14   :  { %440 = vmatpush3.bf16.msra.mxu0 %v494_v18 }
  0x15   :  { %462 = vmatpush3.bf16.msra.mxu1 %v495_v19  ;;  %441 = vmatprep.subr.bf16.mxu0 %v496_v20 }
  0x16   :  { %463 = vmatprep.subr.bf16.mxu1 %v497_v21 }
  0x18   :  { %442 = vmatpush3.bf16.msra.mxu0 %v498_v22 }
  0x19   :  { %464 = vmatpush3.bf16.msra.mxu1 %v499_v23  ;;  %443 = vmatprep.subr.bf16.mxu0 %v500_v24 }
  0x1a   :  { %465 = vmatprep.subr.bf16.mxu1 %v501_v25 }
  0x1c   :  { %444 = vmatpush3.bf16.msra.mxu0 %v502_v26 }
  0x1d   :  { %466 = vmatpush3.bf16.msra.mxu1 %v503_v27  ;;  %445 = vmatprep.subr.bf16.mxu0 %v504_v28 }
  0x1e   :  { %467 = vmatprep.subr.bf16.mxu1 %v505_v29 }
  0x20   :  { %446 = vmatpush3.bf16.msra.mxu0 %v506_v30 }
  0x21   :  { %468 = vmatpush3.bf16.msra.mxu1 %v507_v31 }
  0x23   :  { %328 = vmatmul.mubr.bf16.vlgmr.msra.gmra.mrb[0].mxu0 %v394_v39 }
  0x24   :  { %368 = vmatmul.mubr.bf16.vlgmr.msra.gmra.mrb[0].mxu1 %v396_v40 }
  0xf6   :  { %v447_v41 = vpop.f32.mrb[0].mxu0 }
  0xf7   :  { %v469_v42 = vpop.f32.mrb[0].mxu1  ;;  %v448_v43 = vpop.f32.mrb[1].mxu0 }
  0xf8   :  { %v470_v44 = vpop.f32.mrb[1].mxu1  ;;  %v449_v45 = vadd.f32 %v448_v43, %v447_v41  ;;  %v450_v47 = vpop.f32.mrb[2].mxu0 }
  0xf9   :  { %v471_v46 = vadd.f32 %v470_v44, %v469_v42  ;;  %v472_v48 = vpop.f32.mrb[2].mxu1  ;;  %v451_v50 = vpop.f32.mrb[3].mxu0 }
  0xfa   :  { %v473_v51 = vpop.f32.mrb[3].mxu1 }
  0xfb   :  { %v370_v52 = vadd.f32 %v471_v46, %v449_v45 }
  0xfd   :  { %v388_v53 = vadd.f32 %v430_v49, %v370_v52 }
  0xff   :  { %389 = vst [vmem:[%s640_s3] sm:$0xff] %v388_v53 }

// kernel: _lambda_.72
= control target key start
LH: loop header
LB: loop body
LE: loop exit
PB: predicated region body
PF: predicated region fallthrough
CT: control target
= control target key end

     0   :  { %vm14_vm0 = vcmask 57344   ;;  %vm82_vm1 = vcmask 64512   ;;  %v428_v0 = vmov 0.0   ;;  %s1318_s0 = inlined_call_operand.vmem [shape: f32[512,8], index: 0, kind: input, shape index: {}]   ;;  %s1319_s1 = inlined_call_operand.vmem [shape: f32[1,8], index: 1, kind: output, shape index: {0}]   ;;  %s1320_s2 = inlined_call_operand.vmem [shape: f32[1,8], index: 2, kind: output, shape index: {1}]  }
   0x1   :  { %15 = vst.msk [vmem:[%s1319_s1] sm:$0x1] %vm14_vm0, %v428_v0  ;;  %16 = vst.msk [vmem:[%s1320_s2] sm:$0x1] %vm14_vm0, %v428_v0  ;;  %v455_v1 = vld [vmem:[%s1318_s0] sm:$0xff]  ;;  %v460_v2 = vld [vmem:[%s1318_s0 + $0x8] sm:$0xff] }
   0x2   :  { %v465_v3 = vld [vmem:[%s1318_s0 + $0x10] sm:$0xff]  ;;  %v83_v4 = vsel %vm82_vm1, %v455_v1, 0.0  ;;  %v84_v5 = vsel %vm82_vm1, %v460_v2, 0.0  ;;  %v476_v7 = vld [vmem:[%s1318_s0 + $0x18] sm:$0xff]  ;;  %v483_v10 = vld [vmem:[%s1318_s0 + $0x20] sm:$0xff] }
   0x3   :  { %v86_v6 = vsel %vm82_vm1, %v465_v3, 0.0  ;;  %v85_v8 = vadd.f32 %v84_v5, %v83_v4  ;;  %v88_v9 = vsel %vm82_vm1, %v476_v7, 0.0  ;;  %v90_v12 = vsel %vm82_vm1, %v483_v10, 0.0  ;;  %v490_v13 = vld [vmem:[%s1318_s0 + $0x28] sm:$0xff]  ;;  %v497_v16 = vld [vmem:[%s1318_s0 + $0x30] sm:$0xff]  ;;  %v502_v18 = vld [vmem:[%s1318_s0 + $0x38] sm:$0xff] }
   0x4   :  { %v92_v15 = vsel %vm82_vm1, %v490_v13, 0.0  ;;  %v507_v19 = vld [vmem:[%s1318_s0 + $0x40] sm:$0xff]  ;;  %v94_v20 = vsel %vm82_vm1, %v497_v16, 0.0  ;;  %v514_v21 = vld [vmem:[%s1318_s0 + $0x48] sm:$0xff]  ;;  %v519_v22 = vld [vmem:[%s1318_s0 + $0x50] sm:$0xff]  ;;  %v96_v25 = vsel %vm82_vm1, %v502_v18, 0.0 }
   0x5   :  { %v87_v11 = vadd.f32 %v86_v6, %v85_v8  ;;  %v524_v23 = vld [vmem:[%s1318_s0 + $0x58] sm:$0xff]  ;;  %v98_v26 = vsel %vm82_vm1, %v507_v19, 0.0  ;;  %v533_v27 = vld [vmem:[%s1318_s0 + $0x108] sm:$0xff]  ;;  %v538_v28 = vld [vmem:[%s1318_s0 + $0x110] sm:$0xff]  ;;  %v100_v30 = vsel %vm82_vm1, %v514_v21, 0.0  ;;  %v102_v31 = vsel %vm82_vm1, %v519_v22, 0.0 }
   0x6   :  { %v543_v29 = vld [vmem:[%s1318_s0 + $0x118] sm:$0xff]  ;;  %v551_v32 = vsel %vm82_vm1, %v524_v23, 0.0  ;;  %v556_v33 = vld [vmem:[%s1318_s0 + $0x120] sm:$0xff]  ;;  %v561_v34 = vld [vmem:[%s1318_s0 + $0x128] sm:$0xff]  ;;  %v570_v37 = vsel %vm82_vm1, %v533_v27, 0.0  ;;  %v574_v38 = vsel %vm82_vm1, %v538_v28, 0.0 }
   0x7   :  { %v89_v14 = vadd.f32 %v88_v9, %v87_v11  ;;  %v566_v35 = vld [vmem:[%s1318_s0 + $0x130] sm:$0xff]  ;;  %1339 = vst [vmem:[#allocation2_spill] sm:$0xff] %v570_v37  ;;  %1340 = vst [vmem:[#allocation3_spill] sm:$0xff] %v574_v38  ;;  %v578_v39 = vsel %vm82_vm1, %v543_v29, 0.0  ;;  %v583_v40 = vld [vmem:[%s1318_s0 + $0x138] sm:$0xff]  ;;  %v597_v43 = vsel %vm82_vm1, %v556_v33, 0.0  ;;  %v222_v37 = vmul.f32 %v465_v3, %v465_v3 }
   0x8   :  { %1341 = vst [vmem:[#allocation4_spill] sm:$0xff] %v578_v39  ;;  %v588_v41 = vld [vmem:[%s1318_s0 + $0x140] sm:$0xff]  ;;  %v593_v42 = vld [vmem:[%s1318_s0 + $0x148] sm:$0xff]  ;;  %1342 = vst [vmem:[#allocation5_spill] sm:$0xff] %v597_v43  ;;  %v601_v44 = vsel %vm82_vm1, %v561_v34, 0.0  ;;  %v605_v45 = vsel %vm82_vm1, %v566_v35, 0.0 }
   0x9   :  { %v91_v17 = vadd.f32 %v90_v12, %v89_v14  ;;  %1343 = vst [vmem:[#allocation6_spill] sm:$0xff] %v601_v44  ;;  %1344 = vst [vmem:[#allocation7_spill] sm:$0xff] %v605_v45  ;;  %v610_v46 = vld [vmem:[%s1318_s0 + $0x150] sm:$0xff]  ;;  %v615_v47 = vld [vmem:[%s1318_s0 + $0x158] sm:$0xff]  ;;  %v624_v50 = vsel %vm82_vm1, %v583_v40, 0.0  ;;  %v628_v51 = vsel %vm82_vm1, %v588_v41, 0.0 }
   0xa   :  { %v620_v48 = vld [vmem:[%s1318_s0 + $0x160] sm:$0xff]  ;;  %1345 = vst [vmem:[#allocation8_spill] sm:$0xff] %v624_v50  ;;  %1346 = vst [vmem:[#allocation9_spill] sm:$0xff] %v628_v51  ;;  %v632_v52 = vsel %vm82_vm1, %v593_v42, 0.0  ;;  %v637_v53 = vld [vmem:[%s1318_s0 + $0x168] sm:$0xff]  ;;  %v651_v56 = vsel %vm82_vm1, %v610_v46, 0.0 }
   0xb   :  { %v93_v24 = vadd.f32 %v92_v15, %v91_v17  ;;  %1347 = vst [vmem:[#allocation10_spill] sm:$0xff] %v632_v52  ;;  %v642_v54 = vld [vmem:[%s1318_s0 + $0x170] sm:$0xff]  ;;  %v647_v55 = vld [vmem:[%s1318_s0 + $0x178] sm:$0xff]  ;;  %1348 = vst [vmem:[#allocation11_spill] sm:$0xff] %v651_v56  ;;  %v655_v57 = vsel %vm82_vm1, %v615_v47, 0.0  ;;  %v659_v58 = vsel %vm82_vm1, %v620_v48, 0.0 }
   0xc   :  { %1349 = vst [vmem:[#allocation12_spill] sm:$0xff] %v655_v57  ;;  %1350 = vst [vmem:[#allocation13_spill] sm:$0xff] %v659_v58  ;;  %v664_v59 = vld [vmem:[%s1318_s0 + $0x180] sm:$0xff]  ;;  %v669_v60 = vld [vmem:[%s1318_s0 + $0x188] sm:$0xff]  ;;  %v678_v63 = vsel %vm82_vm1, %v637_v53, 0.0  ;;  %v682_v0 = vsel %vm82_vm1, %v642_v54, 0.0 }
   0xd   :  { %v95_v36 = vadd.f32 %v94_v20, %v93_v24  ;;  %v674_v61 = vld [vmem:[%s1318_s0 + $0x190] sm:$0xff]  ;;  %1351 = vst [vmem:[#allocation14_spill] sm:$0xff] %v678_v63  ;;  %1352 = vst [vmem:[#allocation15_spill] sm:$0xff] %v682_v0  ;;  %v686_v4 = vsel %vm82_vm1, %v647_v55, 0.0  ;;  %v691_v5 = vld [vmem:[%s1318_s0 + $0x198] sm:$0xff]  ;;  %v705_v9 = vsel %vm82_vm1, %v664_v59, 0.0 }
   0xe   :  { %1353 = vst [vmem:[#allocation16_spill] sm:$0xff] %v686_v4  ;;  %v696_v6 = vld [vmem:[%s1318_s0 + $0x1a0] sm:$0xff]  ;;  %v701_v8 = vld [vmem:[%s1318_s0 + $0x1a8] sm:$0xff]  ;;  %1354 = vst [vmem:[#allocation17_spill] sm:$0xff] %v705_v9  ;;  %v709_v11 = vsel %vm82_vm1, %v669_v60, 0.0  ;;  %v713_v12 = vsel %vm82_vm1, %v674_v61, 0.0 }
   0xf   :  { %v97_v49 = vadd.f32 %v96_v25, %v95_v36  ;;  %1355 = vst [vmem:[#allocation18_spill] sm:$0xff] %v709_v11  ;;  %1356 = vst [vmem:[#allocation19_spill] sm:$0xff] %v713_v12  ;;  %v718_v14 = vld [vmem:[%s1318_s0 + $0x60] sm:$0xff]  ;;  %v723_v15 = vld [vmem:[%s1318_s0 + $0x1b0] sm:$0xff]  ;;  %v737_v25 = vsel %vm82_vm1, %v691_v5, 0.0  ;;  %v745_v36 = vsel %vm82_vm1, %v701_v8, 0.0 }
  0x10   :  { %v728_v17 = vld [vmem:[%s1318_s0 + $0x1b8] sm:$0xff]  ;;  %v733_v20 = vld [vmem:[%s1318_s0 + $0x1c0] sm:$0xff]  ;;  %1357 = vst [vmem:[#allocation20_spill] sm:$0xff] %v737_v25  ;;  %1359 = vst [vmem:[#allocation22_spill] sm:$0xff] %v745_v36 }
  0x11   :  { %v99_v62 = vadd.f32 %v98_v26, %v97_v49  ;;  %v741_v26 = vsel %vm82_vm1, %v696_v6, 0.0  ;;  %v750_v49 = vld [vmem:[%s1318_s0 + $0x1c8] sm:$0xff]  ;;  %v768_v36 = vsel %vm82_vm1, %v728_v17, 0.0  ;;  %v772_v25 = vsel %vm82_vm1, %v733_v20, 0.0  ;;  %v777_v12 = vld [vmem:[%s1318_s0 + $0x1e0] sm:$0xff]  ;;  %v804_v0 = vld [vmem:[%s1318_s0 + $0x1f8] sm:$0xff] }
  0x12   :  { %1358 = vst [vmem:[#allocation21_spill] sm:$0xff] %v741_v26  ;;  %v764_v26 = vsel %vm82_vm1, %v723_v15, 0.0  ;;  %1361 = vst [vmem:[#allocation24_spill] sm:$0xff] %v768_v36  ;;  %v782_v11 = vld [vmem:[%s1318_s0 + $0x1e8] sm:$0xff]  ;;  %v791_v9 = vsel %vm82_vm1, %v750_v49, 0.0  ;;  %v826_v58 = vsel %vm82_vm1, %v804_v0, 0.0 }
  0x13   :  { %v101_v24 = vadd.f32 %v100_v30, %v99_v62  ;;  %v755_v30 = vld [vmem:[%s1318_s0 + $0x1d0] sm:$0xff]  ;;  %v760_v62 = vld [vmem:[%s1318_s0 + $0x1d8] sm:$0xff]  ;;  %1360 = vst [vmem:[#allocation23_spill] sm:$0xff] %v764_v26  ;;  %1362 = vst [vmem:[#allocation25_spill] sm:$0xff] %v772_v25 }
  0x14   :  { %v787_v26 = vld [vmem:[%s1318_s0 + $0x1f0] sm:$0xff]  ;;  %1364 = vst [vmem:[#allocation27_spill] sm:$0xff] %v791_v9  ;;  %v795_v25 = vsel %vm82_vm1, %v755_v30, 0.0  ;;  %v799_v4 = vsel %vm82_vm1, %v760_v62, 0.0  ;;  %1367 = vst [vmem:[#allocation30_spill] sm:$0xff] %v804_v0  ;;  %v814_v9 = vsel %vm82_vm1, %v782_v11, 0.0 }
  0x15   :  { %1363 = vst [vmem:[#allocation26_spill] sm:$0xff] %v787_v26  ;;  %v103_v36 = vadd.f32 %v102_v31, %v101_v24  ;;  %1365 = vst [vmem:[#allocation28_spill] sm:$0xff] %v795_v25  ;;  %v106_v31 = vsel %vm82_vm1, %v718_v14, 0.0  ;;  %v810_v24 = vsel %vm82_vm1, %v777_v12, 0.0  ;;  %v818_v25 = vsel %vm82_vm1, %v787_v26, 0.0  ;;  %v855_v56 = vld [vmem:[%s1318_s0 + $0x90] sm:$0xff] }
  0x16   :  { %1366 = vst [vmem:[#allocation29_spill] sm:$0xff] %v799_v4  ;;  %1368 = vst [vmem:[#allocation31_spill] sm:$0xff] %v810_v24  ;;  %v30_v4 = vld [vmem:[%s1318_s0 + $0x68] sm:$0xff]  ;;  %v860_v52 = vld [vmem:[%s1318_s0 + $0x98] sm:$0xff] }
  0x17   :  { %1369 = vst [vmem:[#allocation32_spill] sm:$0xff] %v814_v9  ;;  %1370 = vst [vmem:[#allocation33_spill] sm:$0xff] %v818_v25  ;;  %v105_v63 = vadd.f32 %v551_v32, %v103_v36  ;;  %v108_v24 = vsel %vm82_vm1, %v30_v4, 0.0  ;;  %v31_v9 = vld [vmem:[%s1318_s0 + $0x70] sm:$0xff]  ;;  %v835_v25 = vld [vmem:[%s1318_s0 + $0x78] sm:$0xff]  ;;  %v120_v39 = vsel %vm82_vm1, %v860_v52, 0.0 }
  0x18   :  { %1371 = vst [vmem:[#allocation34_spill] sm:$0xff] %v826_v58  ;;  %1372 = vst [vmem:[#allocation35_spill] sm:$0xff] %v835_v25  ;;  %v840_v32 = vld [vmem:[%s1318_s0 + $0x80] sm:$0xff]  ;;  %v845_v36 = vld [vmem:[%s1318_s0 + $0x88] sm:$0xff]  ;;  %v110_v58 = vsel %vm82_vm1, %v31_v9, 0.0 }
  0x19   :  { %v107_v57 = vadd.f32 %v106_v31, %v105_v63  ;;  %1373 = vst [vmem:[#allocation36_spill] sm:$0xff] %v840_v32  ;;  %1374 = vst [vmem:[#allocation37_spill] sm:$0xff] %v845_v36  ;;  %v220_v63 = vmul.f32 %v455_v1, %v455_v1  ;;  %v221_v31 = vmul.f32 %v460_v2, %v460_v2  ;;  %v865_v51 = vld [vmem:[%s1318_s0 + $0xa0] sm:$0xff]  ;;  %v112_v1 = vsel %vm82_vm1, %v835_v25, 0.0  ;;  %v876_v44 = vld [vmem:[%s1318_s0 + $0xa8] sm:$0xff] }
  0x1a   :  { %1375 = vst [vmem:[#allocation38_spill] sm:$0xff] %v855_v56  ;;  %1376 = vst [vmem:[#allocation39_spill] sm:$0xff] %v860_v52  ;;  %v114_v2 = vsel %vm82_vm1, %v840_v32, 0.0  ;;  %v116_v45 = vsel %vm82_vm1, %v845_v36, 0.0  ;;  %v881_v43 = vld [vmem:[%s1318_s0 + $0xb0] sm:$0xff]  ;;  %v122_v38 = vsel %vm82_vm1, %v865_v51, 0.0  ;;  %v223_v25 = vmul.f32 %v476_v7, %v476_v7 }
  0x1b   :  { %1377 = vst [vmem:[#allocation40_spill] sm:$0xff] %v865_v51  ;;  %v109_v50 = vadd.f32 %v108_v24, %v107_v57  ;;  %1378 = vst [vmem:[#allocation41_spill] sm:$0xff] %v876_v44  ;;  %v886_v57 = vld [vmem:[%s1318_s0 + $0xb8] sm:$0xff]  ;;  %v118_v24 = vsel %vm82_vm1, %v855_v56, 0.0  ;;  %v899_v36 = vld [vmem:[%s1318_s0 + $0xc0] sm:$0xff]  ;;  %v124_v51 = vsel %vm82_vm1, %v876_v44, 0.0 }
  0x1c   :  { %1379 = vst [vmem:[#allocation42_spill] sm:$0xff] %v881_v43  ;;  %1380 = vst [vmem:[#allocation43_spill] sm:$0xff] %v886_v57  ;;  %v904_v32 = vld [vmem:[%s1318_s0 + $0xc8] sm:$0xff]  ;;  %v909_v52 = vld [vmem:[%s1318_s0 + $0xd0] sm:$0xff]  ;;  %v915_v3 = vsel %vm82_vm1, %v881_v43, 0.0 }
  0x1d   :  { %1381 = vst [vmem:[#allocation44_spill] sm:$0xff] %v899_v36  ;;  %1382 = vst [vmem:[#allocation45_spill] sm:$0xff] %v904_v32  ;;  %v111_v56 = vadd.f32 %v110_v58, %v109_v50  ;;  %v922_v0 = vld [vmem:[%s1318_s0 + $0xd8] sm:$0xff]  ;;  %v927_v26 = vld [vmem:[%s1318_s0 + $0xe0] sm:$0xff]  ;;  %v931_v50 = vsel %vm82_vm1, %v886_v57, 0.0  ;;  %v935_v58 = vsel %vm82_vm1, %v899_v36, 0.0 }
  0x1e   :  { %1383 = vst [vmem:[#allocation46_spill] sm:$0xff] %v909_v52  ;;  %1384 = vst [vmem:[#allocation47_spill] sm:$0xff] %v922_v0  ;;  %v939_v7 = vsel %vm82_vm1, %v904_v32, 0.0  ;;  %v943_v43 = vsel %vm82_vm1, %v909_v52, 0.0  ;;  %v948_v44 = vld [vmem:[%s1318_s0 + $0xe8] sm:$0xff]  ;;  %v953_v57 = vld [vmem:[%s1318_s0 + $0xf0] sm:$0xff]  ;;  %v224_v52 = vmul.f32 %v483_v10, %v483_v10  ;;  %v228_v10 = vmul.f32 %v507_v19, %v507_v19 }
  0x1f   :  { %1385 = vst [vmem:[#allocation48_spill] sm:$0xff] %v927_v26  ;;  %1386 = vst [vmem:[#allocation49_spill] sm:$0xff] %v935_v58  ;;  %v113_v36 = vadd.f32 %v112_v1, %v111_v56  ;;  %v957_v58 = vsel %vm82_vm1, %v922_v0, 0.0  ;;  %v961_v32 = vsel %vm82_vm1, %v927_v26, 0.0  ;;  %v225_v56 = vmul.f32 %v490_v13, %v490_v13 }
  0x20   :  { %1387 = vst [vmem:[#allocation50_spill] sm:$0xff] %v939_v7  ;;  %1388 = vst [vmem:[#allocation51_spill] sm:$0xff] %v943_v43  ;;  %v967_v43 = vsel %vm82_vm1, %v948_v44, 0.0  ;;  %v971_v7 = vsel %vm82_vm1, %v953_v57, 0.0  ;;  %v226_v1 = vmul.f32 %v497_v16, %v497_v16  ;;  %v227_v26 = vmul.f32 %v502_v18, %v502_v18 }
  0x21   :  { %1389 = vst [vmem:[#allocation52_spill] sm:$0xff] %v948_v44  ;;  %1390 = vst [vmem:[#allocation53_spill] sm:$0xff] %v953_v57  ;;  %v115_v0 = vadd.f32 %v114_v2, %v113_v36  ;;  %v229_v44 = vmul.f32 %v514_v21, %v514_v21  ;;  %v230_v57 = vmul.f32 %v519_v22, %v519_v22 }
  0x22   :  { %1391 = vst [vmem:[#allocation54_spill] sm:$0xff] %v971_v7  ;;  %v231_v7 = vmul.f32 %v524_v23, %v524_v23  ;;  %v232_v13 = vmul.f32 %v718_v14, %v718_v14  ;;  %v989_v16 = vmul.f32 %v30_v4, %v30_v4  ;;  %v991_v2 = vmul.f32 %v31_v9, %v31_v9 }
  0x23   :  { %v117_v36 = vadd.f32 %v116_v45, %v115_v0  ;;  %v253_v18 = vmul.f32 %v533_v27, %v533_v27  ;;  %v254_v19 = vmul.f32 %v538_v28, %v538_v28  ;;  %v255_v21 = vmul.f32 %v543_v29, %v543_v29 }
  0x24   :  { %v256_v22 = vmul.f32 %v556_v33, %v556_v33  ;;  %v257_v23 = vmul.f32 %v561_v34, %v561_v34  ;;  %v258_v45 = vmul.f32 %v566_v35, %v566_v35  ;;  %v259_v4 = vmul.f32 %v583_v40, %v583_v40 }
  0x25   :  { %v119_v0 = vadd.f32 %v118_v24, %v117_v36  ;;  %v260_v27 = vmul.f32 %v588_v41, %v588_v41  ;;  %v261_v28 = vmul.f32 %v593_v42, %v593_v42  ;;  %v262_v29 = vmul.f32 %v610_v46, %v610_v46 }
  0x26   :  { %v263_v33 = vmul.f32 %v615_v47, %v615_v47  ;;  %v284_v34 = vsel %vm82_vm1, %v220_v63, 0.0  ;;  %v285_v35 = vsel %vm82_vm1, %v221_v31, 0.0  ;;  %v264_v40 = vmul.f32 %v620_v48, %v620_v48 }
  0x27   :  { %v121_v9 = vadd.f32 %v120_v39, %v119_v0  ;;  %v286_v14 = vadd.f32 %v285_v35, %v284_v34  ;;  %v287_v41 = vsel %vm82_vm1, %v222_v37, 0.0  ;;  %v265_v42 = vmul.f32 %v637_v53, %v637_v53  ;;  %v1392_v0 = vld [vmem:[#allocation26_spill] sm:$0xff] }
  0x28   :  { %v266_v46 = vmul.f32 %v642_v54, %v642_v54  ;;  %v267_v47 = vmul.f32 %v647_v55, %v647_v55  ;;  %v289_v63 = vsel %vm82_vm1, %v223_v25, 0.0  ;;  %v268_v39 = vmul.f32 %v664_v59, %v664_v59  ;;  %v1393_v34 = vld [vmem:[#allocation30_spill] sm:$0xff] }
  0x29   :  { %v123_v24 = vadd.f32 %v122_v38, %v121_v9  ;;  %v269_v48 = vmul.f32 %v669_v60, %v669_v60  ;;  %v288_v31 = vadd.f32 %v287_v41, %v286_v14  ;;  %v270_v37 = vmul.f32 %v674_v61, %v674_v61  ;;  %v1394_v41 = vld [vmem:[#allocation49_spill] sm:$0xff] }
  0x2a   :  { %v271_v53 = vmul.f32 %v691_v5, %v691_v5  ;;  %v272_v54 = vmul.f32 %v696_v6, %v696_v6  ;;  %v291_v55 = vsel %vm82_vm1, %v224_v52, 0.0  ;;  %v273_v38 = vmul.f32 %v701_v8, %v701_v8 }
  0x2b   :  { %v125_v25 = vadd.f32 %v124_v51, %v123_v24  ;;  %v274_v59 = vmul.f32 %v723_v15, %v723_v15  ;;  %v290_v60 = vadd.f32 %v289_v63, %v288_v31  ;;  %v275_v36 = vmul.f32 %v728_v17, %v728_v17 }
  0x2c   :  { %v276_v61 = vmul.f32 %v733_v20, %v733_v20  ;;  %v277_v5 = vmul.f32 %v750_v49, %v750_v49  ;;  %v293_v6 = vsel %vm82_vm1, %v225_v56, 0.0  ;;  %v278_v52 = vmul.f32 %v755_v30, %v755_v30 }
  0x2d   :  { %v127_v51 = vadd.f32 %v915_v3, %v125_v25  ;;  %v279_v8 = vmul.f32 %v760_v62, %v760_v62  ;;  %v292_v15 = vadd.f32 %v291_v55, %v290_v60  ;;  %v280_v17 = vmul.f32 %v777_v12, %v777_v12  ;;  %v1396_v25 = vld [vmem:[#allocation51_spill] sm:$0xff] }
  0x2e   :  { %v281_v20 = vmul.f32 %v782_v11, %v782_v11  ;;  %v282_v49 = vmul.f32 %v1392_v0, %v1392_v0  ;;  %v295_v56 = vsel %vm82_vm1, %v226_v1, 0.0  ;;  %v283_v30 = vmul.f32 %v1393_v34, %v1393_v34  ;;  %v1398_v34 = vld [vmem:[#allocation54_spill] sm:$0xff] }
  0x2f   :  { %v129_v3 = vadd.f32 %v931_v50, %v127_v51  ;;  %v294_v35 = vadd.f32 %v293_v6, %v292_v15  ;;  %v297_v62 = vsel %vm82_vm1, %v227_v26, 0.0  ;;  %v299_v9 = vsel %vm82_vm1, %v228_v10, 0.0 }
  0x30   :  { %v301_v12 = vsel %vm82_vm1, %v229_v44, 0.0  ;;  %v303_v14 = vsel %vm82_vm1, %v230_v57, 0.0  ;;  %v305_v11 = vsel %vm82_vm1, %v231_v7, 0.0  ;;  %v307_v1 = vsel %vm82_vm1, %v232_v13, 0.0  ;;  %v1395_v7 = vld [vmem:[#allocation50_spill] sm:$0xff] }
  0x31   :  { %v131_v63 = vadd.f32 %v1394_v41, %v129_v3  ;;  %v296_v24 = vadd.f32 %v295_v56, %v294_v35  ;;  %v1072_v50 = vsel %vm82_vm1, %v253_v18, 0.0  ;;  %v1075_v31 = vsel %vm82_vm1, %v254_v19, 0.0  ;;  %v1397_v56 = vld [vmem:[#allocation35_spill] sm:$0xff] }
  0x32   :  { %v1078_v26 = vsel %vm82_vm1, %v255_v21, 0.0  ;;  %v1081_v44 = vsel %vm82_vm1, %v256_v22, 0.0  ;;  %v1084_v57 = vsel %vm82_vm1, %v257_v23, 0.0  ;;  %v1088_v13 = vsel %vm82_vm1, %v258_v45, 0.0 }
  0x33   :  { %v133_v10 = vadd.f32 %v1395_v7, %v131_v63  ;;  %v298_v55 = vadd.f32 %v297_v62, %v296_v24  ;;  %v1091_v18 = vsel %vm82_vm1, %v259_v4, 0.0  ;;  %v1094_v19 = vsel %vm82_vm1, %v260_v27, 0.0  ;;  %v1399_v62 = vld [vmem:[#allocation36_spill] sm:$0xff] }
  0x34   :  { %v1097_v21 = vsel %vm82_vm1, %v261_v28, 0.0  ;;  %v1100_v22 = vsel %vm82_vm1, %v262_v29, 0.0  ;;  %v1103_v23 = vsel %vm82_vm1, %v263_v33, 0.0  ;;  %v1107_v45 = vsel %vm82_vm1, %v264_v40, 0.0 }
  0x35   :  { %v135_v60 = vadd.f32 %v1396_v25, %v133_v10  ;;  %v300_v6 = vadd.f32 %v299_v9, %v298_v55  ;;  %v1110_v4 = vsel %vm82_vm1, %v265_v42, 0.0  ;;  %v1113_v27 = vsel %vm82_vm1, %v266_v46, 0.0  ;;  %v1401_v10 = vld [vmem:[#allocation38_spill] sm:$0xff] }
  0x36   :  { %v1116_v28 = vsel %vm82_vm1, %v267_v47, 0.0  ;;  %v1119_v29 = vsel %vm82_vm1, %v268_v39, 0.0  ;;  %v1122_v33 = vsel %vm82_vm1, %v269_v48, 0.0  ;;  %v1126_v40 = vsel %vm82_vm1, %v270_v37, 0.0  ;;  %v1402_v25 = vld [vmem:[#allocation2_spill] sm:$0xff] }
  0x37   :  { %v137_v51 = vadd.f32 %v957_v58, %v135_v60  ;;  %v302_v15 = vadd.f32 %v301_v12, %v300_v6  ;;  %v1129_v42 = vsel %vm82_vm1, %v271_v53, 0.0  ;;  %v1132_v46 = vsel %vm82_vm1, %v272_v54, 0.0 }
  0x38   :  { %v1135_v47 = vsel %vm82_vm1, %v273_v38, 0.0  ;;  %v1138_v39 = vsel %vm82_vm1, %v274_v59, 0.0  ;;  %v1141_v48 = vsel %vm82_vm1, %v275_v36, 0.0  ;;  %v1145_v37 = vsel %vm82_vm1, %v276_v61, 0.0 }
  0x39   :  { %v139_v58 = vadd.f32 %v961_v32, %v137_v51  ;;  %v304_v0 = vadd.f32 %v303_v14, %v302_v15  ;;  %v1148_v53 = vsel %vm82_vm1, %v277_v5, 0.0  ;;  %v1151_v54 = vsel %vm82_vm1, %v278_v52, 0.0  ;;  %v1165_v32 = vld [vmem:[%s1318_s0 + $0xf8] sm:$0xff]  ;;  %v1403_v51 = vld [vmem:[#allocation39_spill] sm:$0xff] }
  0x3a   :  { %v1154_v38 = vsel %vm82_vm1, %v279_v8, 0.0  ;;  %v1157_v59 = vsel %vm82_vm1, %v280_v17, 0.0  ;;  %v1160_v36 = vsel %vm82_vm1, %v281_v20, 0.0  ;;  %v1169_v52 = vsel %vm82_vm1, %v282_v49, 0.0 }
  0x3b   :  { %v141_v61 = vadd.f32 %v967_v43, %v139_v58  ;;  %v306_v5 = vadd.f32 %v305_v11, %v304_v0  ;;  %v1172_v8 = vsel %vm82_vm1, %v283_v30, 0.0  ;;  %v144_v17 = vsel %vm82_vm1, %v1165_v32, 0.0  ;;  %v1183_v43 = vld [vmem:[%s1318_s0 + $0x100] sm:$0xff]  ;;  %v1404_v58 = vld [vmem:[#allocation3_spill] sm:$0xff] }
  0x3c   :  { %v235_v20 = vmul.f32 %v1397_v56, %v1397_v56  ;;  %v309_v3 = vsel %vm82_vm1, %v989_v16, 0.0  ;;  %v146_v30 = vsel %vm82_vm1, %v1183_v43, 0.0  ;;  %v236_v9 = vmul.f32 %v1399_v62, %v1399_v62  ;;  %v1400_v16 = vld [vmem:[#allocation37_spill] sm:$0xff] }
  0x3d   :  { %v143_v49 = vadd.f32 %v1398_v34, %v141_v61  ;;  %v308_v35 = vadd.f32 %v307_v1, %v306_v5  ;;  %v311_v12 = vsel %vm82_vm1, %v991_v2, 0.0  ;;  %v237_v41 = vmul.f32 %v1400_v16, %v1400_v16  ;;  %v1405_v5 = vld [vmem:[#allocation40_spill] sm:$0xff]  ;;  %v1408_v62 = vld [vmem:[#allocation5_spill] sm:$0xff] }
  0x3e   :  { %v313_v63 = vsel %vm82_vm1, %v235_v20, 0.0  ;;  %v238_v1 = vmul.f32 %v1401_v10, %v1401_v10  ;;  %v315_v55 = vsel %vm82_vm1, %v236_v9, 0.0  ;;  %v239_v2 = vmul.f32 %v1403_v51, %v1403_v51  ;;  %v1406_v20 = vld [vmem:[#allocation4_spill] sm:$0xff] }
  0x3f   :  { %v145_v14 = vadd.f32 %v144_v17, %v143_v49  ;;  %v310_v11 = vadd.f32 %v309_v3, %v308_v35  ;;  %v317_v15 = vsel %vm82_vm1, %v237_v41, 0.0  ;;  %v240_v17 = vmul.f32 %v1405_v5, %v1405_v5  ;;  %v1407_v49 = vld [vmem:[#allocation41_spill] sm:$0xff]  ;;  %v1410_v41 = vld [vmem:[#allocation6_spill] sm:$0xff] }
  0x40   :  { %v319_v56 = vsel %vm82_vm1, %v238_v1, 0.0  ;;  %v241_v35 = vmul.f32 %v1407_v49, %v1407_v49 }
  0x41   :  { %v147_v24 = vadd.f32 %v146_v30, %v145_v14  ;;  %v312_v7 = vadd.f32 %v311_v12, %v310_v11  ;;  %v321_v30 = vsel %vm82_vm1, %v239_v2, 0.0  ;;  %v1409_v14 = vld [vmem:[#allocation42_spill] sm:$0xff]  ;;  %v323_v16 = vsel %vm82_vm1, %v240_v17, 0.0 }
  0x42   :  { %v242_v11 = vmul.f32 %v1409_v14, %v1409_v14  ;;  %v325_v1 = vsel %vm82_vm1, %v241_v35, 0.0 }
  0x43   :  { %v149_v60 = vadd.f32 %v1402_v25, %v147_v24  ;;  %v314_v6 = vadd.f32 %v313_v63, %v312_v7  ;;  %v1411_v7 = vld [vmem:[#allocation43_spill] sm:$0xff] }
  0x44   :  { %v243_v10 = vmul.f32 %v1411_v7, %v1411_v7  ;;  %v327_v2 = vsel %vm82_vm1, %v242_v11, 0.0 }
  0x45   :  { %v151_v0 = vadd.f32 %v1404_v58, %v149_v60  ;;  %v316_v61 = vadd.f32 %v315_v55, %v314_v6  ;;  %v1412_v55 = vld [vmem:[#allocation7_spill] sm:$0xff]  ;;  %v1413_v6 = vld [vmem:[#allocation44_spill] sm:$0xff] }
  0x46   :  { %v244_v51 = vmul.f32 %v1413_v6, %v1413_v6  ;;  %v329_v17 = vsel %vm82_vm1, %v243_v10, 0.0 }
  0x47   :  { %v153_v3 = vadd.f32 %v1406_v20, %v151_v0  ;;  %v318_v34 = vadd.f32 %v317_v15, %v316_v61  ;;  %v1414_v15 = vld [vmem:[#allocation8_spill] sm:$0xff]  ;;  %v1415_v61 = vld [vmem:[#allocation45_spill] sm:$0xff] }
  0x48   :  { %v245_v5 = vmul.f32 %v1415_v61, %v1415_v61  ;;  %v331_v35 = vsel %vm82_vm1, %v244_v51, 0.0 }
  0x49   :  { %v155_v9 = vadd.f32 %v1408_v62, %v153_v3  ;;  %v320_v12 = vadd.f32 %v319_v56, %v318_v34  ;;  %v1416_v56 = vld [vmem:[#allocation9_spill] sm:$0xff]  ;;  %v1417_v34 = vld [vmem:[#allocation46_spill] sm:$0xff] }
  0x4a   :  { %v246_v49 = vmul.f32 %v1417_v34, %v1417_v34  ;;  %v333_v11 = vsel %vm82_vm1, %v245_v5, 0.0 }
  0x4b   :  { %v157_v63 = vadd.f32 %v1410_v41, %v155_v9  ;;  %v322_v24 = vadd.f32 %v321_v30, %v320_v12  ;;  %v1418_v30 = vld [vmem:[#allocation10_spill] sm:$0xff]  ;;  %v1419_v12 = vld [vmem:[#allocation47_spill] sm:$0xff] }
  0x4c   :  { %v247_v14 = vmul.f32 %v1419_v12, %v1419_v12  ;;  %v335_v10 = vsel %vm82_vm1, %v246_v49, 0.0  ;;  %v1427_v49 = vld [vmem:[#allocation15_spill] sm:$0xff]  ;;  %v1428_v12 = vld [vmem:[#allocation16_spill] sm:$0xff] }
  0x4d   :  { %v159_v25 = vadd.f32 %v1412_v55, %v157_v63  ;;  %v324_v60 = vadd.f32 %v323_v16, %v322_v24  ;;  %v1420_v16 = vld [vmem:[#allocation11_spill] sm:$0xff]  ;;  %v1421_v24 = vld [vmem:[#allocation48_spill] sm:$0xff] }
  0x4e   :  { %v248_v7 = vmul.f32 %v1421_v24, %v1421_v24  ;;  %v337_v51 = vsel %vm82_vm1, %v247_v14, 0.0 }
  0x4f   :  { %v161_v58 = vadd.f32 %v1414_v15, %v159_v25  ;;  %v326_v0 = vadd.f32 %v325_v1, %v324_v60  ;;  %v1422_v1 = vld [vmem:[#allocation12_spill] sm:$0xff] }
  0x50   :  { %v1423_v60 = vld [vmem:[#allocation52_spill] sm:$0xff]  ;;  %v339_v5 = vsel %vm82_vm1, %v248_v7, 0.0  ;;  %v1430_v7 = vld [vmem:[#allocation18_spill] sm:$0xff] }
  0x51   :  { %v163_v20 = vadd.f32 %v1416_v56, %v161_v58  ;;  %v328_v3 = vadd.f32 %v327_v2, %v326_v0  ;;  %v249_v6 = vmul.f32 %v1423_v60, %v1423_v60  ;;  %v1424_v2 = vld [vmem:[#allocation13_spill] sm:$0xff] }
  0x52   :  { %v1425_v0 = vld [vmem:[#allocation53_spill] sm:$0xff] }
  0x53   :  { %v165_v62 = vadd.f32 %v1418_v30, %v163_v20  ;;  %v330_v9 = vadd.f32 %v329_v17, %v328_v3  ;;  %v250_v61 = vmul.f32 %v1425_v0, %v1425_v0  ;;  %v1426_v17 = vld [vmem:[#allocation14_spill] sm:$0xff]  ;;  %v251_v3 = vmul.f32 %v1165_v32, %v1165_v32 }
  0x54   :  { %v341_v34 = vsel %vm82_vm1, %v249_v6, 0.0  ;;  %v1432_v6 = vld [vmem:[#allocation20_spill] sm:$0xff]  ;;  %v1434_v0 = vld [vmem:[#allocation22_spill] sm:$0xff] }
  0x55   :  { %v167_v41 = vadd.f32 %v1420_v16, %v165_v62  ;;  %v332_v63 = vadd.f32 %v331_v35, %v330_v9  ;;  %v252_v62 = vmul.f32 %v1183_v43, %v1183_v43  ;;  %v343_v9 = vsel %vm82_vm1, %v250_v61, 0.0 }
  0x56   :  { %v345_v16 = vsel %vm82_vm1, %v251_v3, 0.0  ;;  %v1436_v3 = vld [vmem:[#allocation24_spill] sm:$0xff] }
  0x57   :  { %v169_v55 = vadd.f32 %v1422_v1, %v167_v41  ;;  %v334_v25 = vadd.f32 %v333_v11, %v332_v63  ;;  %v1429_v41 = vld [vmem:[#allocation17_spill] sm:$0xff]  ;;  %v347_v32 = vsel %vm82_vm1, %v252_v62, 0.0  ;;  %v1438_v62 = vld [vmem:[#allocation27_spill] sm:$0xff] }
  0x59   :  { %v171_v15 = vadd.f32 %v1424_v2, %v169_v55  ;;  %v336_v58 = vadd.f32 %v335_v10, %v334_v25  ;;  %v1431_v55 = vld [vmem:[#allocation19_spill] sm:$0xff]  ;;  %v1433_v2 = vld [vmem:[#allocation21_spill] sm:$0xff] }
  0x5b   :  { %v173_v56 = vadd.f32 %v1426_v17, %v171_v15  ;;  %v338_v20 = vadd.f32 %v337_v51, %v336_v58  ;;  %v1435_v17 = vld [vmem:[#allocation23_spill] sm:$0xff] }
  0x5d   :  { %v175_v35 = vadd.f32 %v1427_v49, %v173_v56  ;;  %v340_v30 = vadd.f32 %v339_v5, %v338_v20 }
  0x5f   :  { %v177_v14 = vadd.f32 %v1428_v12, %v175_v35  ;;  %v342_v11 = vadd.f32 %v341_v34, %v340_v30  ;;  %v1437_v35 = vld [vmem:[#allocation25_spill] sm:$0xff]  ;;  %v1439_v12 = vld [vmem:[#allocation28_spill] sm:$0xff] }
  0x61   :  { %v179_v63 = vadd.f32 %v1429_v41, %v177_v14  ;;  %v344_v24 = vadd.f32 %v343_v9, %v342_v11  ;;  %v1440_v11 = vld [vmem:[#allocation29_spill] sm:$0xff]  ;;  %v1441_v41 = vld [vmem:[#allocation31_spill] sm:$0xff] }
  0x63   :  { %v181_v10 = vadd.f32 %v1430_v7, %v179_v63  ;;  %v346_v1 = vadd.f32 %v345_v16, %v344_v24  ;;  %v1442_v24 = vld [vmem:[#allocation32_spill] sm:$0xff]  ;;  %v1443_v7 = vld [vmem:[#allocation33_spill] sm:$0xff] }
  0x65   :  { %v183_v25 = vadd.f32 %v1431_v55, %v181_v10  ;;  %v348_v60 = vadd.f32 %v347_v32, %v346_v1  ;;  %v1444_v1 = vld [vmem:[#allocation34_spill] sm:$0xff] }
  0x67   :  { %v185_v43 = vadd.f32 %v1432_v6, %v183_v25  ;;  %v350_v51 = vadd.f32 %v1072_v50, %v348_v60 }
  0x69   :  { %v187_v15 = vadd.f32 %v1433_v2, %v185_v43  ;;  %v352_v58 = vadd.f32 %v1075_v31, %v350_v51 }
  0x6b   :  { %v189_v61 = vadd.f32 %v1434_v0, %v187_v15  ;;  %v354_v5 = vadd.f32 %v1078_v26, %v352_v58 }
  0x6d   :  { %v191_v56 = vadd.f32 %v1435_v17, %v189_v61  ;;  %v356_v20 = vadd.f32 %v1081_v44, %v354_v5 }
  0x6f   :  { %v193_v34 = vadd.f32 %v1436_v3, %v191_v56  ;;  %v358_v49 = vadd.f32 %v1084_v57, %v356_v20 }
  0x71   :  { %v195_v30 = vadd.f32 %v1437_v35, %v193_v34  ;;  %v360_v50 = vadd.f32 %v1088_v13, %v358_v49 }
  0x73   :  { %v197_v9 = vadd.f32 %v1438_v62, %v195_v30  ;;  %v362_v31 = vadd.f32 %v1091_v18, %v360_v50 }
  0x75   :  { %v199_v14 = vadd.f32 %v1439_v12, %v197_v9  ;;  %v364_v26 = vadd.f32 %v1094_v19, %v362_v31 }
  0x77   :  { %v201_v16 = vadd.f32 %v1440_v11, %v199_v14  ;;  %v366_v44 = vadd.f32 %v1097_v21, %v364_v26 }
  0x79   :  { %v203_v63 = vadd.f32 %v1441_v41, %v201_v16  ;;  %v368_v57 = vadd.f32 %v1100_v22, %v366_v44 }
  0x7b   :  { %v205_v32 = vadd.f32 %v1442_v24, %v203_v63  ;;  %v370_v13 = vadd.f32 %v1103_v23, %v368_v57 }
  0x7d   :  { %v207_v10 = vadd.f32 %v1443_v7, %v205_v32  ;;  %v372_v18 = vadd.f32 %v1107_v45, %v370_v13  ;;  %v81_v45 = vld [vmem:[%s1319_s1] sm:$0x1] }
  0x7f   :  { %v209_v55 = vadd.f32 %v1444_v1, %v207_v10  ;;  %v374_v19 = vadd.f32 %v1110_v4, %v372_v18 }
  0x81   :  { %v210_v25 = vrot.slane %v209_v55, 4  ;;  %v376_v60 = vadd.f32 %v1113_v27, %v374_v19 }
  0x83   :  { %v211_v21 = vadd.f32 %v210_v25, %v209_v55  ;;  %v378_v6 = vadd.f32 %v1116_v28, %v376_v60 }
  0x85   :  { %v212_v43 = vrot.slane %v211_v21, 2  ;;  %v380_v22 = vadd.f32 %v1119_v29, %v378_v6 }
  0x87   :  { %v213_v51 = vadd.f32 %v212_v43, %v211_v21  ;;  %v382_v23 = vadd.f32 %v1122_v33, %v380_v22 }
  0x89   :  { %v214_v2 = vrot.slane %v213_v51, 1  ;;  %v384_v15 = vadd.f32 %v1126_v40, %v382_v23 }
  0x8b   :  { %v215_v4 = vadd.f32 %v214_v2, %v213_v51  ;;  %v386_v58 = vadd.f32 %v1129_v42, %v384_v15 }
  0x8d   :  { %v216_v27 = vadd.f32 %v215_v4, %v81_v45  ;;  %v388_v0 = vadd.f32 %v1132_v46, %v386_v58 }
  0x8f   :  { %218 = vst.msk [vmem:[%s1319_s1] sm:$0x1] %vm14_vm0, %v216_v27  ;;  %v390_v28 = vadd.f32 %v1135_v47, %v388_v0 }
  0x91   :  { %v392_v29 = vadd.f32 %v1138_v39, %v390_v28 }
  0x93   :  { %v394_v33 = vadd.f32 %v1141_v48, %v392_v29 }
  0x95   :  { %v396_v40 = vadd.f32 %v1145_v37, %v394_v33  ;;  %v219_v37 = vld [vmem:[%s1320_s2] sm:$0x1] }
  0x97   :  { %v398_v61 = vadd.f32 %v1148_v53, %v396_v40 }
  0x99   :  { %v400_v42 = vadd.f32 %v1151_v54, %v398_v61 }
  0x9b   :  { %v402_v5 = vadd.f32 %v1154_v38, %v400_v42 }
  0x9d   :  { %v404_v46 = vadd.f32 %v1157_v59, %v402_v5 }
  0x9f   :  { %v406_v17 = vadd.f32 %v1160_v36, %v404_v46 }
  0xa1   :  { %v408_v56 = vadd.f32 %v1169_v52, %v406_v17 }
  0xa3   :  { %v410_v47 = vadd.f32 %v1172_v8, %v408_v56 }
  0xa5   :  { %v411_v20 = vrot.slane %v410_v47, 4 }
  0xa7   :  { %v412_v39 = vadd.f32 %v411_v20, %v410_v47 }
  0xa9   :  { %v413_v3 = vrot.slane %v412_v39, 2 }
  0xab   :  { %v414_v48 = vadd.f32 %v413_v3, %v412_v39 }
  0xad   :  { %v415_v34 = vrot.slane %v414_v48, 1 }
  0xaf   :  { %v416_v53 = vadd.f32 %v415_v34, %v414_v48 }
  0xb1   :  { %v417_v54 = vadd.f32 %v416_v53, %v219_v37 }
  0xb3   :  { %418 = vst.msk [vmem:[%s1320_s2] sm:$0x1] %vm14_vm0, %v417_v54 }

// kernel: _lambda_.68
= control target key start
LH: loop header
LB: loop body
LE: loop exit
PB: predicated region body
PF: predicated region fallthrough
CT: control target
= control target key end

     0   :  { %v476_v7 = vmov 0   ;;  %s636_s1 = inlined_call_operand.vmem [shape: bf16[128,128], index: 1, kind: input, shape index: {}]   ;;  %s637_s0 = inlined_call_operand.vmem [shape: bf16[128,128], index: 0, kind: input, shape index: {}]   ;;  %s638_s2 = inlined_call_operand.vmem [shape: f32[1,128], index: 2, kind: input, shape index: {}]   ;;  %s639_s3 = inlined_call_operand.vmem [shape: f32[128,128], index: 3, kind: output, shape index: {}]  }
   0x1   :  { %v468_v0 = vld [vmem:[%s636_s1] sm:$0xff]   ;;  %v469_v1 = vld [vmem:[%s636_s1 + $0x8] sm:$0xff]   ;;  %v470_v2 = vld [vmem:[%s636_s1 + $0x10] sm:$0xff]  }
   0x2   :  { %419 = vmatprep.subr.bf16.mxu0 %v468_v0  ;;  %451 = vmatprep.subr.bf16.mxu1 %v468_v0  ;;  %v471_v3 = vld [vmem:[%s636_s1 + $0x18] sm:$0xff]   ;;  %v35_v4 = vld [vmem:[%s637_s0] sm:$0xf]  ;;  %v36_v5 = vld [vmem:[%s637_s0 + $0x4] sm:$0xf] }
   0x3   :  { %420 = vmatpush3.bf16.msra.mxu0 %v468_v0  ;;  %459 = vmatpush3.bf16.msra.mxu1 %v468_v0  ;;  %v43_v6 = vld [vmem:[%s637_s0 + $0x20] sm:$0xf]  ;;  %v51_v8 = vmax.bf16 %v476_v7, %v35_v4  ;;  %v52_v9 = vmax.bf16 %v476_v7, %v36_v5  ;;  %v44_v10 = vld [vmem:[%s637_s0 + $0x24] sm:$0xf]  ;;  %v473_v16 = vld [vmem:[%s636_s1 + $0x28] sm:$0xff]  }
   0x4   :  { %421 = vmatprep.subr.bf16.mxu0 %v469_v1  ;;  %452 = vmatprep.subr.bf16.mxu1 %v469_v1  ;;  %v59_v11 = vmax.bf16 %v476_v7, %v43_v6  ;;  %v60_v12 = vmax.bf16 %v476_v7, %v44_v10  ;;  %v472_v14 = vld [vmem:[%s636_s1 + $0x20] sm:$0xff]   ;;  %v474_v17 = vld [vmem:[%s636_s1 + $0x30] sm:$0xff]   ;;  %v475_v18 = vld [vmem:[%s636_s1 + $0x38] sm:$0xff]  }
   0x5   :  { %v386_v13 = vcombine.low %v51_v8, %v52_v9  ;;  %v37_v19 = vld [vmem:[%s637_s0 + $0x8] sm:$0xf]  ;;  %v38_v20 = vld [vmem:[%s637_s0 + $0xc] sm:$0xf]  ;;  %v39_v23 = vld [vmem:[%s637_s0 + $0x10] sm:$0xf] }
   0x6   :  { %v390_v15 = vcombine.low %v59_v11, %v60_v12  ;;  %v45_v21 = vld [vmem:[%s637_s0 + $0x28] sm:$0xf]  ;;  %v46_v22 = vld [vmem:[%s637_s0 + $0x2c] sm:$0xf]  ;;  %v40_v24 = vld [vmem:[%s637_s0 + $0x14] sm:$0xf]  ;;  %v53_v27 = vmax.bf16 %v476_v7, %v37_v19  ;;  %v54_v28 = vmax.bf16 %v476_v7, %v38_v20  ;;  %v55_v31 = vmax.bf16 %v476_v7, %v39_v23 }
   0x7   :  { %422 = vmatpush3.bf16.msra.mxu0 %v469_v1  ;;  %460 = vmatpush3.bf16.msra.mxu1 %v469_v1  ;;  %v47_v25 = vld [vmem:[%s637_s0 + $0x30] sm:$0xf]  ;;  %v48_v26 = vld [vmem:[%s637_s0 + $0x34] sm:$0xf]  ;;  %v61_v29 = vmax.bf16 %v476_v7, %v45_v21  ;;  %v62_v30 = vmax.bf16 %v476_v7, %v46_v22  ;;  %v56_v32 = vmax.bf16 %v476_v7, %v40_v24  ;;  %v41_v37 = vld [vmem:[%s637_s0 + $0x18] sm:$0xf] }
   0x8   :  { %423 = vmatprep.subr.bf16.mxu0 %v470_v2  ;;  %453 = vmatprep.subr.bf16.mxu1 %v470_v2  ;;  %v63_v33 = vmax.bf16 %v476_v7, %v47_v25  ;;  %v64_v34 = vmax.bf16 %v476_v7, %v48_v26  ;;  %v387_v35 = vcombine.low %v53_v27, %v54_v28  ;;  %v42_v40 = vld [vmem:[%s637_s0 + $0x1c] sm:$0xf]  ;;  %v49_v41 = vld [vmem:[%s637_s0 + $0x38] sm:$0xf]  ;;  %v402_v49 = vld [vmem:[%s638_s2] ss:$0 sm:$0xff] }
   0x9   :  { %435 = vmatprep.mubr.bf16.mxu0 %v386_v13  ;;  %443 = vmatprep.mubr.bf16.mxu1 %v390_v15  ;;  %v391_v36 = vcombine.low %v61_v29, %v62_v30  ;;  %v388_v38 = vcombine.low %v55_v31, %v56_v32  ;;  %v50_v42 = vld [vmem:[%s637_s0 + $0x3c] sm:$0xf]  ;;  %v57_v43 = vmax.bf16 %v476_v7, %v41_v37 }
   0xa   :  { %v392_v39 = vcombine.low %v63_v33, %v64_v34  ;;  %v58_v44 = vmax.bf16 %v476_v7, %v42_v40  ;;  %v65_v45 = vmax.bf16 %v476_v7, %v49_v41  ;;  %v66_v46 = vmax.bf16 %v476_v7, %v50_v42 }
   0xb   :  { %424 = vmatpush3.bf16.msra.mxu0 %v470_v2  ;;  %461 = vmatpush3.bf16.msra.mxu1 %v470_v2 }
   0xc   :  { %425 = vmatprep.subr.bf16.mxu0 %v471_v3  ;;  %454 = vmatprep.subr.bf16.mxu1 %v471_v3  ;;  %v389_v47 = vcombine.low %v57_v43, %v58_v44  ;;  %v393_v48 = vcombine.low %v65_v45, %v66_v46 }
   0xf   :  { %426 = vmatpush3.bf16.msra.mxu0 %v471_v3  ;;  %462 = vmatpush3.bf16.msra.mxu1 %v471_v3 }
  0x10   :  { %427 = vmatprep.subr.bf16.mxu0 %v472_v14  ;;  %455 = vmatprep.subr.bf16.mxu1 %v472_v14 }
  0x13   :  { %428 = vmatpush3.bf16.msra.mxu0 %v472_v14  ;;  %463 = vmatpush3.bf16.msra.mxu1 %v472_v14 }
  0x14   :  { %429 = vmatprep.subr.bf16.mxu0 %v473_v16  ;;  %456 = vmatprep.subr.bf16.mxu1 %v473_v16 }
  0x17   :  { %430 = vmatpush3.bf16.msra.mxu0 %v473_v16  ;;  %464 = vmatpush3.bf16.msra.mxu1 %v473_v16 }
  0x18   :  { %431 = vmatprep.subr.bf16.mxu0 %v474_v17  ;;  %457 = vmatprep.subr.bf16.mxu1 %v474_v17 }
  0x1b   :  { %432 = vmatpush3.bf16.msra.mxu0 %v474_v17  ;;  %465 = vmatpush3.bf16.msra.mxu1 %v474_v17 }
  0x1c   :  { %433 = vmatprep.subr.bf16.mxu0 %v475_v18  ;;  %458 = vmatprep.subr.bf16.mxu1 %v475_v18 }
  0x1f   :  { %434 = vmatpush3.bf16.msra.mxu0 %v475_v18  ;;  %466 = vmatpush3.bf16.msra.mxu1 %v475_v18 }
  0x22   :  { %436 = vmatmul.mubr.bf16.vlgmr.msra.gmra.mrb[0].mxu0 %v387_v35  ;;  %444 = vmatmul.mubr.bf16.vlgmr.msra.gmra.mrb[0].mxu1 %v391_v36 }
  0x23   :  { %439 = vmatprep.mubr.bf16.mxu0 %v388_v38  ;;  %447 = vmatprep.mubr.bf16.mxu1 %v392_v39 }
  0x2a   :  { %440 = vmatmul.mubr.bf16.gmra.mrb[4].mxu0 %v389_v47  ;;  %448 = vmatmul.mubr.bf16.gmra.mrb[4].mxu1 %v393_v48 }
  0xf5   :  { %v437_v50 = vpop.f32.mrb[0].mxu0  ;;  %v445_v51 = vpop.f32.mrb[0].mxu1 }
  0xf6   :  { %v352_v52 = vadd.f32 %v437_v50, %v402_v49  ;;  %v360_v53 = vadd.f32 %v445_v51, %v402_v49  ;;  %v229_v54 = vpop.f32.mrb[1].mxu0  ;;  %v261_v55 = vpop.f32.mrb[1].mxu1 }
  0xf7   :  { %v350_v56 = vadd.f32 %v402_v49, %v229_v54  ;;  %v358_v57 = vadd.f32 %v402_v49, %v261_v55  ;;  %v438_v58 = vpop.f32.mrb[2].mxu0  ;;  %v446_v59 = vpop.f32.mrb[2].mxu1 }
  0xf8   :  { %368 = vst [vmem:[%s639_s3 + $0x10] sm:$0xff] %v352_v52  ;;  %376 = vst [vmem:[%s639_s3 + $0x50] sm:$0xff] %v360_v53  ;;  %v353_v60 = vadd.f32 %v438_v58, %v402_v49  ;;  %v361_v61 = vadd.f32 %v446_v59, %v402_v49  ;;  %v232_v62 = vpop.f32.mrb[3].mxu0  ;;  %v264_v63 = vpop.f32.mrb[3].mxu1 }
  0xf9   :  { %366 = vst [vmem:[%s639_s3] sm:$0xff] %v350_v56  ;;  %374 = vst [vmem:[%s639_s3 + $0x40] sm:$0xff] %v358_v57  ;;  %v351_v0 = vadd.f32 %v402_v49, %v232_v62  ;;  %v359_v1 = vadd.f32 %v402_v49, %v264_v63 }
  0xfa   :  { %369 = vst [vmem:[%s639_s3 + $0x18] sm:$0xff] %v353_v60  ;;  %377 = vst [vmem:[%s639_s3 + $0x58] sm:$0xff] %v361_v61 }
  0xfb   :  { %367 = vst [vmem:[%s639_s3 + $0x8] sm:$0xff] %v351_v0  ;;  %375 = vst [vmem:[%s639_s3 + $0x48] sm:$0xff] %v359_v1 }
  0xfd   :  { %v441_v2 = vpop.f32.mrb[4].mxu0  ;;  %v449_v3 = vpop.f32.mrb[4].mxu1 }
  0xfe   :  { %v356_v4 = vadd.f32 %v441_v2, %v402_v49  ;;  %v364_v5 = vadd.f32 %v449_v3, %v402_v49  ;;  %v245_v6 = vpop.f32.mrb[5].mxu0  ;;  %v277_v7 = vpop.f32.mrb[5].mxu1 }
  0xff   :  { %v354_v8 = vadd.f32 %v402_v49, %v245_v6  ;;  %v362_v9 = vadd.f32 %v402_v49, %v277_v7  ;;  %v442_v10 = vpop.f32.mrb[6].mxu0  ;;  %v450_v11 = vpop.f32.mrb[6].mxu1 }
 0x100   :  { %372 = vst [vmem:[%s639_s3 + $0x30] sm:$0xff] %v356_v4  ;;  %380 = vst [vmem:[%s639_s3 + $0x70] sm:$0xff] %v364_v5  ;;  %v357_v12 = vadd.f32 %v442_v10, %v402_v49  ;;  %v365_v13 = vadd.f32 %v450_v11, %v402_v49  ;;  %v248_v14 = vpop.f32.mrb[7].mxu0  ;;  %v280_v15 = vpop.f32.mrb[7].mxu1 }
 0x101   :  { %370 = vst [vmem:[%s639_s3 + $0x20] sm:$0xff] %v354_v8  ;;  %378 = vst [vmem:[%s639_s3 + $0x60] sm:$0xff] %v362_v9  ;;  %v355_v16 = vadd.f32 %v402_v49, %v248_v14  ;;  %v363_v17 = vadd.f32 %v402_v49, %v280_v15 }
 0x102   :  { %373 = vst [vmem:[%s639_s3 + $0x38] sm:$0xff] %v357_v12  ;;  %381 = vst [vmem:[%s639_s3 + $0x78] sm:$0xff] %v365_v13 }
 0x103   :  { %371 = vst [vmem:[%s639_s3 + $0x28] sm:$0xff] %v355_v16  ;;  %379 = vst [vmem:[%s639_s3 + $0x68] sm:$0xff] %v363_v17 }

// kernel: _lambda_.73
= control target key start
LH: loop header
LB: loop body
LE: loop exit
PB: predicated region body
PF: predicated region fallthrough
CT: control target
= control target key end

     0   :  { %vm220_vm0 = vcmask 64512   ;;  %s897_s0 = inlined_call_operand.vmem [shape: f32[512,8], index: 0, kind: input, shape index: {}]   ;;  %s898_s1 = inlined_call_operand.vmem [shape: f32[1,8], index: 1, kind: input, shape index: {}]   ;;  %s899_s2 = inlined_call_operand.vmem [shape: f32[1,8], index: 2, kind: input, shape index: {}]   ;;  %s900_s3 = inlined_call_operand.vmem [shape: f32[512,8], index: 3, kind: output, shape index: {}]  }
   0x1   :  { %v14_v0 = vld [vmem:[%s897_s0] sm:$0xff]  ;;  %v15_v4 = vld [vmem:[%s897_s0 + $0x8] sm:$0xff]  ;;  %v16_v5 = vld [vmem:[%s897_s0 + $0x10] sm:$0xff] }
   0x2   :  { %v317_v1 = vld [vmem:[%s898_s1] ss:$0 sm:$0xff]  ;;  %v17_v6 = vld [vmem:[%s897_s0 + $0x18] sm:$0xff]  ;;  %v19_v11 = vld [vmem:[%s897_s0 + $0x28] sm:$0xff] }
   0x3   :  { %v322_v2 = vld [vmem:[%s899_s2] ss:$0 sm:$0xff]  ;;  %v85_v3 = vmul.f32 %v317_v1, %v14_v0  ;;  %v86_v7 = vmul.f32 %v317_v1, %v15_v4  ;;  %v87_v8 = vmul.f32 %v317_v1, %v16_v5  ;;  %v88_v9 = vmul.f32 %v317_v1, %v17_v6  ;;  %v20_v12 = vld [vmem:[%s897_s0 + $0x30] sm:$0xff]  ;;  %v21_v17 = vld [vmem:[%s897_s0 + $0x38] sm:$0xff] }
   0x4   :  { %v18_v10 = vld [vmem:[%s897_s0 + $0x20] sm:$0xff]  ;;  %v90_v15 = vmul.f32 %v317_v1, %v19_v11  ;;  %v91_v16 = vmul.f32 %v317_v1, %v20_v12  ;;  %v23_v19 = vld [vmem:[%s897_s0 + $0x48] sm:$0xff]  ;;  %v92_v23 = vmul.f32 %v317_v1, %v21_v17  ;;  %v24_v24 = vld [vmem:[%s897_s0 + $0x50] sm:$0xff] }
   0x5   :  { %v156_v13 = vadd.f32 %v322_v2, %v85_v3  ;;  %v89_v14 = vmul.f32 %v317_v1, %v18_v10  ;;  %v22_v18 = vld [vmem:[%s897_s0 + $0x40] sm:$0xff]  ;;  %v157_v20 = vadd.f32 %v322_v2, %v86_v7  ;;  %v158_v21 = vadd.f32 %v322_v2, %v87_v8  ;;  %v25_v25 = vld [vmem:[%s897_s0 + $0x58] sm:$0xff]  ;;  %v27_v31 = vld [vmem:[%s897_s0 + $0x68] sm:$0xff] }
   0x6   :  { %v159_v22 = vadd.f32 %v322_v2, %v88_v9  ;;  %v26_v26 = vld [vmem:[%s897_s0 + $0x60] sm:$0xff]  ;;  %v161_v28 = vadd.f32 %v322_v2, %v90_v15  ;;  %v162_v29 = vadd.f32 %v322_v2, %v91_v16  ;;  %v93_v30 = vmul.f32 %v317_v1, %v22_v18  ;;  %v28_v32 = vld [vmem:[%s897_s0 + $0x70] sm:$0xff]  ;;  %v29_v33 = vld [vmem:[%s897_s0 + $0x78] sm:$0xff] }
   0x7   :  { %221 = vst.msk [vmem:[%s900_s3] sm:$0xff] %vm220_vm0, %v156_v13  ;;  %v160_v27 = vadd.f32 %v322_v2, %v89_v14  ;;  %222 = vst.msk [vmem:[%s900_s3 + $0x8] sm:$0xff] %vm220_vm0, %v157_v20  ;;  %v163_v34 = vadd.f32 %v322_v2, %v92_v23  ;;  %v94_v35 = vmul.f32 %v317_v1, %v23_v19  ;;  %v30_v38 = vld [vmem:[%s897_s0 + $0x80] sm:$0xff]  ;;  %v31_v43 = vld [vmem:[%s897_s0 + $0x88] sm:$0xff] }
   0x8   :  { %223 = vst.msk [vmem:[%s900_s3 + $0x10] sm:$0xff] %vm220_vm0, %v158_v21  ;;  %224 = vst.msk [vmem:[%s900_s3 + $0x18] sm:$0xff] %vm220_vm0, %v159_v22  ;;  %v95_v36 = vmul.f32 %v317_v1, %v24_v24  ;;  %v96_v37 = vmul.f32 %v317_v1, %v25_v25  ;;  %v164_v39 = vadd.f32 %v322_v2, %v93_v30  ;;  %v32_v44 = vld [vmem:[%s897_s0 + $0x90] sm:$0xff]  ;;  %v33_v45 = vld [vmem:[%s897_s0 + $0x98] sm:$0xff] }
   0x9   :  { %225 = vst.msk [vmem:[%s900_s3 + $0x20] sm:$0xff] %vm220_vm0, %v160_v27  ;;  %226 = vst.msk [vmem:[%s900_s3 + $0x28] sm:$0xff] %vm220_vm0, %v161_v28  ;;  %v97_v40 = vmul.f32 %v317_v1, %v26_v26  ;;  %v98_v41 = vmul.f32 %v317_v1, %v27_v31  ;;  %v99_v42 = vmul.f32 %v317_v1, %v28_v32  ;;  %v34_v50 = vld [vmem:[%s897_s0 + $0xa0] sm:$0xff]  ;;  %v35_v51 = vld [vmem:[%s897_s0 + $0xa8] sm:$0xff] }
   0xa   :  { %227 = vst.msk [vmem:[%s900_s3 + $0x30] sm:$0xff] %vm220_vm0, %v162_v29  ;;  %228 = vst.msk [vmem:[%s900_s3 + $0x38] sm:$0xff] %vm220_vm0, %v163_v34  ;;  %v165_v46 = vadd.f32 %v322_v2, %v94_v35  ;;  %v166_v47 = vadd.f32 %v322_v2, %v95_v36  ;;  %v167_v48 = vadd.f32 %v322_v2, %v96_v37  ;;  %v36_v52 = vld [vmem:[%s897_s0 + $0xb0] sm:$0xff]  ;;  %v37_v57 = vld [vmem:[%s897_s0 + $0xb8] sm:$0xff] }
   0xb   :  { %v100_v49 = vmul.f32 %v317_v1, %v29_v33  ;;  %229 = vst.msk [vmem:[%s900_s3 + $0x40] sm:$0xff] %vm220_vm0, %v164_v39  ;;  %v168_v53 = vadd.f32 %v322_v2, %v97_v40  ;;  %v169_v54 = vadd.f32 %v322_v2, %v98_v41  ;;  %v170_v55 = vadd.f32 %v322_v2, %v99_v42  ;;  %v38_v62 = vld [vmem:[%s897_s0 + $0xc0] sm:$0xff]  ;;  %v39_v5 = vld [vmem:[%s897_s0 + $0xc8] sm:$0xff]  ;;  %v40_v6 = vld [vmem:[%s897_s0 + $0xd0] sm:$0xff] }
   0xc   :  { %v101_v56 = vmul.f32 %v317_v1, %v30_v38  ;;  %230 = vst.msk [vmem:[%s900_s3 + $0x48] sm:$0xff] %vm220_vm0, %v165_v46  ;;  %231 = vst.msk [vmem:[%s900_s3 + $0x50] sm:$0xff] %vm220_vm0, %v166_v47  ;;  %v102_v59 = vmul.f32 %v317_v1, %v31_v43  ;;  %v103_v60 = vmul.f32 %v317_v1, %v32_v44  ;;  %v41_v7 = vld [vmem:[%s897_s0 + $0xd8] sm:$0xff]  ;;  %v42_v12 = vld [vmem:[%s897_s0 + $0xe0] sm:$0xff] }
   0xd   :  { %232 = vst.msk [vmem:[%s900_s3 + $0x58] sm:$0xff] %vm220_vm0, %v167_v48  ;;  %v171_v58 = vadd.f32 %v322_v2, %v100_v49  ;;  %v104_v61 = vmul.f32 %v317_v1, %v33_v45  ;;  %233 = vst.msk [vmem:[%s900_s3 + $0x60] sm:$0xff] %vm220_vm0, %v168_v53  ;;  %v105_v0 = vmul.f32 %v317_v1, %v34_v50  ;;  %v43_v13 = vld [vmem:[%s897_s0 + $0xe8] sm:$0xff]  ;;  %v44_v14 = vld [vmem:[%s897_s0 + $0xf0] sm:$0xff] }
   0xe   :  { %234 = vst.msk [vmem:[%s900_s3 + $0x68] sm:$0xff] %vm220_vm0, %v169_v54  ;;  %235 = vst.msk [vmem:[%s900_s3 + $0x70] sm:$0xff] %vm220_vm0, %v170_v55  ;;  %v172_v63 = vadd.f32 %v322_v2, %v101_v56  ;;  %v106_v3 = vmul.f32 %v317_v1, %v35_v51  ;;  %v107_v4 = vmul.f32 %v317_v1, %v36_v52  ;;  %v45_v19 = vld [vmem:[%s897_s0 + $0xf8] sm:$0xff]  ;;  %v46_v24 = vld [vmem:[%s897_s0 + $0x100] sm:$0xff] }
   0xf   :  { %236 = vst.msk [vmem:[%s900_s3 + $0x78] sm:$0xff] %vm220_vm0, %v171_v58  ;;  %v173_v8 = vadd.f32 %v322_v2, %v102_v59  ;;  %v174_v9 = vadd.f32 %v322_v2, %v103_v60  ;;  %v175_v10 = vadd.f32 %v322_v2, %v104_v61  ;;  %v108_v11 = vmul.f32 %v317_v1, %v37_v57  ;;  %v47_v29 = vld [vmem:[%s897_s0 + $0x108] sm:$0xff]  ;;  %v48_v30 = vld [vmem:[%s897_s0 + $0x110] sm:$0xff]  ;;  %v49_v31 = vld [vmem:[%s897_s0 + $0x118] sm:$0xff] }
  0x10   :  { %237 = vst.msk [vmem:[%s900_s3 + $0x80] sm:$0xff] %vm220_vm0, %v172_v63  ;;  %v176_v15 = vadd.f32 %v322_v2, %v105_v0  ;;  %v177_v16 = vadd.f32 %v322_v2, %v106_v3  ;;  %v178_v17 = vadd.f32 %v322_v2, %v107_v4  ;;  %v109_v18 = vmul.f32 %v317_v1, %v38_v62  ;;  %v50_v36 = vld [vmem:[%s897_s0 + $0x120] sm:$0xff]  ;;  %v51_v37 = vld [vmem:[%s897_s0 + $0x128] sm:$0xff]  ;;  %v52_v38 = vld [vmem:[%s897_s0 + $0x130] sm:$0xff] }
  0x11   :  { %238 = vst.msk [vmem:[%s900_s3 + $0x88] sm:$0xff] %vm220_vm0, %v173_v8  ;;  %239 = vst.msk [vmem:[%s900_s3 + $0x90] sm:$0xff] %vm220_vm0, %v174_v9  ;;  %v179_v20 = vadd.f32 %v322_v2, %v108_v11  ;;  %v110_v21 = vmul.f32 %v317_v1, %v39_v5  ;;  %v111_v22 = vmul.f32 %v317_v1, %v40_v6  ;;  %v53_v43 = vld [vmem:[%s897_s0 + $0x138] sm:$0xff]  ;;  %v54_v48 = vld [vmem:[%s897_s0 + $0x140] sm:$0xff] }
  0x12   :  { %240 = vst.msk [vmem:[%s900_s3 + $0x98] sm:$0xff] %vm220_vm0, %v175_v10  ;;  %v112_v23 = vmul.f32 %v317_v1, %v41_v7  ;;  %241 = vst.msk [vmem:[%s900_s3 + $0xa0] sm:$0xff] %vm220_vm0, %v176_v15  ;;  %v180_v25 = vadd.f32 %v322_v2, %v109_v18  ;;  %v113_v26 = vmul.f32 %v317_v1, %v42_v12  ;;  %v55_v53 = vld [vmem:[%s897_s0 + $0x148] sm:$0xff]  ;;  %v56_v54 = vld [vmem:[%s897_s0 + $0x150] sm:$0xff] }
  0x13   :  { %242 = vst.msk [vmem:[%s900_s3 + $0xa8] sm:$0xff] %vm220_vm0, %v177_v16  ;;  %243 = vst.msk [vmem:[%s900_s3 + $0xb0] sm:$0xff] %vm220_vm0, %v178_v17  ;;  %v114_v27 = vmul.f32 %v317_v1, %v43_v13  ;;  %v115_v28 = vmul.f32 %v317_v1, %v44_v14  ;;  %v181_v32 = vadd.f32 %v322_v2, %v110_v21  ;;  %v57_v55 = vld [vmem:[%s897_s0 + $0x158] sm:$0xff]  ;;  %v58_v60 = vld [vmem:[%s897_s0 + $0x160] sm:$0xff] }
  0x14   :  { %244 = vst.msk [vmem:[%s900_s3 + $0xb8] sm:$0xff] %vm220_vm0, %v179_v20  ;;  %v182_v33 = vadd.f32 %v322_v2, %v111_v22  ;;  %v183_v34 = vadd.f32 %v322_v2, %v112_v23  ;;  %v116_v35 = vmul.f32 %v317_v1, %v45_v19  ;;  %245 = vst.msk [vmem:[%s900_s3 + $0xc0] sm:$0xff] %vm220_vm0, %v180_v25  ;;  %v59_v61 = vld [vmem:[%s897_s0 + $0x168] sm:$0xff]  ;;  %v60_v62 = vld [vmem:[%s897_s0 + $0x170] sm:$0xff] }
  0x15   :  { %v184_v39 = vadd.f32 %v322_v2, %v113_v26  ;;  %v185_v40 = vadd.f32 %v322_v2, %v114_v27  ;;  %v186_v41 = vadd.f32 %v322_v2, %v115_v28  ;;  %v117_v42 = vmul.f32 %v317_v1, %v46_v24  ;;  %246 = vst.msk [vmem:[%s900_s3 + $0xc8] sm:$0xff] %vm220_vm0, %v181_v32  ;;  %v61_v5 = vld [vmem:[%s897_s0 + $0x178] sm:$0xff]  ;;  %v62_v10 = vld [vmem:[%s897_s0 + $0x180] sm:$0xff]  ;;  %v63_v15 = vld [vmem:[%s897_s0 + $0x188] sm:$0xff] }
  0x16   :  { %247 = vst.msk [vmem:[%s900_s3 + $0xd0] sm:$0xff] %vm220_vm0, %v182_v33  ;;  %248 = vst.msk [vmem:[%s900_s3 + $0xd8] sm:$0xff] %vm220_vm0, %v183_v34  ;;  %v187_v44 = vadd.f32 %v322_v2, %v116_v35  ;;  %v118_v45 = vmul.f32 %v317_v1, %v47_v29  ;;  %v119_v46 = vmul.f32 %v317_v1, %v48_v30  ;;  %v64_v16 = vld [vmem:[%s897_s0 + $0x190] sm:$0xff]  ;;  %v65_v17 = vld [vmem:[%s897_s0 + $0x198] sm:$0xff] }
  0x17   :  { %v120_v47 = vmul.f32 %v317_v1, %v49_v31  ;;  %249 = vst.msk [vmem:[%s900_s3 + $0xe0] sm:$0xff] %vm220_vm0, %v184_v39  ;;  %250 = vst.msk [vmem:[%s900_s3 + $0xe8] sm:$0xff] %vm220_vm0, %v185_v40  ;;  %v188_v49 = vadd.f32 %v322_v2, %v117_v42  ;;  %v121_v50 = vmul.f32 %v317_v1, %v50_v36  ;;  %v66_v22 = vld [vmem:[%s897_s0 + $0x1a0] sm:$0xff]  ;;  %v67_v23 = vld [vmem:[%s897_s0 + $0x1a8] sm:$0xff] }
  0x18   :  { %251 = vst.msk [vmem:[%s900_s3 + $0xf0] sm:$0xff] %vm220_vm0, %v186_v41  ;;  %v122_v51 = vmul.f32 %v317_v1, %v51_v37  ;;  %v123_v52 = vmul.f32 %v317_v1, %v52_v38  ;;  %252 = vst.msk [vmem:[%s900_s3 + $0xf8] sm:$0xff] %vm220_vm0, %v187_v44  ;;  %v189_v56 = vadd.f32 %v322_v2, %v118_v45  ;;  %v68_v24 = vld [vmem:[%s897_s0 + $0x1b0] sm:$0xff]  ;;  %v69_v29 = vld [vmem:[%s897_s0 + $0x1b8] sm:$0xff] }
  0x19   :  { %v190_v57 = vadd.f32 %v322_v2, %v119_v46  ;;  %v191_v58 = vadd.f32 %v322_v2, %v120_v47  ;;  %v124_v59 = vmul.f32 %v317_v1, %v53_v43  ;;  %253 = vst.msk [vmem:[%s900_s3 + $0x100] sm:$0xff] %vm220_vm0, %v188_v49  ;;  %v192_v63 = vadd.f32 %v322_v2, %v121_v50  ;;  %v70_v34 = vld [vmem:[%s897_s0 + $0x1c0] sm:$0xff]  ;;  %v71_v39 = vld [vmem:[%s897_s0 + $0x1c8] sm:$0xff]  ;;  %v72_v40 = vld [vmem:[%s897_s0 + $0x1d0] sm:$0xff] }
  0x1a   :  { %v193_v0 = vadd.f32 %v322_v2, %v122_v51  ;;  %v194_v3 = vadd.f32 %v322_v2, %v123_v52  ;;  %v125_v4 = vmul.f32 %v317_v1, %v54_v48  ;;  %254 = vst.msk [vmem:[%s900_s3 + $0x108] sm:$0xff] %vm220_vm0, %v189_v56  ;;  %v126_v7 = vmul.f32 %v317_v1, %v55_v53  ;;  %v73_v41 = vld [vmem:[%s897_s0 + $0x1d8] sm:$0xff]  ;;  %v74_v46 = vld [vmem:[%s897_s0 + $0x1e0] sm:$0xff]  ;;  %v75_v47 = vld [vmem:[%s897_s0 + $0x1e8] sm:$0xff] }
  0x1b   :  { %255 = vst.msk [vmem:[%s900_s3 + $0x110] sm:$0xff] %vm220_vm0, %v190_v57  ;;  %256 = vst.msk [vmem:[%s900_s3 + $0x118] sm:$0xff] %vm220_vm0, %v191_v58  ;;  %v195_v6 = vadd.f32 %v322_v2, %v124_v59  ;;  %v127_v8 = vmul.f32 %v317_v1, %v56_v54  ;;  %v128_v9 = vmul.f32 %v317_v1, %v57_v55  ;;  %v76_v48 = vld [vmem:[%s897_s0 + $0x1f0] sm:$0xff]  ;;  %v77_v53 = vld [vmem:[%s897_s0 + $0x1f8] sm:$0xff] }
  0x1c   :  { %257 = vst.msk [vmem:[%s900_s3 + $0x120] sm:$0xff] %vm220_vm0, %v192_v63  ;;  %258 = vst.msk [vmem:[%s900_s3 + $0x128] sm:$0xff] %vm220_vm0, %v193_v0  ;;  %v196_v11 = vadd.f32 %v322_v2, %v125_v4  ;;  %v129_v12 = vmul.f32 %v317_v1, %v58_v60  ;;  %v130_v13 = vmul.f32 %v317_v1, %v59_v61 }
  0x1d   :  { %259 = vst.msk [vmem:[%s900_s3 + $0x130] sm:$0xff] %vm220_vm0, %v194_v3  ;;  %v131_v14 = vmul.f32 %v317_v1, %v60_v62  ;;  %260 = vst.msk [vmem:[%s900_s3 + $0x138] sm:$0xff] %vm220_vm0, %v195_v6  ;;  %v197_v18 = vadd.f32 %v322_v2, %v126_v7  ;;  %v198_v19 = vadd.f32 %v322_v2, %v127_v8 }
  0x1e   :  { %v199_v20 = vadd.f32 %v322_v2, %v128_v9  ;;  %v132_v21 = vmul.f32 %v317_v1, %v61_v5  ;;  %261 = vst.msk [vmem:[%s900_s3 + $0x140] sm:$0xff] %vm220_vm0, %v196_v11  ;;  %v200_v25 = vadd.f32 %v322_v2, %v129_v12  ;;  %v201_v26 = vadd.f32 %v322_v2, %v130_v13 }
  0x1f   :  { %v202_v27 = vadd.f32 %v322_v2, %v131_v14  ;;  %v133_v28 = vmul.f32 %v317_v1, %v62_v10  ;;  %262 = vst.msk [vmem:[%s900_s3 + $0x148] sm:$0xff] %vm220_vm0, %v197_v18  ;;  %263 = vst.msk [vmem:[%s900_s3 + $0x150] sm:$0xff] %vm220_vm0, %v198_v19  ;;  %v134_v31 = vmul.f32 %v317_v1, %v63_v15 }
  0x20   :  { %264 = vst.msk [vmem:[%s900_s3 + $0x158] sm:$0xff] %vm220_vm0, %v199_v20  ;;  %v203_v30 = vadd.f32 %v322_v2, %v132_v21  ;;  %v135_v32 = vmul.f32 %v317_v1, %v64_v16  ;;  %v136_v33 = vmul.f32 %v317_v1, %v65_v17  ;;  %265 = vst.msk [vmem:[%s900_s3 + $0x160] sm:$0xff] %vm220_vm0, %v200_v25 }
  0x21   :  { %266 = vst.msk [vmem:[%s900_s3 + $0x168] sm:$0xff] %vm220_vm0, %v201_v26  ;;  %267 = vst.msk [vmem:[%s900_s3 + $0x170] sm:$0xff] %vm220_vm0, %v202_v27  ;;  %v204_v35 = vadd.f32 %v322_v2, %v133_v28  ;;  %v137_v36 = vmul.f32 %v317_v1, %v66_v22  ;;  %v138_v37 = vmul.f32 %v317_v1, %v67_v23 }
  0x22   :  { %v139_v38 = vmul.f32 %v317_v1, %v68_v24  ;;  %268 = vst.msk [vmem:[%s900_s3 + $0x178] sm:$0xff] %vm220_vm0, %v203_v30  ;;  %v205_v42 = vadd.f32 %v322_v2, %v134_v31  ;;  %v206_v43 = vadd.f32 %v322_v2, %v135_v32  ;;  %v207_v44 = vadd.f32 %v322_v2, %v136_v33 }
  0x23   :  { %v140_v45 = vmul.f32 %v317_v1, %v69_v29  ;;  %269 = vst.msk [vmem:[%s900_s3 + $0x180] sm:$0xff] %vm220_vm0, %v204_v35  ;;  %v208_v49 = vadd.f32 %v322_v2, %v137_v36  ;;  %v209_v50 = vadd.f32 %v322_v2, %v138_v37  ;;  %v141_v52 = vmul.f32 %v317_v1, %v70_v34 }
  0x24   :  { %v210_v51 = vadd.f32 %v322_v2, %v139_v38  ;;  %270 = vst.msk [vmem:[%s900_s3 + $0x188] sm:$0xff] %vm220_vm0, %v205_v42  ;;  %271 = vst.msk [vmem:[%s900_s3 + $0x190] sm:$0xff] %vm220_vm0, %v206_v43  ;;  %v142_v55 = vmul.f32 %v317_v1, %v71_v39  ;;  %v143_v56 = vmul.f32 %v317_v1, %v72_v40 }
  0x25   :  { %272 = vst.msk [vmem:[%s900_s3 + $0x198] sm:$0xff] %vm220_vm0, %v207_v44  ;;  %v211_v54 = vadd.f32 %v322_v2, %v140_v45  ;;  %v144_v57 = vmul.f32 %v317_v1, %v73_v41  ;;  %273 = vst.msk [vmem:[%s900_s3 + $0x1a0] sm:$0xff] %vm220_vm0, %v208_v49  ;;  %v212_v58 = vadd.f32 %v322_v2, %v141_v52 }
  0x26   :  { %274 = vst.msk [vmem:[%s900_s3 + $0x1a8] sm:$0xff] %vm220_vm0, %v209_v50  ;;  %275 = vst.msk [vmem:[%s900_s3 + $0x1b0] sm:$0xff] %vm220_vm0, %v210_v51  ;;  %v145_v59 = vmul.f32 %v317_v1, %v74_v46  ;;  %v146_v60 = vmul.f32 %v317_v1, %v75_v47  ;;  %v147_v61 = vmul.f32 %v317_v1, %v76_v48 }
  0x27   :  { %276 = vst.msk [vmem:[%s900_s3 + $0x1b8] sm:$0xff] %vm220_vm0, %v211_v54  ;;  %v213_v62 = vadd.f32 %v322_v2, %v142_v55  ;;  %v214_v63 = vadd.f32 %v322_v2, %v143_v56  ;;  %v215_v0 = vadd.f32 %v322_v2, %v144_v57  ;;  %v148_v3 = vmul.f32 %v317_v1, %v77_v53 }
  0x28   :  { %277 = vst.msk [vmem:[%s900_s3 + $0x1c0] sm:$0xff] %vm220_vm0, %v212_v58  ;;  %v216_v4 = vadd.f32 %v322_v2, %v145_v59  ;;  %v217_v5 = vadd.f32 %v322_v2, %v146_v60  ;;  %v218_v6 = vadd.f32 %v322_v2, %v147_v61 }
  0x29   :  { %278 = vst.msk [vmem:[%s900_s3 + $0x1c8] sm:$0xff] %vm220_vm0, %v213_v62  ;;  %279 = vst.msk [vmem:[%s900_s3 + $0x1d0] sm:$0xff] %vm220_vm0, %v214_v63  ;;  %v219_v1 = vadd.f32 %v322_v2, %v148_v3 }
  0x2a   :  { %280 = vst.msk [vmem:[%s900_s3 + $0x1d8] sm:$0xff] %vm220_vm0, %v215_v0  ;;  %281 = vst.msk [vmem:[%s900_s3 + $0x1e0] sm:$0xff] %vm220_vm0, %v216_v4 }
  0x2b   :  { %282 = vst.msk [vmem:[%s900_s3 + $0x1e8] sm:$0xff] %vm220_vm0, %v217_v5  ;;  %283 = vst.msk [vmem:[%s900_s3 + $0x1f0] sm:$0xff] %vm220_vm0, %v218_v6 }
  0x2c   :  { %284 = vst.msk [vmem:[%s900_s3 + $0x1f8] sm:$0xff] %vm220_vm0, %v219_v1 }

// kernel: _lambda_.74
= control target key start
LH: loop header
LB: loop body
LE: loop exit
PB: predicated region body
PF: predicated region fallthrough
CT: control target
= control target key end

     0   :  { %v1569_v6 = vmov 0   ;;  %vm467_vm0 = vcmask 523264   ;;  %s2169_s1 = inlined_call_operand.vmem [shape: bf16[64,128], index: 1, kind: input, shape index: {}]   ;;  %s2170_s0 = inlined_call_operand.vmem [shape: bf16[512,64], index: 0, kind: input, shape index: {}]   ;;  %s2171_s2 = inlined_call_operand.vmem [shape: f32[1,128], index: 2, kind: input, shape index: {}]   ;;  %s2172_s3 = inlined_call_operand.vmem [shape: f32[512,128], index: 3, kind: output, shape index: {}]  }
   0x1   :  { %v1437_v0 = vld [vmem:[%s2169_s1] sm:$0xff]   ;;  %v1438_v1 = vld [vmem:[%s2169_s1 + $0x8] sm:$0xff]   ;;  %v1439_v2 = vld [vmem:[%s2169_s1 + $0x10] sm:$0xff]  }
   0x2   :  { %1356 = vmatprep.subr.bf16.mxu0 %v1437_v0  ;;  %1428 = vmatprep.subr.bf16.mxu1 %v1437_v0  ;;  %v83_v3 = vld [vmem:[%s2170_s0] sm:$0xf]  ;;  %v84_v4 = vld [vmem:[%s2170_s0 + $0x4] sm:$0xf]  ;;  %v1440_v11 = vld [vmem:[%s2169_s1 + $0x18] sm:$0xff]  }
   0x3   :  { %1357 = vmatpush3.bf16.msra.mxu0 %v1437_v0  ;;  %1432 = vmatpush3.bf16.msra.mxu1 %v1437_v0  ;;  %v115_v5 = vld [vmem:[%s2170_s0 + $0x80] sm:$0xf]  ;;  %v147_v7 = vmax.bf16 %v1569_v6, %v83_v3  ;;  %v148_v8 = vmax.bf16 %v1569_v6, %v84_v4  ;;  %v116_v9 = vld [vmem:[%s2170_s0 + $0x84] sm:$0xf]  ;;  %v85_v13 = vld [vmem:[%s2170_s0 + $0x8] sm:$0xf] }
   0x4   :  { %1358 = vmatprep.subr.bf16.mxu0 %v1438_v1  ;;  %1429 = vmatprep.subr.bf16.mxu1 %v1438_v1  ;;  %v179_v10 = vmax.bf16 %v1569_v6, %v115_v5  ;;  %v180_v12 = vmax.bf16 %v1569_v6, %v116_v9  ;;  %v86_v14 = vld [vmem:[%s2170_s0 + $0xc] sm:$0xf]  ;;  %v117_v16 = vld [vmem:[%s2170_s0 + $0x88] sm:$0xf]  ;;  %v87_v18 = vld [vmem:[%s2170_s0 + $0x10] sm:$0xf]  ;;  %v149_v23 = vmax.bf16 %v1569_v6, %v85_v13 }
   0x5   :  { %v1251_v15 = vcombine.low %v147_v7, %v148_v8  ;;  %v118_v17 = vld [vmem:[%s2170_s0 + $0x8c] sm:$0xf]  ;;  %v88_v20 = vld [vmem:[%s2170_s0 + $0x14] sm:$0xf]  ;;  %v119_v21 = vld [vmem:[%s2170_s0 + $0x90] sm:$0xf]  ;;  %v150_v24 = vmax.bf16 %v1569_v6, %v86_v14  ;;  %v181_v25 = vmax.bf16 %v1569_v6, %v117_v16  ;;  %v151_v27 = vmax.bf16 %v1569_v6, %v87_v18 }
   0x6   :  { %v1267_v19 = vcombine.low %v179_v10, %v180_v12  ;;  %v120_v22 = vld [vmem:[%s2170_s0 + $0x94] sm:$0xf]  ;;  %v182_v26 = vmax.bf16 %v1569_v6, %v118_v17  ;;  %v152_v28 = vmax.bf16 %v1569_v6, %v88_v20  ;;  %v183_v29 = vmax.bf16 %v1569_v6, %v119_v21  ;;  %v89_v33 = vld [vmem:[%s2170_s0 + $0x18] sm:$0xf]  ;;  %v90_v34 = vld [vmem:[%s2170_s0 + $0x1c] sm:$0xf] }
   0x7   :  { %1359 = vmatpush3.bf16.msra.mxu0 %v1438_v1  ;;  %1433 = vmatpush3.bf16.msra.mxu1 %v1438_v1  ;;  %v184_v30 = vmax.bf16 %v1569_v6, %v120_v22  ;;  %v1252_v31 = vcombine.low %v149_v23, %v150_v24  ;;  %v121_v37 = vld [vmem:[%s2170_s0 + $0x98] sm:$0xf]  ;;  %v122_v38 = vld [vmem:[%s2170_s0 + $0x9c] sm:$0xf]  ;;  %v91_v39 = vld [vmem:[%s2170_s0 + $0x20] sm:$0xf]  ;;  %v153_v43 = vmax.bf16 %v1569_v6, %v89_v33 }
   0x8   :  { %1360 = vmatprep.subr.bf16.mxu0 %v1439_v2  ;;  %1430 = vmatprep.subr.bf16.mxu1 %v1439_v2  ;;  %v1268_v32 = vcombine.low %v181_v25, %v182_v26  ;;  %v1253_v35 = vcombine.low %v151_v27, %v152_v28  ;;  %v92_v40 = vld [vmem:[%s2170_s0 + $0x24] sm:$0xf]  ;;  %v123_v41 = vld [vmem:[%s2170_s0 + $0xa0] sm:$0xf]  ;;  %v154_v44 = vmax.bf16 %v1569_v6, %v90_v34  ;;  %v93_v53 = vld [vmem:[%s2170_s0 + $0x28] sm:$0xf] }
   0x9   :  { %1364 = vmatprep.mubr.msk.bf16.mxu0 %vm467_vm0, %v1251_v15  ;;  %1396 = vmatprep.mubr.msk.bf16.mxu1 %vm467_vm0, %v1267_v19  ;;  %v1269_v36 = vcombine.low %v183_v29, %v184_v30  ;;  %v124_v42 = vld [vmem:[%s2170_s0 + $0xa4] sm:$0xf]  ;;  %v185_v45 = vmax.bf16 %v1569_v6, %v121_v37  ;;  %v186_v46 = vmax.bf16 %v1569_v6, %v122_v38  ;;  %v94_v54 = vld [vmem:[%s2170_s0 + $0x2c] sm:$0xf]  ;;  %v125_v57 = vld [vmem:[%s2170_s0 + $0xa8] sm:$0xf] }
   0xa   :  { %v155_v47 = vmax.bf16 %v1569_v6, %v91_v39  ;;  %v156_v48 = vmax.bf16 %v1569_v6, %v92_v40  ;;  %v187_v49 = vmax.bf16 %v1569_v6, %v123_v41  ;;  %v188_v50 = vmax.bf16 %v1569_v6, %v124_v42  ;;  %v126_v58 = vld [vmem:[%s2170_s0 + $0xac] sm:$0xf]  ;;  %v95_v59 = vld [vmem:[%s2170_s0 + $0x30] sm:$0xf]  ;;  %v96_v60 = vld [vmem:[%s2170_s0 + $0x34] sm:$0xf] }
   0xb   :  { %1361 = vmatpush3.bf16.msra.mxu0 %v1439_v2  ;;  %1434 = vmatpush3.bf16.msra.mxu1 %v1439_v2  ;;  %v1254_v51 = vcombine.low %v153_v43, %v154_v44  ;;  %v1270_v52 = vcombine.low %v185_v45, %v186_v46  ;;  %v127_v61 = vld [vmem:[%s2170_s0 + $0xb0] sm:$0xf]  ;;  %v128_v62 = vld [vmem:[%s2170_s0 + $0xb4] sm:$0xf]  ;;  %v157_v63 = vmax.bf16 %v1569_v6, %v93_v53  ;;  %v113_v4 = vld [vmem:[%s2170_s0 + $0x78] sm:$0xf] }
   0xc   :  { %1362 = vmatprep.subr.bf16.mxu0 %v1440_v11  ;;  %1431 = vmatprep.subr.bf16.mxu1 %v1440_v11  ;;  %v1255_v55 = vcombine.low %v155_v47, %v156_v48  ;;  %v1271_v56 = vcombine.low %v187_v49, %v188_v50  ;;  %v158_v0 = vmax.bf16 %v1569_v6, %v94_v54  ;;  %v114_v5 = vld [vmem:[%s2170_s0 + $0x7c] sm:$0xf]  ;;  %v145_v10 = vld [vmem:[%s2170_s0 + $0xf8] sm:$0xf]  ;;  %v99_v24 = vld [vmem:[%s2170_s0 + $0x40] sm:$0xf] }
   0xd   :  { %v189_v1 = vmax.bf16 %v1569_v6, %v125_v57  ;;  %v190_v2 = vmax.bf16 %v1569_v6, %v126_v58  ;;  %v159_v3 = vmax.bf16 %v1569_v6, %v95_v59  ;;  %v160_v7 = vmax.bf16 %v1569_v6, %v96_v60  ;;  %v97_v16 = vld [vmem:[%s2170_s0 + $0x38] sm:$0xf]  ;;  %v98_v17 = vld [vmem:[%s2170_s0 + $0x3c] sm:$0xf]  ;;  %v100_v26 = vld [vmem:[%s2170_s0 + $0x44] sm:$0xf] }
   0xe   :  { %v191_v8 = vmax.bf16 %v1569_v6, %v127_v61  ;;  %v192_v9 = vmax.bf16 %v1569_v6, %v128_v62  ;;  %v1737_v12 = vmax.bf16 %v1569_v6, %v113_v4  ;;  %v1740_v13 = vmax.bf16 %v1569_v6, %v114_v5  ;;  %v129_v22 = vld [vmem:[%s2170_s0 + $0xb8] sm:$0xf]  ;;  %v130_v23 = vld [vmem:[%s2170_s0 + $0xbc] sm:$0xf]  ;;  %v131_v27 = vld [vmem:[%s2170_s0 + $0xc0] sm:$0xf] }
   0xf   :  { %1363 = vmatpush3.bf16.msra.mxu0 %v1440_v11  ;;  %1435 = vmatpush3.bf16.msra.mxu1 %v1440_v11  ;;  %v146_v11 = vld [vmem:[%s2170_s0 + $0xfc] sm:$0xf]  ;;  %v1256_v14 = vcombine.low %v157_v63, %v158_v0  ;;  %v1272_v15 = vcombine.low %v189_v1, %v190_v2  ;;  %v1749_v18 = vmax.bf16 %v1569_v6, %v145_v10  ;;  %v132_v28 = vld [vmem:[%s2170_s0 + $0xc4] sm:$0xf]  ;;  %v101_v40 = vld [vmem:[%s2170_s0 + $0x48] sm:$0xf] }
  0x10   :  { %v1752_v19 = vmax.bf16 %v1569_v6, %v146_v11  ;;  %v1257_v20 = vcombine.low %v159_v3, %v160_v7  ;;  %v1273_v21 = vcombine.low %v191_v8, %v192_v9  ;;  %v1266_v25 = vcombine.low %v1737_v12, %v1740_v13  ;;  %v102_v41 = vld [vmem:[%s2170_s0 + $0x4c] sm:$0xf]  ;;  %v133_v44 = vld [vmem:[%s2170_s0 + $0xc8] sm:$0xf]  ;;  %v103_v46 = vld [vmem:[%s2170_s0 + $0x50] sm:$0xf] }
  0x11   :  { %v161_v30 = vmax.bf16 %v1569_v6, %v97_v16  ;;  %v194_v33 = vmax.bf16 %v1569_v6, %v130_v23  ;;  %v163_v34 = vmax.bf16 %v1569_v6, %v99_v24  ;;  %v196_v37 = vmax.bf16 %v1569_v6, %v132_v28  ;;  %v134_v45 = vld [vmem:[%s2170_s0 + $0xcc] sm:$0xf]  ;;  %v104_v47 = vld [vmem:[%s2170_s0 + $0x54] sm:$0xf]  ;;  %v135_v48 = vld [vmem:[%s2170_s0 + $0xd0] sm:$0xf] }
  0x12   :  { %1365 = vmatmul.mubr.msk.bf16.vlgmr.msra.gmra.mrb[0].mxu0 %vm467_vm0, %v1252_v31  ;;  %1397 = vmatmul.mubr.msk.bf16.vlgmr.msra.gmra.mrb[0].mxu1 %vm467_vm0, %v1268_v32  ;;  %v1282_v29 = vcombine.low %v1749_v18, %v1752_v19  ;;  %v162_v31 = vmax.bf16 %v1569_v6, %v98_v17  ;;  %v193_v32 = vmax.bf16 %v1569_v6, %v129_v22  ;;  %v136_v49 = vld [vmem:[%s2170_s0 + $0xd4] sm:$0xf]  ;;  %v105_v60 = vld [vmem:[%s2170_s0 + $0x58] sm:$0xf]  ;;  %v106_v61 = vld [vmem:[%s2170_s0 + $0x5c] sm:$0xf] }
  0x13   :  { %1368 = vmatprep.mubr.msk.bf16.mxu0 %vm467_vm0, %v1253_v35  ;;  %1400 = vmatprep.mubr.msk.bf16.mxu1 %vm467_vm0, %v1269_v36  ;;  %v164_v35 = vmax.bf16 %v1569_v6, %v100_v26  ;;  %v195_v36 = vmax.bf16 %v1569_v6, %v131_v27  ;;  %v165_v50 = vmax.bf16 %v1569_v6, %v101_v40  ;;  %v137_v0 = vld [vmem:[%s2170_s0 + $0xd8] sm:$0xf]  ;;  %v138_v1 = vld [vmem:[%s2170_s0 + $0xdc] sm:$0xf]  ;;  %v107_v2 = vld [vmem:[%s2170_s0 + $0x60] sm:$0xf] }
  0x14   :  { %v1258_v38 = vcombine.low %v161_v30, %v162_v31  ;;  %v1274_v39 = vcombine.low %v193_v32, %v194_v33  ;;  %v198_v53 = vmax.bf16 %v1569_v6, %v134_v45  ;;  %v167_v54 = vmax.bf16 %v1569_v6, %v103_v46  ;;  %v108_v3 = vld [vmem:[%s2170_s0 + $0x64] sm:$0xf]  ;;  %v139_v4 = vld [vmem:[%s2170_s0 + $0xe0] sm:$0xf]  ;;  %v110_v22 = vld [vmem:[%s2170_s0 + $0x6c] sm:$0xf] }
  0x15   :  { %v1259_v42 = vcombine.low %v163_v34, %v164_v35  ;;  %v1275_v43 = vcombine.low %v195_v36, %v196_v37  ;;  %v200_v57 = vmax.bf16 %v1569_v6, %v136_v49  ;;  %v140_v5 = vld [vmem:[%s2170_s0 + $0xe4] sm:$0xf]  ;;  %v169_v7 = vmax.bf16 %v1569_v6, %v105_v60  ;;  %v141_v26 = vld [vmem:[%s2170_s0 + $0xe8] sm:$0xf]  ;;  %v142_v27 = vld [vmem:[%s2170_s0 + $0xec] sm:$0xf] }
  0x16   :  { %v170_v8 = vmax.bf16 %v1569_v6, %v106_v61  ;;  %v201_v9 = vmax.bf16 %v1569_v6, %v137_v0  ;;  %v202_v10 = vmax.bf16 %v1569_v6, %v138_v1  ;;  %v171_v11 = vmax.bf16 %v1569_v6, %v107_v2  ;;  %v111_v28 = vld [vmem:[%s2170_s0 + $0x70] sm:$0xf]  ;;  %v112_v30 = vld [vmem:[%s2170_s0 + $0x74] sm:$0xf] }
  0x17   :  { %v204_v16 = vmax.bf16 %v1569_v6, %v140_v5  ;;  %v143_v31 = vld [vmem:[%s2170_s0 + $0xf0] sm:$0xf]  ;;  %v144_v32 = vld [vmem:[%s2170_s0 + $0xf4] sm:$0xf]  ;;  %v174_v34 = vmax.bf16 %v1569_v6, %v110_v22  ;;  %v205_v35 = vmax.bf16 %v1569_v6, %v141_v26  ;;  %v206_v36 = vmax.bf16 %v1569_v6, %v142_v27 }
  0x18   :  { %v1262_v17 = vcombine.low %v169_v7, %v170_v8  ;;  %v175_v37 = vmax.bf16 %v1569_v6, %v111_v28  ;;  %v208_v40 = vmax.bf16 %v1569_v6, %v144_v32 }
  0x1a   :  { %1369 = vmatmul.mubr.msk.bf16.gmra.mrb[4].mxu0 %vm467_vm0, %v1254_v51  ;;  %1401 = vmatmul.mubr.msk.bf16.gmra.mrb[4].mxu1 %vm467_vm0, %v1270_v52  ;;  %v166_v51 = vmax.bf16 %v1569_v6, %v102_v41  ;;  %v197_v52 = vmax.bf16 %v1569_v6, %v133_v44 }
  0x1b   :  { %1372 = vmatprep.mubr.msk.bf16.mxu0 %vm467_vm0, %v1255_v55  ;;  %1404 = vmatprep.mubr.msk.bf16.mxu1 %vm467_vm0, %v1271_v56  ;;  %v168_v55 = vmax.bf16 %v1569_v6, %v104_v47  ;;  %v199_v56 = vmax.bf16 %v1569_v6, %v135_v48 }
  0x1c   :  { %v1260_v58 = vcombine.low %v165_v50, %v166_v51  ;;  %v1276_v59 = vcombine.low %v197_v52, %v198_v53 }
  0x1d   :  { %v1261_v62 = vcombine.low %v167_v54, %v168_v55  ;;  %v1277_v63 = vcombine.low %v199_v56, %v200_v57 }
  0x22   :  { %1373 = vmatmul.mubr.msk.bf16.gmra.mrb[8].mxu0 %vm467_vm0, %v1256_v14  ;;  %1405 = vmatmul.mubr.msk.bf16.gmra.mrb[8].mxu1 %vm467_vm0, %v1272_v15  ;;  %v172_v14 = vmax.bf16 %v1569_v6, %v108_v3  ;;  %v203_v15 = vmax.bf16 %v1569_v6, %v139_v4 }
  0x23   :  { %1376 = vmatprep.mubr.msk.bf16.mxu0 %vm467_vm0, %v1257_v20  ;;  %1408 = vmatprep.mubr.msk.bf16.mxu1 %vm467_vm0, %v1273_v21  ;;  %v1278_v20 = vcombine.low %v201_v9, %v202_v10  ;;  %v109_v21 = vld [vmem:[%s2170_s0 + $0x68] sm:$0xf] }
  0x24   :  { %v1263_v23 = vcombine.low %v171_v11, %v172_v14  ;;  %v1279_v24 = vcombine.low %v203_v15, %v204_v16  ;;  %v173_v33 = vmax.bf16 %v1569_v6, %v109_v21 }
  0x26   :  { %v1264_v41 = vcombine.low %v173_v33, %v174_v34 }
  0x2a   :  { %1377 = vmatmul.mubr.msk.bf16.gmra.mrb[12].mxu0 %vm467_vm0, %v1258_v38  ;;  %1409 = vmatmul.mubr.msk.bf16.gmra.mrb[12].mxu1 %vm467_vm0, %v1274_v39  ;;  %v176_v38 = vmax.bf16 %v1569_v6, %v112_v30  ;;  %v207_v39 = vmax.bf16 %v1569_v6, %v143_v31  ;;  %v1911_v6 = vld [vmem:[%s2171_s2] ss:$0 sm:$0xff] }
  0x2b   :  { %1380 = vmatprep.mubr.msk.bf16.mxu0 %vm467_vm0, %v1259_v42  ;;  %1412 = vmatprep.mubr.msk.bf16.mxu1 %vm467_vm0, %v1275_v43  ;;  %v1280_v42 = vcombine.low %v205_v35, %v206_v36 }
  0x2c   :  { %v1265_v43 = vcombine.low %v175_v37, %v176_v38  ;;  %v1281_v44 = vcombine.low %v207_v39, %v208_v40 }
  0x32   :  { %1381 = vmatmul.mubr.msk.bf16.gmra.mrb[16].mxu0 %vm467_vm0, %v1260_v58  ;;  %1413 = vmatmul.mubr.msk.bf16.gmra.mrb[16].mxu1 %vm467_vm0, %v1276_v59 }
  0x33   :  { %1384 = vmatprep.mubr.msk.bf16.mxu0 %vm467_vm0, %v1261_v62  ;;  %1416 = vmatprep.mubr.msk.bf16.mxu1 %vm467_vm0, %v1277_v63 }
  0x3a   :  { %1385 = vmatmul.mubr.msk.bf16.gmra.mrb[20].mxu0 %vm467_vm0, %v1262_v17  ;;  %1417 = vmatmul.mubr.msk.bf16.gmra.mrb[20].mxu1 %vm467_vm0, %v1278_v20 }
  0x3b   :  { %1388 = vmatprep.mubr.msk.bf16.mxu0 %vm467_vm0, %v1263_v23  ;;  %1420 = vmatprep.mubr.msk.bf16.mxu1 %vm467_vm0, %v1279_v24 }
  0x42   :  { %1389 = vmatmul.mubr.msk.bf16.gmra.mrb[24].mxu0 %vm467_vm0, %v1264_v41  ;;  %1421 = vmatmul.mubr.msk.bf16.gmra.mrb[24].mxu1 %vm467_vm0, %v1280_v42 }
  0x43   :  { %1392 = vmatprep.mubr.msk.bf16.mxu0 %vm467_vm0, %v1265_v43  ;;  %1424 = vmatprep.mubr.msk.bf16.mxu1 %vm467_vm0, %v1281_v44 }
  0x4a   :  { %1393 = vmatmul.mubr.msk.bf16.gmra.mrb[28].mxu0 %vm467_vm0, %v1266_v25  ;;  %1425 = vmatmul.mubr.msk.bf16.gmra.mrb[28].mxu1 %vm467_vm0, %v1282_v29 }
  0xe5   :  { %v1366_v45 = vpop.f32.mrb[0].mxu0  ;;  %v1398_v46 = vpop.f32.mrb[0].mxu1 }
  0xe6   :  { %v1057_v47 = vadd.f32 %v1366_v45, %v1911_v6  ;;  %v1089_v48 = vadd.f32 %v1398_v46, %v1911_v6  ;;  %v598_v49 = vpop.f32.mrb[1].mxu0  ;;  %v726_v12 = vpop.f32.mrb[1].mxu1 }
  0xe7   :  { %v1055_v13 = vadd.f32 %v1911_v6, %v598_v49  ;;  %v1087_v25 = vadd.f32 %v1911_v6, %v726_v12  ;;  %v1367_v18 = vpop.f32.mrb[2].mxu0  ;;  %v1399_v19 = vpop.f32.mrb[2].mxu1 }
  0xe8   :  { %1441 = vtanh.f32 %v1057_v47  ;;  %v1058_v29 = vadd.f32 %v1367_v18, %v1911_v6  ;;  %v601_v50 = vpop.f32.mrb[3].mxu0  ;;  %v729_v51 = vpop.f32.mrb[3].mxu1  ;;  %v1090_v52 = vadd.f32 %v1399_v19, %v1911_v6 }
  0xe9   :  { %1443 = vtanh.f32 %v1089_v48  ;;  %v1056_v53 = vadd.f32 %v1911_v6, %v601_v50  ;;  %v1088_v54 = vadd.f32 %v1911_v6, %v729_v51 }
  0xea   :  { %1445 = vtanh.f32 %v1055_v13 }
  0xeb   :  { %1447 = vtanh.f32 %v1087_v25 }
  0xec   :  { %1449 = vtanh.f32 %v1058_v29 }
  0xed   :  { %1451 = vtanh.f32 %v1090_v52  ;;  %v1370_v55 = vpop.f32.mrb[4].mxu0  ;;  %v1402_v56 = vpop.f32.mrb[4].mxu1 }
  0xee   :  { %1453 = vtanh.f32 %v1056_v53  ;;  %v1061_v57 = vadd.f32 %v1370_v55, %v1911_v6  ;;  %v1093_v58 = vadd.f32 %v1402_v56, %v1911_v6  ;;  %v614_v59 = vpop.f32.mrb[5].mxu0  ;;  %v742_v60 = vpop.f32.mrb[5].mxu1 }
  0xef   :  { %1455 = vtanh.f32 %v1088_v54  ;;  %v1059_v61 = vadd.f32 %v1911_v6, %v614_v59  ;;  %v1091_v62 = vadd.f32 %v1911_v6, %v742_v60  ;;  %v1371_v63 = vpop.f32.mrb[6].mxu0  ;;  %v1403_v0 = vpop.f32.mrb[6].mxu1 }
  0xf0   :  { %1457 = vtanh.f32 %v1061_v57  ;;  %v1062_v1 = vadd.f32 %v1371_v63, %v1911_v6  ;;  %v617_v2 = vpop.f32.mrb[7].mxu0  ;;  %v745_v3 = vpop.f32.mrb[7].mxu1  ;;  %v1094_v4 = vadd.f32 %v1403_v0, %v1911_v6 }
  0xf1   :  { %1459 = vtanh.f32 %v1093_v58  ;;  %v1060_v7 = vadd.f32 %v1911_v6, %v617_v2  ;;  %v1092_v9 = vadd.f32 %v1911_v6, %v745_v3 }
  0xf2   :  { %v1442_v5 = vpop.eup %1441  ;;  %1461 = vtanh.f32 %v1059_v61 }
  0xf3   :  { %v1444_v8 = vpop.eup %1443  ;;  %1185 = vst [vmem:[%s2172_s3 + $0x10] sm:$0xff] %v1442_v5  ;;  %1463 = vtanh.f32 %v1091_v62 }
  0xf4   :  { %v1446_v10 = vpop.eup %1445  ;;  %1217 = vst [vmem:[%s2172_s3 + $0x110] sm:$0xff] %v1444_v8  ;;  %1465 = vtanh.f32 %v1062_v1 }
  0xf5   :  { %v1448_v11 = vpop.eup %1447  ;;  %1183 = vst [vmem:[%s2172_s3] sm:$0xff] %v1446_v10  ;;  %1467 = vtanh.f32 %v1094_v4  ;;  %v1374_v14 = vpop.f32.mrb[8].mxu0 }
  0xf6   :  { %v1406_v15 = vpop.f32.mrb[8].mxu1  ;;  %v1450_v16 = vpop.eup %1449  ;;  %1215 = vst [vmem:[%s2172_s3 + $0x100] sm:$0xff] %v1448_v11  ;;  %1469 = vtanh.f32 %v1060_v7  ;;  %v1065_v17 = vadd.f32 %v1374_v14, %v1911_v6 }
  0xf7   :  { %v1097_v20 = vadd.f32 %v1406_v15, %v1911_v6  ;;  %v630_v21 = vpop.f32.mrb[9].mxu0  ;;  %v758_v22 = vpop.f32.mrb[9].mxu1  ;;  %1186 = vst [vmem:[%s2172_s3 + $0x18] sm:$0xff] %v1450_v16  ;;  %1471 = vtanh.f32 %v1092_v9 }
  0xf8   :  { %v1452_v23 = vpop.eup %1451  ;;  %v1063_v24 = vadd.f32 %v1911_v6, %v630_v21  ;;  %v1095_v26 = vadd.f32 %v1911_v6, %v758_v22  ;;  %v1375_v27 = vpop.f32.mrb[10].mxu0  ;;  %1473 = vtanh.f32 %v1065_v17 }
  0xf9   :  { %v1407_v28 = vpop.f32.mrb[10].mxu1  ;;  %v1454_v30 = vpop.eup %1453  ;;  %1218 = vst [vmem:[%s2172_s3 + $0x118] sm:$0xff] %v1452_v23  ;;  %v1066_v31 = vadd.f32 %v1375_v27, %v1911_v6  ;;  %1475 = vtanh.f32 %v1097_v20 }
  0xfa   :  { %v633_v32 = vpop.f32.mrb[11].mxu0  ;;  %v761_v33 = vpop.f32.mrb[11].mxu1  ;;  %1184 = vst [vmem:[%s2172_s3 + $0x8] sm:$0xff] %v1454_v30  ;;  %v1098_v35 = vadd.f32 %v1407_v28, %v1911_v6  ;;  %1477 = vtanh.f32 %v1063_v24 }
  0xfb   :  { %v1456_v34 = vpop.eup %1455  ;;  %v1064_v37 = vadd.f32 %v1911_v6, %v633_v32  ;;  %1479 = vtanh.f32 %v1095_v26  ;;  %v1096_v39 = vadd.f32 %v1911_v6, %v761_v33 }
  0xfc   :  { %v1458_v36 = vpop.eup %1457  ;;  %1216 = vst [vmem:[%s2172_s3 + $0x108] sm:$0xff] %v1456_v34  ;;  %1481 = vtanh.f32 %v1066_v31 }
  0xfd   :  { %v1460_v38 = vpop.eup %1459  ;;  %1189 = vst [vmem:[%s2172_s3 + $0x30] sm:$0xff] %v1458_v36  ;;  %1483 = vtanh.f32 %v1098_v35  ;;  %v1378_v42 = vpop.f32.mrb[12].mxu0 }
  0xfe   :  { %v1462_v40 = vpop.eup %1461  ;;  %1221 = vst [vmem:[%s2172_s3 + $0x130] sm:$0xff] %v1460_v38  ;;  %v1410_v43 = vpop.f32.mrb[12].mxu1  ;;  %1485 = vtanh.f32 %v1064_v37  ;;  %v1069_v45 = vadd.f32 %v1378_v42, %v1911_v6 }
  0xff   :  { %v1464_v41 = vpop.eup %1463  ;;  %1187 = vst [vmem:[%s2172_s3 + $0x20] sm:$0xff] %v1462_v40  ;;  %v1101_v46 = vadd.f32 %v1410_v43, %v1911_v6  ;;  %v646_v47 = vpop.f32.mrb[13].mxu0  ;;  %1487 = vtanh.f32 %v1096_v39 }
 0x100   :  { %v1466_v44 = vpop.eup %1465  ;;  %1219 = vst [vmem:[%s2172_s3 + $0x120] sm:$0xff] %v1464_v41  ;;  %v774_v48 = vpop.f32.mrb[13].mxu1  ;;  %v1067_v12 = vadd.f32 %v1911_v6, %v646_v47  ;;  %1489 = vtanh.f32 %v1069_v45 }
 0x101   :  { %v1468_v49 = vpop.eup %1467  ;;  %1190 = vst [vmem:[%s2172_s3 + $0x38] sm:$0xff] %v1466_v44  ;;  %v1099_v13 = vadd.f32 %v1911_v6, %v774_v48  ;;  %v1379_v25 = vpop.f32.mrb[14].mxu0  ;;  %1491 = vtanh.f32 %v1101_v46 }
 0x102   :  { %v1411_v18 = vpop.f32.mrb[14].mxu1  ;;  %v1470_v19 = vpop.eup %1469  ;;  %1222 = vst [vmem:[%s2172_s3 + $0x138] sm:$0xff] %v1468_v49  ;;  %v1070_v29 = vadd.f32 %v1379_v25, %v1911_v6  ;;  %1493 = vtanh.f32 %v1067_v12 }
 0x103   :  { %v649_v50 = vpop.f32.mrb[15].mxu0  ;;  %v777_v51 = vpop.f32.mrb[15].mxu1  ;;  %1188 = vst [vmem:[%s2172_s3 + $0x28] sm:$0xff] %v1470_v19  ;;  %v1102_v53 = vadd.f32 %v1411_v18, %v1911_v6  ;;  %1495 = vtanh.f32 %v1099_v13 }
 0x104   :  { %v1472_v52 = vpop.eup %1471  ;;  %v1068_v55 = vadd.f32 %v1911_v6, %v649_v50  ;;  %v1100_v57 = vadd.f32 %v1911_v6, %v777_v51  ;;  %1497 = vtanh.f32 %v1070_v29 }
 0x105   :  { %v1474_v54 = vpop.eup %1473  ;;  %1220 = vst [vmem:[%s2172_s3 + $0x128] sm:$0xff] %v1472_v52  ;;  %1499 = vtanh.f32 %v1102_v53  ;;  %v1382_v60 = vpop.f32.mrb[16].mxu0 }
 0x106   :  { %v1476_v56 = vpop.eup %1475  ;;  %1193 = vst [vmem:[%s2172_s3 + $0x50] sm:$0xff] %v1474_v54  ;;  %v1414_v61 = vpop.f32.mrb[16].mxu1  ;;  %1501 = vtanh.f32 %v1068_v55  ;;  %v1073_v63 = vadd.f32 %v1382_v60, %v1911_v6 }
 0x107   :  { %v1478_v58 = vpop.eup %1477  ;;  %1225 = vst [vmem:[%s2172_s3 + $0x150] sm:$0xff] %v1476_v56  ;;  %v1105_v0 = vadd.f32 %v1414_v61, %v1911_v6  ;;  %v662_v1 = vpop.f32.mrb[17].mxu0  ;;  %1503 = vtanh.f32 %v1100_v57 }
 0x108   :  { %v1480_v59 = vpop.eup %1479  ;;  %1191 = vst [vmem:[%s2172_s3 + $0x40] sm:$0xff] %v1478_v58  ;;  %v790_v2 = vpop.f32.mrb[17].mxu1  ;;  %v1071_v4 = vadd.f32 %v1911_v6, %v662_v1  ;;  %1505 = vtanh.f32 %v1073_v63 }
 0x109   :  { %v1482_v62 = vpop.eup %1481  ;;  %1223 = vst [vmem:[%s2172_s3 + $0x140] sm:$0xff] %v1480_v59  ;;  %v1103_v5 = vadd.f32 %v1911_v6, %v790_v2  ;;  %v1383_v7 = vpop.f32.mrb[18].mxu0  ;;  %1507 = vtanh.f32 %v1105_v0 }
 0x10a   :  { %v1484_v3 = vpop.eup %1483  ;;  %1194 = vst [vmem:[%s2172_s3 + $0x58] sm:$0xff] %v1482_v62  ;;  %v1415_v8 = vpop.f32.mrb[18].mxu1  ;;  %v1074_v10 = vadd.f32 %v1383_v7, %v1911_v6  ;;  %1509 = vtanh.f32 %v1071_v4 }
 0x10b   :  { %v1486_v9 = vpop.eup %1485  ;;  %1226 = vst [vmem:[%s2172_s3 + $0x158] sm:$0xff] %v1484_v3  ;;  %v665_v11 = vpop.f32.mrb[19].mxu0  ;;  %v1106_v16 = vadd.f32 %v1415_v8, %v1911_v6  ;;  %1511 = vtanh.f32 %v1103_v5 }
 0x10c   :  { %v793_v14 = vpop.f32.mrb[19].mxu1  ;;  %v1488_v15 = vpop.eup %1487  ;;  %1192 = vst [vmem:[%s2172_s3 + $0x48] sm:$0xff] %v1486_v9  ;;  %v1072_v20 = vadd.f32 %v1911_v6, %v665_v11  ;;  %1513 = vtanh.f32 %v1074_v10 }
 0x10d   :  { %v1490_v17 = vpop.eup %1489  ;;  %1224 = vst [vmem:[%s2172_s3 + $0x148] sm:$0xff] %v1488_v15  ;;  %v1104_v22 = vadd.f32 %v1911_v6, %v793_v14  ;;  %1515 = vtanh.f32 %v1106_v16  ;;  %v1386_v26 = vpop.f32.mrb[20].mxu0 }
 0x10e   :  { %v1492_v21 = vpop.eup %1491  ;;  %1197 = vst [vmem:[%s2172_s3 + $0x70] sm:$0xff] %v1490_v17  ;;  %v1418_v27 = vpop.f32.mrb[20].mxu1  ;;  %1517 = vtanh.f32 %v1072_v20  ;;  %v1077_v30 = vadd.f32 %v1386_v26, %v1911_v6 }
 0x10f   :  { %v1494_v23 = vpop.eup %1493  ;;  %1229 = vst [vmem:[%s2172_s3 + $0x170] sm:$0xff] %v1492_v21  ;;  %v1109_v31 = vadd.f32 %v1418_v27, %v1911_v6  ;;  %v678_v32 = vpop.f32.mrb[21].mxu0  ;;  %1519 = vtanh.f32 %v1104_v22 }
 0x110   :  { %v1496_v24 = vpop.eup %1495  ;;  %1195 = vst [vmem:[%s2172_s3 + $0x60] sm:$0xff] %v1494_v23  ;;  %v806_v33 = vpop.f32.mrb[21].mxu1  ;;  %v1075_v35 = vadd.f32 %v1911_v6, %v678_v32  ;;  %1521 = vtanh.f32 %v1077_v30 }
 0x111   :  { %v1498_v28 = vpop.eup %1497  ;;  %1227 = vst [vmem:[%s2172_s3 + $0x160] sm:$0xff] %v1496_v24  ;;  %v1107_v36 = vadd.f32 %v1911_v6, %v806_v33  ;;  %v1387_v37 = vpop.f32.mrb[22].mxu0  ;;  %1523 = vtanh.f32 %v1109_v31 }
 0x112   :  { %v1500_v34 = vpop.eup %1499  ;;  %1198 = vst [vmem:[%s2172_s3 + $0x78] sm:$0xff] %v1498_v28  ;;  %v1419_v38 = vpop.f32.mrb[22].mxu1  ;;  %v1078_v40 = vadd.f32 %v1387_v37, %v1911_v6  ;;  %1525 = vtanh.f32 %v1075_v35 }
 0x113   :  { %v1502_v39 = vpop.eup %1501  ;;  %1230 = vst [vmem:[%s2172_s3 + $0x178] sm:$0xff] %v1500_v34  ;;  %v681_v41 = vpop.f32.mrb[23].mxu0  ;;  %v1110_v44 = vadd.f32 %v1419_v38, %v1911_v6  ;;  %1527 = vtanh.f32 %v1107_v36 }
 0x114   :  { %v809_v42 = vpop.f32.mrb[23].mxu1  ;;  %v1504_v43 = vpop.eup %1503  ;;  %1196 = vst [vmem:[%s2172_s3 + $0x68] sm:$0xff] %v1502_v39  ;;  %v1076_v46 = vadd.f32 %v1911_v6, %v681_v41  ;;  %1529 = vtanh.f32 %v1078_v40 }
 0x115   :  { %v1506_v45 = vpop.eup %1505  ;;  %1228 = vst [vmem:[%s2172_s3 + $0x168] sm:$0xff] %v1504_v43  ;;  %v1108_v48 = vadd.f32 %v1911_v6, %v809_v42  ;;  %1531 = vtanh.f32 %v1110_v44  ;;  %v1390_v13 = vpop.f32.mrb[24].mxu0 }
 0x116   :  { %v1508_v47 = vpop.eup %1507  ;;  %1201 = vst [vmem:[%s2172_s3 + $0x90] sm:$0xff] %v1506_v45  ;;  %v1422_v25 = vpop.f32.mrb[24].mxu1  ;;  %1533 = vtanh.f32 %v1076_v46  ;;  %v1081_v19 = vadd.f32 %v1390_v13, %v1911_v6 }
 0x117   :  { %v1510_v49 = vpop.eup %1509  ;;  %1233 = vst [vmem:[%s2172_s3 + $0x190] sm:$0xff] %v1508_v47  ;;  %v1113_v29 = vadd.f32 %v1422_v25, %v1911_v6  ;;  %v694_v50 = vpop.f32.mrb[25].mxu0  ;;  %1535 = vtanh.f32 %v1108_v48 }
 0x118   :  { %v1512_v12 = vpop.eup %1511  ;;  %1199 = vst [vmem:[%s2172_s3 + $0x80] sm:$0xff] %v1510_v49  ;;  %v822_v51 = vpop.f32.mrb[25].mxu1  ;;  %v1079_v53 = vadd.f32 %v1911_v6, %v694_v50  ;;  %1537 = vtanh.f32 %v1081_v19 }
 0x119   :  { %v1514_v18 = vpop.eup %1513  ;;  %1231 = vst [vmem:[%s2172_s3 + $0x180] sm:$0xff] %v1512_v12  ;;  %v1111_v54 = vadd.f32 %v1911_v6, %v822_v51  ;;  %v1391_v55 = vpop.f32.mrb[26].mxu0  ;;  %1539 = vtanh.f32 %v1113_v29 }
 0x11a   :  { %v1516_v52 = vpop.eup %1515  ;;  %1202 = vst [vmem:[%s2172_s3 + $0x98] sm:$0xff] %v1514_v18  ;;  %v1423_v56 = vpop.f32.mrb[26].mxu1  ;;  %v1082_v58 = vadd.f32 %v1391_v55, %v1911_v6  ;;  %1541 = vtanh.f32 %v1079_v53 }
 0x11b   :  { %v1518_v57 = vpop.eup %1517  ;;  %1234 = vst [vmem:[%s2172_s3 + $0x198] sm:$0xff] %v1516_v52  ;;  %v697_v59 = vpop.f32.mrb[27].mxu0  ;;  %v1114_v62 = vadd.f32 %v1423_v56, %v1911_v6  ;;  %1543 = vtanh.f32 %v1111_v54 }
 0x11c   :  { %v825_v60 = vpop.f32.mrb[27].mxu1  ;;  %v1520_v61 = vpop.eup %1519  ;;  %1200 = vst [vmem:[%s2172_s3 + $0x88] sm:$0xff] %v1518_v57  ;;  %v1080_v0 = vadd.f32 %v1911_v6, %v697_v59  ;;  %1545 = vtanh.f32 %v1082_v58 }
 0x11d   :  { %v1522_v63 = vpop.eup %1521  ;;  %1232 = vst [vmem:[%s2172_s3 + $0x188] sm:$0xff] %v1520_v61  ;;  %v1112_v2 = vadd.f32 %v1911_v6, %v825_v60  ;;  %1547 = vtanh.f32 %v1114_v62  ;;  %v1394_v5 = vpop.f32.mrb[28].mxu0 }
 0x11e   :  { %v1524_v1 = vpop.eup %1523  ;;  %1205 = vst [vmem:[%s2172_s3 + $0xb0] sm:$0xff] %v1522_v63  ;;  %v1426_v7 = vpop.f32.mrb[28].mxu1  ;;  %1549 = vtanh.f32 %v1080_v0  ;;  %v1085_v9 = vadd.f32 %v1394_v5, %v1911_v6 }
 0x11f   :  { %v1526_v3 = vpop.eup %1525  ;;  %1237 = vst [vmem:[%s2172_s3 + $0x1b0] sm:$0xff] %v1524_v1  ;;  %v1117_v10 = vadd.f32 %v1426_v7, %v1911_v6  ;;  %v710_v11 = vpop.f32.mrb[29].mxu0  ;;  %1551 = vtanh.f32 %v1112_v2 }
 0x120   :  { %v1528_v4 = vpop.eup %1527  ;;  %1203 = vst [vmem:[%s2172_s3 + $0xa0] sm:$0xff] %v1526_v3  ;;  %v838_v14 = vpop.f32.mrb[29].mxu1  ;;  %v1083_v16 = vadd.f32 %v1911_v6, %v710_v11  ;;  %1553 = vtanh.f32 %v1085_v9 }
 0x121   :  { %v1530_v8 = vpop.eup %1529  ;;  %1235 = vst [vmem:[%s2172_s3 + $0x1a0] sm:$0xff] %v1528_v4  ;;  %v1115_v17 = vadd.f32 %v1911_v6, %v838_v14  ;;  %v1395_v20 = vpop.f32.mrb[30].mxu0  ;;  %1555 = vtanh.f32 %v1117_v10 }
 0x122   :  { %v1532_v15 = vpop.eup %1531  ;;  %1206 = vst [vmem:[%s2172_s3 + $0xb8] sm:$0xff] %v1530_v8  ;;  %v1427_v21 = vpop.f32.mrb[30].mxu1  ;;  %v1086_v23 = vadd.f32 %v1395_v20, %v1911_v6  ;;  %1557 = vtanh.f32 %v1083_v16 }
 0x123   :  { %v1534_v22 = vpop.eup %1533  ;;  %1238 = vst [vmem:[%s2172_s3 + $0x1b8] sm:$0xff] %v1532_v15  ;;  %v713_v24 = vpop.f32.mrb[31].mxu0  ;;  %v1118_v28 = vadd.f32 %v1427_v21, %v1911_v6  ;;  %1559 = vtanh.f32 %v1115_v17 }
 0x124   :  { %v841_v26 = vpop.f32.mrb[31].mxu1  ;;  %v1536_v27 = vpop.eup %1535  ;;  %1204 = vst [vmem:[%s2172_s3 + $0xa8] sm:$0xff] %v1534_v22  ;;  %v1084_v31 = vadd.f32 %v1911_v6, %v713_v24  ;;  %1561 = vtanh.f32 %v1086_v23 }
 0x125   :  { %v1538_v30 = vpop.eup %1537  ;;  %1236 = vst [vmem:[%s2172_s3 + $0x1a8] sm:$0xff] %v1536_v27  ;;  %v1116_v33 = vadd.f32 %v1911_v6, %v841_v26  ;;  %1563 = vtanh.f32 %v1118_v28 }
 0x126   :  { %v1540_v32 = vpop.eup %1539  ;;  %1209 = vst [vmem:[%s2172_s3 + $0xd0] sm:$0xff] %v1538_v30  ;;  %1565 = vtanh.f32 %v1084_v31 }
 0x127   :  { %v1542_v34 = vpop.eup %1541  ;;  %1241 = vst [vmem:[%s2172_s3 + $0x1d0] sm:$0xff] %v1540_v32  ;;  %1567 = vtanh.f32 %v1116_v33 }
 0x128   :  { %v1544_v35 = vpop.eup %1543  ;;  %1207 = vst [vmem:[%s2172_s3 + $0xc0] sm:$0xff] %v1542_v34 }
 0x129   :  { %v1546_v36 = vpop.eup %1545  ;;  %1239 = vst [vmem:[%s2172_s3 + $0x1c0] sm:$0xff] %v1544_v35 }
 0x12a   :  { %v1548_v37 = vpop.eup %1547  ;;  %1210 = vst [vmem:[%s2172_s3 + $0xd8] sm:$0xff] %v1546_v36 }
 0x12b   :  { %v1550_v6 = vpop.eup %1549  ;;  %1242 = vst [vmem:[%s2172_s3 + $0x1d8] sm:$0xff] %v1548_v37 }
 0x12c   :  { %v1552_v38 = vpop.eup %1551  ;;  %1208 = vst [vmem:[%s2172_s3 + $0xc8] sm:$0xff] %v1550_v6 }
 0x12d   :  { %v1554_v39 = vpop.eup %1553  ;;  %1240 = vst [vmem:[%s2172_s3 + $0x1c8] sm:$0xff] %v1552_v38 }
 0x12e   :  { %v1556_v40 = vpop.eup %1555  ;;  %1213 = vst [vmem:[%s2172_s3 + $0xf0] sm:$0xff] %v1554_v39 }
 0x12f   :  { %v1558_v41 = vpop.eup %1557  ;;  %1245 = vst [vmem:[%s2172_s3 + $0x1f0] sm:$0xff] %v1556_v40 }
 0x130   :  { %v1560_v42 = vpop.eup %1559  ;;  %1211 = vst [vmem:[%s2172_s3 + $0xe0] sm:$0xff] %v1558_v41 }
 0x131   :  { %v1562_v43 = vpop.eup %1561  ;;  %1243 = vst [vmem:[%s2172_s3 + $0x1e0] sm:$0xff] %v1560_v42 }
 0x132   :  { %v1564_v44 = vpop.eup %1563  ;;  %1214 = vst [vmem:[%s2172_s3 + $0xf8] sm:$0xff] %v1562_v43 }
 0x133   :  { %v1566_v45 = vpop.eup %1565  ;;  %1246 = vst [vmem:[%s2172_s3 + $0x1f8] sm:$0xff] %v1564_v44 }
 0x134   :  { %v1568_v46 = vpop.eup %1567  ;;  %1212 = vst [vmem:[%s2172_s3 + $0xe8] sm:$0xff] %v1566_v45 }
 0x135   :  { %1244 = vst [vmem:[%s2172_s3 + $0x1e8] sm:$0xff] %v1568_v46 }

</bundles_post_ra>
